<compile_context>
chip_gen: v7x
topology: tpu7x:2x2x1
jax: 0.10.0
libtpu: 0.0.40
codegen_flags: <defaults>
</compile_context>

<pallas_src>
import jax
import jax.numpy as jnp
from jax.experimental import pallas as pl
from jax.experimental.pallas import tpu as pltpu

# Problem constants implied by the module / input x107.
C = 288            # channels (== groups)
H = W = 14         # input spatial
KH = KW = 5        # kernel
STRIDE = 2
PAD = 2
HO = (H + 2 * PAD - KH) // STRIDE + 1    # 7
WO = (W + 2 * PAD - KW) // STRIDE + 1    # 7

ROWS_PER_STEP = 4                         # output rows computed per grid step
HO_PAD = 2 * ROWS_PER_STEP                # 8 (row 7 is a discarded pad row)
HP = STRIDE * (HO_PAD - 1) + KH           # 19 padded input rows needed
WP = W + 2 * PAD                          # 18 padded input cols


def dw_conv5x5_s2_kernel(xkw_ref, w_ref, o_ref):
    """Depthwise 5x5 stride-2 conv; one block of ROWS_PER_STEP output rows per step.

    xkw_ref: (KW, HP, WO, C)   xkw[kw, h, j, c] = x_padded[h, 2*j + kw, c]  (VMEM)
    w_ref  : (KH*KW, C)        w_ref[kh*KW + kw, c] = weight[c, 0, kh, kw]  (VMEM)
    o_ref  : (ROWS_PER_STEP, WO, C)  output rows for this grid step         (VMEM)
    """
    g = pl.program_id(0)
    for r in range(ROWS_PER_STEP):                   # 4 rows; acc is only ~3 vregs each
        h0 = STRIDE * (g * ROWS_PER_STEP + r)        # first padded input row of this output row
        acc = jnp.zeros((WO, C), jnp.float32)
        for kh in range(KH):
            for kw in range(KW):
                # Aligned full-slab tap load: offsets live on leading (untiled) axes only.
                xs = xkw_ref[kw, h0 + kh, :, :]      # (WO, C)
                wt = w_ref[kh * KW + kw, :]          # (C,), broadcast over sublanes; reused/CSE'd across rows
                acc = acc + xs * wt
        o_ref[r, :, :] = acc.astype(o_ref.dtype)


@jax.jit
def depthwise_conv2d_5x5_s2(x_nchw, w_oihw):
    """x_nchw: (1, C, H, W) f32, w_oihw: (C, 1, 5, 5) f32 -> (1, C, HO, WO) f32."""
    # --- glue (kept minimal; fuses under jit) ---
    x_hwc = jnp.transpose(x_nchw[0], (1, 2, 0))                        # (H, W, C)
    xp = jnp.pad(x_hwc, ((PAD, HP - H - PAD), (PAD, PAD), (0, 0)))     # (HP, WP, C) zero-padded
    # Stride-2 column de-interleave per kernel-column offset:
    #   xkw[kw, h, j, c] = xp[h, 2*j + kw, c]
    xkw = jnp.stack([xp[:, kw: kw + 2 * WO - 1: 2, :] for kw in range(KW)],
                    axis=0)                                            # (KW, HP, WO, C)
    w2 = jnp.transpose(w_oihw[:, 0].reshape(C, KH * KW), (1, 0))       # (KH*KW, C)

    flops = 2 * HO * WO * C * KH * KW
    bytes_accessed = 4 * (KW * HP * WO * C + KH * KW * C + HO_PAD * WO * C)

    out_hwc = pl.pallas_call(
        dw_conv5x5_s2_kernel,
        out_shape=jax.ShapeDtypeStruct((HO_PAD, WO, C), x_nchw.dtype),
        grid=(HO_PAD // ROWS_PER_STEP,),
        in_specs=[
            pl.BlockSpec((KW, HP, WO, C), lambda g: (0, 0, 0, 0)),     # whole input, VMEM resident
            pl.BlockSpec((KH * KW, C), lambda g: (0, 0)),              # all taps, VMEM resident
        ],
        out_specs=pl.BlockSpec((ROWS_PER_STEP, WO, C), lambda g: (g, 0, 0)),
        compiler_params=pltpu.CompilerParams(
            dimension_semantics=("parallel",)),                        # both TCs on v7x
        cost_estimate=pl.CostEstimate(
            flops=flops, transcendentals=0, bytes_accessed=bytes_accessed),
    )(xkw, w2)                                                         # (HO_PAD, WO, C)

    # --- glue out: drop the pad row, HWC -> NCHW ---
    return jnp.transpose(out_hwc[:HO], (2, 0, 1))[None]                # (1, C, HO, WO)


if __name__ == "__main__":
    key = jax.random.PRNGKey(0)
    kx, kw_key = jax.random.split(key)
    x107 = jax.random.normal(kx, (1, C, H, W), dtype=jnp.float32)
    # Conv2d(288, 288, k=5, groups=288, bias=False) weight shape: (288, 1, 5, 5)
    weight = jax.random.normal(kw_key, (C, 1, KH, KW), dtype=jnp.float32) * 0.05

    out = jax.block_until_ready(depthwise_conv2d_5x5_s2(x107, weight))
    assert out.shape == (1, C, HO, WO), out.shape

    # Reference check against XLA's grouped conv (same semantics as the PyTorch module).
    ref = jax.lax.conv_general_dilated(
        x107, weight, window_strides=(STRIDE, STRIDE),
        padding=((PAD, PAD), (PAD, PAD)),
        dimension_numbers=("NCHW", "OIHW", "NCHW"),
        feature_group_count=C)
    ref = jax.block_until_ready(ref)

    if jnp.allclose(out, ref, atol=1e-4, rtol=1e-4):
        print("KERNEL_OK")
    else:
        print("MISMATCH", float(jnp.max(jnp.abs(out - ref))))
</pallas_src>

<mosaic_0001>
module attributes {stable_mosaic.version = 11 : i64} {
  func.func @dw_conv5x5_s2_kernel(%arg0: i32, %arg1: memref<5x19x7x288xf32, #tpu.memory_space<vmem>>, %arg2: memref<25x288xf32, #tpu.memory_space<vmem>>, %arg3: memref<4x7x288xf32, #tpu.memory_space<vmem>>) attributes {dimension_semantics = [#tpu.dimension_semantics<parallel>], iteration_bounds = array<i64: 2>, scalar_prefetch = 0 : i64, scratch_operands = 0 : i64, tpu.core_type = #tpu.core_type<tc>, window_params = [{pipeline_mode = #tpu.pipeline_mode<synchronous>, transform_indices = @transform_0, window_bounds = array<i64: 5, 19, 7, 288>}, {pipeline_mode = #tpu.pipeline_mode<synchronous>, transform_indices = @transform_1, window_bounds = array<i64: 25, 288>}, {transform_indices = @transform_2, window_bounds = array<i64: 4, 7, 288>}]} {
    %c4_i32 = arith.constant 4 : i32
    %0 = arith.muli %arg0, %c4_i32 : i32
    %c0_i32 = arith.constant 0 : i32
    %1 = arith.addi %0, %c0_i32 : i32
    %c2_i32 = arith.constant 2 : i32
    %2 = arith.muli %c2_i32, %1 : i32
    %cst = arith.constant 0.000000e+00 : f32
    %3 = vector.broadcast %cst : f32 to vector<7x288xf32>
    %c0_i32_0 = arith.constant 0 : i32
    %4 = arith.addi %2, %c0_i32_0 : i32
    %c0 = arith.constant 0 : index
    %5 = arith.index_cast %4 : i32 to index
    %c0_1 = arith.constant 0 : index
    %c0_2 = arith.constant 0 : index
    %6 = vector.load %arg1[%c0, %5, %c0_1, %c0_2] : memref<5x19x7x288xf32, #tpu.memory_space<vmem>>, vector<1x1x7x288xf32>
    %7 = vector.shape_cast %6 : vector<1x1x7x288xf32> to vector<7x288xf32>
    %c0_3 = arith.constant 0 : index
    %c0_4 = arith.constant 0 : index
    %8 = vector.load %arg2[%c0_3, %c0_4] : memref<25x288xf32, #tpu.memory_space<vmem>>, vector<1x288xf32>
    %9 = vector.shape_cast %8 : vector<1x288xf32> to vector<288xf32>
    %10 = vector.shape_cast %9 : vector<288xf32> to vector<1x288xf32>
    %11 = vector.broadcast %10 : vector<1x288xf32> to vector<7x288xf32>
    %12 = arith.mulf %7, %11 : vector<7x288xf32>
    %13 = arith.addf %3, %12 : vector<7x288xf32>
    %c0_i32_5 = arith.constant 0 : i32
    %14 = arith.addi %2, %c0_i32_5 : i32
    %c1 = arith.constant 1 : index
    %15 = arith.index_cast %14 : i32 to index
    %c0_6 = arith.constant 0 : index
    %c0_7 = arith.constant 0 : index
    %16 = vector.load %arg1[%c1, %15, %c0_6, %c0_7] : memref<5x19x7x288xf32, #tpu.memory_space<vmem>>, vector<1x1x7x288xf32>
    %17 = vector.shape_cast %16 : vector<1x1x7x288xf32> to vector<7x288xf32>
    %c1_8 = arith.constant 1 : index
    %c0_9 = arith.constant 0 : index
    %18 = vector.load %arg2[%c1_8, %c0_9] : memref<25x288xf32, #tpu.memory_space<vmem>>, vector<1x288xf32>
    %19 = vector.shape_cast %18 : vector<1x288xf32> to vector<288xf32>
    %20 = vector.shape_cast %19 : vector<288xf32> to vector<1x288xf32>
    %21 = vector.broadcast %20 : vector<1x288xf32> to vector<7x288xf32>
    %22 = arith.mulf %17, %21 : vector<7x288xf32>
    %23 = arith.addf %13, %22 : vector<7x288xf32>
    %c0_i32_10 = arith.constant 0 : i32
    %24 = arith.addi %2, %c0_i32_10 : i32
    %c2 = arith.constant 2 : index
    %25 = arith.index_cast %24 : i32 to index
    %c0_11 = arith.constant 0 : index
    %c0_12 = arith.constant 0 : index
    %26 = vector.load %arg1[%c2, %25, %c0_11, %c0_12] : memref<5x19x7x288xf32, #tpu.memory_space<vmem>>, vector<1x1x7x288xf32>
    %27 = vector.shape_cast %26 : vector<1x1x7x288xf32> to vector<7x288xf32>
    %c2_13 = arith.constant 2 : index
    %c0_14 = arith.constant 0 : index
    %28 = vector.load %arg2[%c2_13, %c0_14] : memref<25x288xf32, #tpu.memory_space<vmem>>, vector<1x288xf32>
    %29 = vector.shape_cast %28 : vector<1x288xf32> to vector<288xf32>
    %30 = vector.shape_cast %29 : vector<288xf32> to vector<1x288xf32>
    %31 = vector.broadcast %30 : vector<1x288xf32> to vector<7x288xf32>
    %32 = arith.mulf %27, %31 : vector<7x288xf32>
    %33 = arith.addf %23, %32 : vector<7x288xf32>
    %c0_i32_15 = arith.constant 0 : i32
    %34 = arith.addi %2, %c0_i32_15 : i32
    %c3 = arith.constant 3 : index
    %35 = arith.index_cast %34 : i32 to index
    %c0_16 = arith.constant 0 : index
    %c0_17 = arith.constant 0 : index
    %36 = vector.load %arg1[%c3, %35, %c0_16, %c0_17] : memref<5x19x7x288xf32, #tpu.memory_space<vmem>>, vector<1x1x7x288xf32>
    %37 = vector.shape_cast %36 : vector<1x1x7x288xf32> to vector<7x288xf32>
    %c3_18 = arith.constant 3 : index
    %c0_19 = arith.constant 0 : index
    %38 = vector.load %arg2[%c3_18, %c0_19] : memref<25x288xf32, #tpu.memory_space<vmem>>, vector<1x288xf32>
    %39 = vector.shape_cast %38 : vector<1x288xf32> to vector<288xf32>
    %40 = vector.shape_cast %39 : vector<288xf32> to vector<1x288xf32>
    %41 = vector.broadcast %40 : vector<1x288xf32> to vector<7x288xf32>
    %42 = arith.mulf %37, %41 : vector<7x288xf32>
    %43 = arith.addf %33, %42 : vector<7x288xf32>
    %c0_i32_20 = arith.constant 0 : i32
    %44 = arith.addi %2, %c0_i32_20 : i32
    %c4 = arith.constant 4 : index
    %45 = arith.index_cast %44 : i32 to index
    %c0_21 = arith.constant 0 : index
    %c0_22 = arith.constant 0 : index
    %46 = vector.load %arg1[%c4, %45, %c0_21, %c0_22] : memref<5x19x7x288xf32, #tpu.memory_space<vmem>>, vector<1x1x7x288xf32>
    %47 = vector.shape_cast %46 : vector<1x1x7x288xf32> to vector<7x288xf32>
    %c4_23 = arith.constant 4 : index
    %c0_24 = arith.constant 0 : index
    %48 = vector.load %arg2[%c4_23, %c0_24] : memref<25x288xf32, #tpu.memory_space<vmem>>, vector<1x288xf32>
    %49 = vector.shape_cast %48 : vector<1x288xf32> to vector<288xf32>
    %50 = vector.shape_cast %49 : vector<288xf32> to vector<1x288xf32>
    %51 = vector.broadcast %50 : vector<1x288xf32> to vector<7x288xf32>
    %52 = arith.mulf %47, %51 : vector<7x288xf32>
    %53 = arith.addf %43, %52 : vector<7x288xf32>
    %c1_i32 = arith.constant 1 : i32
    %54 = arith.addi %2, %c1_i32 : i32
    %c0_25 = arith.constant 0 : index
    %55 = arith.index_cast %54 : i32 to index
    %c0_26 = arith.constant 0 : index
    %c0_27 = arith.constant 0 : index
    %56 = vector.load %arg1[%c0_25, %55, %c0_26, %c0_27] : memref<5x19x7x288xf32, #tpu.memory_space<vmem>>, vector<1x1x7x288xf32>
    %57 = vector.shape_cast %56 : vector<1x1x7x288xf32> to vector<7x288xf32>
    %c5 = arith.constant 5 : index
    %c0_28 = arith.constant 0 : index
    %58 = vector.load %arg2[%c5, %c0_28] : memref<25x288xf32, #tpu.memory_space<vmem>>, vector<1x288xf32>
    %59 = vector.shape_cast %58 : vector<1x288xf32> to vector<288xf32>
    %60 = vector.shape_cast %59 : vector<288xf32> to vector<1x288xf32>
    %61 = vector.broadcast %60 : vector<1x288xf32> to vector<7x288xf32>
    %62 = arith.mulf %57, %61 : vector<7x288xf32>
    %63 = arith.addf %53, %62 : vector<7x288xf32>
    %c1_i32_29 = arith.constant 1 : i32
    %64 = arith.addi %2, %c1_i32_29 : i32
    %c1_30 = arith.constant 1 : index
    %65 = arith.index_cast %64 : i32 to index
    %c0_31 = arith.constant 0 : index
    %c0_32 = arith.constant 0 : index
    %66 = vector.load %arg1[%c1_30, %65, %c0_31, %c0_32] : memref<5x19x7x288xf32, #tpu.memory_space<vmem>>, vector<1x1x7x288xf32>
    %67 = vector.shape_cast %66 : vector<1x1x7x288xf32> to vector<7x288xf32>
    %c6 = arith.constant 6 : index
    %c0_33 = arith.constant 0 : index
    %68 = vector.load %arg2[%c6, %c0_33] : memref<25x288xf32, #tpu.memory_space<vmem>>, vector<1x288xf32>
    %69 = vector.shape_cast %68 : vector<1x288xf32> to vector<288xf32>
    %70 = vector.shape_cast %69 : vector<288xf32> to vector<1x288xf32>
    %71 = vector.broadcast %70 : vector<1x288xf32> to vector<7x288xf32>
    %72 = arith.mulf %67, %71 : vector<7x288xf32>
    %73 = arith.addf %63, %72 : vector<7x288xf32>
    %c1_i32_34 = arith.constant 1 : i32
    %74 = arith.addi %2, %c1_i32_34 : i32
    %c2_35 = arith.constant 2 : index
    %75 = arith.index_cast %74 : i32 to index
    %c0_36 = arith.constant 0 : index
    %c0_37 = arith.constant 0 : index
    %76 = vector.load %arg1[%c2_35, %75, %c0_36, %c0_37] : memref<5x19x7x288xf32, #tpu.memory_space<vmem>>, vector<1x1x7x288xf32>
    %77 = vector.shape_cast %76 : vector<1x1x7x288xf32> to vector<7x288xf32>
    %c7 = arith.constant 7 : index
    %c0_38 = arith.constant 0 : index
    %78 = vector.load %arg2[%c7, %c0_38] : memref<25x288xf32, #tpu.memory_space<vmem>>, vector<1x288xf32>
    %79 = vector.shape_cast %78 : vector<1x288xf32> to vector<288xf32>
    %80 = vector.shape_cast %79 : vector<288xf32> to vector<1x288xf32>
    %81 = vector.broadcast %80 : vector<1x288xf32> to vector<7x288xf32>
    %82 = arith.mulf %77, %81 : vector<7x288xf32>
    %83 = arith.addf %73, %82 : vector<7x288xf32>
    %c1_i32_39 = arith.constant 1 : i32
    %84 = arith.addi %2, %c1_i32_39 : i32
    %c3_40 = arith.constant 3 : index
    %85 = arith.index_cast %84 : i32 to index
    %c0_41 = arith.constant 0 : index
    %c0_42 = arith.constant 0 : index
    %86 = vector.load %arg1[%c3_40, %85, %c0_41, %c0_42] : memref<5x19x7x288xf32, #tpu.memory_space<vmem>>, vector<1x1x7x288xf32>
    %87 = vector.shape_cast %86 : vector<1x1x7x288xf32> to vector<7x288xf32>
    %c8 = arith.constant 8 : index
    %c0_43 = arith.constant 0 : index
    %88 = vector.load %arg2[%c8, %c0_43] : memref<25x288xf32, #tpu.memory_space<vmem>>, vector<1x288xf32>
    %89 = vector.shape_cast %88 : vector<1x288xf32> to vector<288xf32>
    %90 = vector.shape_cast %89 : vector<288xf32> to vector<1x288xf32>
    %91 = vector.broadcast %90 : vector<1x288xf32> to vector<7x288xf32>
    %92 = arith.mulf %87, %91 : vector<7x288xf32>
    %93 = arith.addf %83, %92 : vector<7x288xf32>
    %c1_i32_44 = arith.constant 1 : i32
    %94 = arith.addi %2, %c1_i32_44 : i32
    %c4_45 = arith.constant 4 : index
    %95 = arith.index_cast %94 : i32 to index
    %c0_46 = arith.constant 0 : index
    %c0_47 = arith.constant 0 : index
    %96 = vector.load %arg1[%c4_45, %95, %c0_46, %c0_47] : memref<5x19x7x288xf32, #tpu.memory_space<vmem>>, vector<1x1x7x288xf32>
    %97 = vector.shape_cast %96 : vector<1x1x7x288xf32> to vector<7x288xf32>
    %c9 = arith.constant 9 : index
    %c0_48 = arith.constant 0 : index
    %98 = vector.load %arg2[%c9, %c0_48] : memref<25x288xf32, #tpu.memory_space<vmem>>, vector<1x288xf32>
    %99 = vector.shape_cast %98 : vector<1x288xf32> to vector<288xf32>
    %100 = vector.shape_cast %99 : vector<288xf32> to vector<1x288xf32>
    %101 = vector.broadcast %100 : vector<1x288xf32> to vector<7x288xf32>
    %102 = arith.mulf %97, %101 : vector<7x288xf32>
    %103 = arith.addf %93, %102 : vector<7x288xf32>
    %c2_i32_49 = arith.constant 2 : i32
    %104 = arith.addi %2, %c2_i32_49 : i32
    %c0_50 = arith.constant 0 : index
    %105 = arith.index_cast %104 : i32 to index
    %c0_51 = arith.constant 0 : index
    %c0_52 = arith.constant 0 : index
    %106 = vector.load %arg1[%c0_50, %105, %c0_51, %c0_52] : memref<5x19x7x288xf32, #tpu.memory_space<vmem>>, vector<1x1x7x288xf32>
    %107 = vector.shape_cast %106 : vector<1x1x7x288xf32> to vector<7x288xf32>
    %c10 = arith.constant 10 : index
    %c0_53 = arith.constant 0 : index
    %108 = vector.load %arg2[%c10, %c0_53] : memref<25x288xf32, #tpu.memory_space<vmem>>, vector<1x288xf32>
    %109 = vector.shape_cast %108 : vector<1x288xf32> to vector<288xf32>
    %110 = vector.shape_cast %109 : vector<288xf32> to vector<1x288xf32>
    %111 = vector.broadcast %110 : vector<1x288xf32> to vector<7x288xf32>
    %112 = arith.mulf %107, %111 : vector<7x288xf32>
    %113 = arith.addf %103, %112 : vector<7x288xf32>
    %c2_i32_54 = arith.constant 2 : i32
    %114 = arith.addi %2, %c2_i32_54 : i32
    %c1_55 = arith.constant 1 : index
    %115 = arith.index_cast %114 : i32 to index
    %c0_56 = arith.constant 0 : index
    %c0_57 = arith.constant 0 : index
    %116 = vector.load %arg1[%c1_55, %115, %c0_56, %c0_57] : memref<5x19x7x288xf32, #tpu.memory_space<vmem>>, vector<1x1x7x288xf32>
    %117 = vector.shape_cast %116 : vector<1x1x7x288xf32> to vector<7x288xf32>
    %c11 = arith.constant 11 : index
    %c0_58 = arith.constant 0 : index
    %118 = vector.load %arg2[%c11, %c0_58] : memref<25x288xf32, #tpu.memory_space<vmem>>, vector<1x288xf32>
    %119 = vector.shape_cast %118 : vector<1x288xf32> to vector<288xf32>
    %120 = vector.shape_cast %119 : vector<288xf32> to vector<1x288xf32>
    %121 = vector.broadcast %120 : vector<1x288xf32> to vector<7x288xf32>
    %122 = arith.mulf %117, %121 : vector<7x288xf32>
    %123 = arith.addf %113, %122 : vector<7x288xf32>
    %c2_i32_59 = arith.constant 2 : i32
    %124 = arith.addi %2, %c2_i32_59 : i32
    %c2_60 = arith.constant 2 : index
    %125 = arith.index_cast %124 : i32 to index
    %c0_61 = arith.constant 0 : index
    %c0_62 = arith.constant 0 : index
    %126 = vector.load %arg1[%c2_60, %125, %c0_61, %c0_62] : memref<5x19x7x288xf32, #tpu.memory_space<vmem>>, vector<1x1x7x288xf32>
    %127 = vector.shape_cast %126 : vector<1x1x7x288xf32> to vector<7x288xf32>
    %c12 = arith.constant 12 : index
    %c0_63 = arith.constant 0 : index
    %128 = vector.load %arg2[%c12, %c0_63] : memref<25x288xf32, #tpu.memory_space<vmem>>, vector<1x288xf32>
    %129 = vector.shape_cast %128 : vector<1x288xf32> to vector<288xf32>
    %130 = vector.shape_cast %129 : vector<288xf32> to vector<1x288xf32>
    %131 = vector.broadcast %130 : vector<1x288xf32> to vector<7x288xf32>
    %132 = arith.mulf %127, %131 : vector<7x288xf32>
    %133 = arith.addf %123, %132 : vector<7x288xf32>
    %c2_i32_64 = arith.constant 2 : i32
    %134 = arith.addi %2, %c2_i32_64 : i32
    %c3_65 = arith.constant 3 : index
    %135 = arith.index_cast %134 : i32 to index
    %c0_66 = arith.constant 0 : index
    %c0_67 = arith.constant 0 : index
    %136 = vector.load %arg1[%c3_65, %135, %c0_66, %c0_67] : memref<5x19x7x288xf32, #tpu.memory_space<vmem>>, vector<1x1x7x288xf32>
    %137 = vector.shape_cast %136 : vector<1x1x7x288xf32> to vector<7x288xf32>
    %c13 = arith.constant 13 : index
    %c0_68 = arith.constant 0 : index
    %138 = vector.load %arg2[%c13, %c0_68] : memref<25x288xf32, #tpu.memory_space<vmem>>, vector<1x288xf32>
    %139 = vector.shape_cast %138 : vector<1x288xf32> to vector<288xf32>
    %140 = vector.shape_cast %139 : vector<288xf32> to vector<1x288xf32>
    %141 = vector.broadcast %140 : vector<1x288xf32> to vector<7x288xf32>
    %142 = arith.mulf %137, %141 : vector<7x288xf32>
    %143 = arith.addf %133, %142 : vector<7x288xf32>
    %c2_i32_69 = arith.constant 2 : i32
    %144 = arith.addi %2, %c2_i32_69 : i32
    %c4_70 = arith.constant 4 : index
    %145 = arith.index_cast %144 : i32 to index
    %c0_71 = arith.constant 0 : index
    %c0_72 = arith.constant 0 : index
    %146 = vector.load %arg1[%c4_70, %145, %c0_71, %c0_72] : memref<5x19x7x288xf32, #tpu.memory_space<vmem>>, vector<1x1x7x288xf32>
    %147 = vector.shape_cast %146 : vector<1x1x7x288xf32> to vector<7x288xf32>
    %c14 = arith.constant 14 : index
    %c0_73 = arith.constant 0 : index
    %148 = vector.load %arg2[%c14, %c0_73] : memref<25x288xf32, #tpu.memory_space<vmem>>, vector<1x288xf32>
    %149 = vector.shape_cast %148 : vector<1x288xf32> to vector<288xf32>
    %150 = vector.shape_cast %149 : vector<288xf32> to vector<1x288xf32>
    %151 = vector.broadcast %150 : vector<1x288xf32> to vector<7x288xf32>
    %152 = arith.mulf %147, %151 : vector<7x288xf32>
    %153 = arith.addf %143, %152 : vector<7x288xf32>
    %c3_i32 = arith.constant 3 : i32
    %154 = arith.addi %2, %c3_i32 : i32
    %c0_74 = arith.constant 0 : index
    %155 = arith.index_cast %154 : i32 to index
    %c0_75 = arith.constant 0 : index
    %c0_76 = arith.constant 0 : index
    %156 = vector.load %arg1[%c0_74, %155, %c0_75, %c0_76] : memref<5x19x7x288xf32, #tpu.memory_space<vmem>>, vector<1x1x7x288xf32>
    %157 = vector.shape_cast %156 : vector<1x1x7x288xf32> to vector<7x288xf32>
    %c15 = arith.constant 15 : index
    %c0_77 = arith.constant 0 : index
    %158 = vector.load %arg2[%c15, %c0_77] : memref<25x288xf32, #tpu.memory_space<vmem>>, vector<1x288xf32>
    %159 = vector.shape_cast %158 : vector<1x288xf32> to vector<288xf32>
    %160 = vector.shape_cast %159 : vector<288xf32> to vector<1x288xf32>
    %161 = vector.broadcast %160 : vector<1x288xf32> to vector<7x288xf32>
    %162 = arith.mulf %157, %161 : vector<7x288xf32>
    %163 = arith.addf %153, %162 : vector<7x288xf32>
    %c3_i32_78 = arith.constant 3 : i32
    %164 = arith.addi %2, %c3_i32_78 : i32
    %c1_79 = arith.constant 1 : index
    %165 = arith.index_cast %164 : i32 to index
    %c0_80 = arith.constant 0 : index
    %c0_81 = arith.constant 0 : index
    %166 = vector.load %arg1[%c1_79, %165, %c0_80, %c0_81] : memref<5x19x7x288xf32, #tpu.memory_space<vmem>>, vector<1x1x7x288xf32>
    %167 = vector.shape_cast %166 : vector<1x1x7x288xf32> to vector<7x288xf32>
    %c16 = arith.constant 16 : index
    %c0_82 = arith.constant 0 : index
    %168 = vector.load %arg2[%c16, %c0_82] : memref<25x288xf32, #tpu.memory_space<vmem>>, vector<1x288xf32>
    %169 = vector.shape_cast %168 : vector<1x288xf32> to vector<288xf32>
    %170 = vector.shape_cast %169 : vector<288xf32> to vector<1x288xf32>
    %171 = vector.broadcast %170 : vector<1x288xf32> to vector<7x288xf32>
    %172 = arith.mulf %167, %171 : vector<7x288xf32>
    %173 = arith.addf %163, %172 : vector<7x288xf32>
    %c3_i32_83 = arith.constant 3 : i32
    %174 = arith.addi %2, %c3_i32_83 : i32
    %c2_84 = arith.constant 2 : index
    %175 = arith.index_cast %174 : i32 to index
    %c0_85 = arith.constant 0 : index
    %c0_86 = arith.constant 0 : index
    %176 = vector.load %arg1[%c2_84, %175, %c0_85, %c0_86] : memref<5x19x7x288xf32, #tpu.memory_space<vmem>>, vector<1x1x7x288xf32>
    %177 = vector.shape_cast %176 : vector<1x1x7x288xf32> to vector<7x288xf32>
    %c17 = arith.constant 17 : index
    %c0_87 = arith.constant 0 : index
    %178 = vector.load %arg2[%c17, %c0_87] : memref<25x288xf32, #tpu.memory_space<vmem>>, vector<1x288xf32>
    %179 = vector.shape_cast %178 : vector<1x288xf32> to vector<288xf32>
    %180 = vector.shape_cast %179 : vector<288xf32> to vector<1x288xf32>
    %181 = vector.broadcast %180 : vector<1x288xf32> to vector<7x288xf32>
    %182 = arith.mulf %177, %181 : vector<7x288xf32>
    %183 = arith.addf %173, %182 : vector<7x288xf32>
    %c3_i32_88 = arith.constant 3 : i32
    %184 = arith.addi %2, %c3_i32_88 : i32
    %c3_89 = arith.constant 3 : index
    %185 = arith.index_cast %184 : i32 to index
    %c0_90 = arith.constant 0 : index
    %c0_91 = arith.constant 0 : index
    %186 = vector.load %arg1[%c3_89, %185, %c0_90, %c0_91] : memref<5x19x7x288xf32, #tpu.memory_space<vmem>>, vector<1x1x7x288xf32>
    %187 = vector.shape_cast %186 : vector<1x1x7x288xf32> to vector<7x288xf32>
    %c18 = arith.constant 18 : index
    %c0_92 = arith.constant 0 : index
    %188 = vector.load %arg2[%c18, %c0_92] : memref<25x288xf32, #tpu.memory_space<vmem>>, vector<1x288xf32>
    %189 = vector.shape_cast %188 : vector<1x288xf32> to vector<288xf32>
    %190 = vector.shape_cast %189 : vector<288xf32> to vector<1x288xf32>
    %191 = vector.broadcast %190 : vector<1x288xf32> to vector<7x288xf32>
    %192 = arith.mulf %187, %191 : vector<7x288xf32>
    %193 = arith.addf %183, %192 : vector<7x288xf32>
    %c3_i32_93 = arith.constant 3 : i32
    %194 = arith.addi %2, %c3_i32_93 : i32
    %c4_94 = arith.constant 4 : index
    %195 = arith.index_cast %194 : i32 to index
    %c0_95 = arith.constant 0 : index
    %c0_96 = arith.constant 0 : index
    %196 = vector.load %arg1[%c4_94, %195, %c0_95, %c0_96] : memref<5x19x7x288xf32, #tpu.memory_space<vmem>>, vector<1x1x7x288xf32>
    %197 = vector.shape_cast %196 : vector<1x1x7x288xf32> to vector<7x288xf32>
    %c19 = arith.constant 19 : index
    %c0_97 = arith.constant 0 : index
    %198 = vector.load %arg2[%c19, %c0_97] : memref<25x288xf32, #tpu.memory_space<vmem>>, vector<1x288xf32>
    %199 = vector.shape_cast %198 : vector<1x288xf32> to vector<288xf32>
    %200 = vector.shape_cast %199 : vector<288xf32> to vector<1x288xf32>
    %201 = vector.broadcast %200 : vector<1x288xf32> to vector<7x288xf32>
    %202 = arith.mulf %197, %201 : vector<7x288xf32>
    %203 = arith.addf %193, %202 : vector<7x288xf32>
    %c4_i32_98 = arith.constant 4 : i32
    %204 = arith.addi %2, %c4_i32_98 : i32
    %c0_99 = arith.constant 0 : index
    %205 = arith.index_cast %204 : i32 to index
    %c0_100 = arith.constant 0 : index
    %c0_101 = arith.constant 0 : index
    %206 = vector.load %arg1[%c0_99, %205, %c0_100, %c0_101] : memref<5x19x7x288xf32, #tpu.memory_space<vmem>>, vector<1x1x7x288xf32>
    %207 = vector.shape_cast %206 : vector<1x1x7x288xf32> to vector<7x288xf32>
    %c20 = arith.constant 20 : index
    %c0_102 = arith.constant 0 : index
    %208 = vector.load %arg2[%c20, %c0_102] : memref<25x288xf32, #tpu.memory_space<vmem>>, vector<1x288xf32>
    %209 = vector.shape_cast %208 : vector<1x288xf32> to vector<288xf32>
    %210 = vector.shape_cast %209 : vector<288xf32> to vector<1x288xf32>
    %211 = vector.broadcast %210 : vector<1x288xf32> to vector<7x288xf32>
    %212 = arith.mulf %207, %211 : vector<7x288xf32>
    %213 = arith.addf %203, %212 : vector<7x288xf32>
    %c4_i32_103 = arith.constant 4 : i32
    %214 = arith.addi %2, %c4_i32_103 : i32
    %c1_104 = arith.constant 1 : index
    %215 = arith.index_cast %214 : i32 to index
    %c0_105 = arith.constant 0 : index
    %c0_106 = arith.constant 0 : index
    %216 = vector.load %arg1[%c1_104, %215, %c0_105, %c0_106] : memref<5x19x7x288xf32, #tpu.memory_space<vmem>>, vector<1x1x7x288xf32>
    %217 = vector.shape_cast %216 : vector<1x1x7x288xf32> to vector<7x288xf32>
    %c21 = arith.constant 21 : index
    %c0_107 = arith.constant 0 : index
    %218 = vector.load %arg2[%c21, %c0_107] : memref<25x288xf32, #tpu.memory_space<vmem>>, vector<1x288xf32>
    %219 = vector.shape_cast %218 : vector<1x288xf32> to vector<288xf32>
    %220 = vector.shape_cast %219 : vector<288xf32> to vector<1x288xf32>
    %221 = vector.broadcast %220 : vector<1x288xf32> to vector<7x288xf32>
    %222 = arith.mulf %217, %221 : vector<7x288xf32>
    %223 = arith.addf %213, %222 : vector<7x288xf32>
    %c4_i32_108 = arith.constant 4 : i32
    %224 = arith.addi %2, %c4_i32_108 : i32
    %c2_109 = arith.constant 2 : index
    %225 = arith.index_cast %224 : i32 to index
    %c0_110 = arith.constant 0 : index
    %c0_111 = arith.constant 0 : index
    %226 = vector.load %arg1[%c2_109, %225, %c0_110, %c0_111] : memref<5x19x7x288xf32, #tpu.memory_space<vmem>>, vector<1x1x7x288xf32>
    %227 = vector.shape_cast %226 : vector<1x1x7x288xf32> to vector<7x288xf32>
    %c22 = arith.constant 22 : index
    %c0_112 = arith.constant 0 : index
    %228 = vector.load %arg2[%c22, %c0_112] : memref<25x288xf32, #tpu.memory_space<vmem>>, vector<1x288xf32>
    %229 = vector.shape_cast %228 : vector<1x288xf32> to vector<288xf32>
    %230 = vector.shape_cast %229 : vector<288xf32> to vector<1x288xf32>
    %231 = vector.broadcast %230 : vector<1x288xf32> to vector<7x288xf32>
    %232 = arith.mulf %227, %231 : vector<7x288xf32>
    %233 = arith.addf %223, %232 : vector<7x288xf32>
    %c4_i32_113 = arith.constant 4 : i32
    %234 = arith.addi %2, %c4_i32_113 : i32
    %c3_114 = arith.constant 3 : index
    %235 = arith.index_cast %234 : i32 to index
    %c0_115 = arith.constant 0 : index
    %c0_116 = arith.constant 0 : index
    %236 = vector.load %arg1[%c3_114, %235, %c0_115, %c0_116] : memref<5x19x7x288xf32, #tpu.memory_space<vmem>>, vector<1x1x7x288xf32>
    %237 = vector.shape_cast %236 : vector<1x1x7x288xf32> to vector<7x288xf32>
    %c23 = arith.constant 23 : index
    %c0_117 = arith.constant 0 : index
    %238 = vector.load %arg2[%c23, %c0_117] : memref<25x288xf32, #tpu.memory_space<vmem>>, vector<1x288xf32>
    %239 = vector.shape_cast %238 : vector<1x288xf32> to vector<288xf32>
    %240 = vector.shape_cast %239 : vector<288xf32> to vector<1x288xf32>
    %241 = vector.broadcast %240 : vector<1x288xf32> to vector<7x288xf32>
    %242 = arith.mulf %237, %241 : vector<7x288xf32>
    %243 = arith.addf %233, %242 : vector<7x288xf32>
    %c4_i32_118 = arith.constant 4 : i32
    %244 = arith.addi %2, %c4_i32_118 : i32
    %c4_119 = arith.constant 4 : index
    %245 = arith.index_cast %244 : i32 to index
    %c0_120 = arith.constant 0 : index
    %c0_121 = arith.constant 0 : index
    %246 = vector.load %arg1[%c4_119, %245, %c0_120, %c0_121] : memref<5x19x7x288xf32, #tpu.memory_space<vmem>>, vector<1x1x7x288xf32>
    %247 = vector.shape_cast %246 : vector<1x1x7x288xf32> to vector<7x288xf32>
    %c24 = arith.constant 24 : index
    %c0_122 = arith.constant 0 : index
    %248 = vector.load %arg2[%c24, %c0_122] : memref<25x288xf32, #tpu.memory_space<vmem>>, vector<1x288xf32>
    %249 = vector.shape_cast %248 : vector<1x288xf32> to vector<288xf32>
    %250 = vector.shape_cast %249 : vector<288xf32> to vector<1x288xf32>
    %251 = vector.broadcast %250 : vector<1x288xf32> to vector<7x288xf32>
    %252 = arith.mulf %247, %251 : vector<7x288xf32>
    %253 = arith.addf %243, %252 : vector<7x288xf32>
    %c0_123 = arith.constant 0 : index
    %c0_124 = arith.constant 0 : index
    %c0_125 = arith.constant 0 : index
    %254 = vector.load %arg3[%c0_123, %c0_124, %c0_125] : memref<4x7x288xf32, #tpu.memory_space<vmem>>, vector<1x7x288xf32>
    %255 = vector.shape_cast %254 : vector<1x7x288xf32> to vector<7x288xf32>
    %256 = vector.shape_cast %253 : vector<7x288xf32> to vector<1x7x288xf32>
    tpu.vector_store %arg3[%c0_123, %c0_124, %c0_125], %256 {strides = array<i32>} : memref<4x7x288xf32, #tpu.memory_space<vmem>>, vector<1x7x288xf32>,
    %c4_i32_126 = arith.constant 4 : i32
    %257 = arith.muli %arg0, %c4_i32_126 : i32
    %c1_i32_127 = arith.constant 1 : i32
    %258 = arith.addi %257, %c1_i32_127 : i32
    %c2_i32_128 = arith.constant 2 : i32
    %259 = arith.muli %c2_i32_128, %258 : i32
    %cst_129 = arith.constant 0.000000e+00 : f32
    %260 = vector.broadcast %cst_129 : f32 to vector<7x288xf32>
    %c0_i32_130 = arith.constant 0 : i32
    %261 = arith.addi %259, %c0_i32_130 : i32
    %c0_131 = arith.constant 0 : index
    %262 = arith.index_cast %261 : i32 to index
    %c0_132 = arith.constant 0 : index
    %c0_133 = arith.constant 0 : index
    %263 = vector.load %arg1[%c0_131, %262, %c0_132, %c0_133] : memref<5x19x7x288xf32, #tpu.memory_space<vmem>>, vector<1x1x7x288xf32>
    %264 = vector.shape_cast %263 : vector<1x1x7x288xf32> to vector<7x288xf32>
    %c0_134 = arith.constant 0 : index
    %c0_135 = arith.constant 0 : index
    %265 = vector.load %arg2[%c0_134, %c0_135] : memref<25x288xf32, #tpu.memory_space<vmem>>, vector<1x288xf32>
    %266 = vector.shape_cast %265 : vector<1x288xf32> to vector<288xf32>
    %267 = vector.shape_cast %266 : vector<288xf32> to vector<1x288xf32>
    %268 = vector.broadcast %267 : vector<1x288xf32> to vector<7x288xf32>
    %269 = arith.mulf %264, %268 : vector<7x288xf32>
    %270 = arith.addf %260, %269 : vector<7x288xf32>
    %c0_i32_136 = arith.constant 0 : i32
    %271 = arith.addi %259, %c0_i32_136 : i32
    %c1_137 = arith.constant 1 : index
    %272 = arith.index_cast %271 : i32 to index
    %c0_138 = arith.constant 0 : index
    %c0_139 = arith.constant 0 : index
    %273 = vector.load %arg1[%c1_137, %272, %c0_138, %c0_139] : memref<5x19x7x288xf32, #tpu.memory_space<vmem>>, vector<1x1x7x288xf32>
    %274 = vector.shape_cast %273 : vector<1x1x7x288xf32> to vector<7x288xf32>
    %c1_140 = arith.constant 1 : index
    %c0_141 = arith.constant 0 : index
    %275 = vector.load %arg2[%c1_140, %c0_141] : memref<25x288xf32, #tpu.memory_space<vmem>>, vector<1x288xf32>
    %276 = vector.shape_cast %275 : vector<1x288xf32> to vector<288xf32>
    %277 = vector.shape_cast %276 : vector<288xf32> to vector<1x288xf32>
    %278 = vector.broadcast %277 : vector<1x288xf32> to vector<7x288xf32>
    %279 = arith.mulf %274, %278 : vector<7x288xf32>
    %280 = arith.addf %270, %279 : vector<7x288xf32>
    %c0_i32_142 = arith.constant 0 : i32
    %281 = arith.addi %259, %c0_i32_142 : i32
    %c2_143 = arith.constant 2 : index
    %282 = arith.index_cast %281 : i32 to index
    %c0_144 = arith.constant 0 : index
    %c0_145 = arith.constant 0 : index
    %283 = vector.load %arg1[%c2_143, %282, %c0_144, %c0_145] : memref<5x19x7x288xf32, #tpu.memory_space<vmem>>, vector<1x1x7x288xf32>
    %284 = vector.shape_cast %283 : vector<1x1x7x288xf32> to vector<7x288xf32>
    %c2_146 = arith.constant 2 : index
    %c0_147 = arith.constant 0 : index
    %285 = vector.load %arg2[%c2_146, %c0_147] : memref<25x288xf32, #tpu.memory_space<vmem>>, vector<1x288xf32>
    %286 = vector.shape_cast %285 : vector<1x288xf32> to vector<288xf32>
    %287 = vector.shape_cast %286 : vector<288xf32> to vector<1x288xf32>
    %288 = vector.broadcast %287 : vector<1x288xf32> to vector<7x288xf32>
    %289 = arith.mulf %284, %288 : vector<7x288xf32>
    %290 = arith.addf %280, %289 : vector<7x288xf32>
    %c0_i32_148 = arith.constant 0 : i32
    %291 = arith.addi %259, %c0_i32_148 : i32
    %c3_149 = arith.constant 3 : index
    %292 = arith.index_cast %291 : i32 to index
    %c0_150 = arith.constant 0 : index
    %c0_151 = arith.constant 0 : index
    %293 = vector.load %arg1[%c3_149, %292, %c0_150, %c0_151] : memref<5x19x7x288xf32, #tpu.memory_space<vmem>>, vector<1x1x7x288xf32>
    %294 = vector.shape_cast %293 : vector<1x1x7x288xf32> to vector<7x288xf32>
    %c3_152 = arith.constant 3 : index
    %c0_153 = arith.constant 0 : index
    %295 = vector.load %arg2[%c3_152, %c0_153] : memref<25x288xf32, #tpu.memory_space<vmem>>, vector<1x288xf32>
    %296 = vector.shape_cast %295 : vector<1x288xf32> to vector<288xf32>
    %297 = vector.shape_cast %296 : vector<288xf32> to vector<1x288xf32>
    %298 = vector.broadcast %297 : vector<1x288xf32> to vector<7x288xf32>
    %299 = arith.mulf %294, %298 : vector<7x288xf32>
    %300 = arith.addf %290, %299 : vector<7x288xf32>
    %c0_i32_154 = arith.constant 0 : i32
    %301 = arith.addi %259, %c0_i32_154 : i32
    %c4_155 = arith.constant 4 : index
    %302 = arith.index_cast %301 : i32 to index
    %c0_156 = arith.constant 0 : index
    %c0_157 = arith.constant 0 : index
    %303 = vector.load %arg1[%c4_155, %302, %c0_156, %c0_157] : memref<5x19x7x288xf32, #tpu.memory_space<vmem>>, vector<1x1x7x288xf32>
    %304 = vector.shape_cast %303 : vector<1x1x7x288xf32> to vector<7x288xf32>
    %c4_158 = arith.constant 4 : index
    %c0_159 = arith.constant 0 : index
    %305 = vector.load %arg2[%c4_158, %c0_159] : memref<25x288xf32, #tpu.memory_space<vmem>>, vector<1x288xf32>
    %306 = vector.shape_cast %305 : vector<1x288xf32> to vector<288xf32>
    %307 = vector.shape_cast %306 : vector<288xf32> to vector<1x288xf32>
    %308 = vector.broadcast %307 : vector<1x288xf32> to vector<7x288xf32>
    %309 = arith.mulf %304, %308 : vector<7x288xf32>
    %310 = arith.addf %300, %309 : vector<7x288xf32>
    %c1_i32_160 = arith.constant 1 : i32
    %311 = arith.addi %259, %c1_i32_160 : i32
    %c0_161 = arith.constant 0 : index
    %312 = arith.index_cast %311 : i32 to index
    %c0_162 = arith.constant 0 : index
    %c0_163 = arith.constant 0 : index
    %313 = vector.load %arg1[%c0_161, %312, %c0_162, %c0_163] : memref<5x19x7x288xf32, #tpu.memory_space<vmem>>, vector<1x1x7x288xf32>
    %314 = vector.shape_cast %313 : vector<1x1x7x288xf32> to vector<7x288xf32>
    %c5_164 = arith.constant 5 : index
    %c0_165 = arith.constant 0 : index
    %315 = vector.load %arg2[%c5_164, %c0_165] : memref<25x288xf32, #tpu.memory_space<vmem>>, vector<1x288xf32>
    %316 = vector.shape_cast %315 : vector<1x288xf32> to vector<288xf32>
    %317 = vector.shape_cast %316 : vector<288xf32> to vector<1x288xf32>
    %318 = vector.broadcast %317 : vector<1x288xf32> to vector<7x288xf32>
    %319 = arith.mulf %314, %318 : vector<7x288xf32>
    %320 = arith.addf %310, %319 : vector<7x288xf32>
    %c1_i32_166 = arith.constant 1 : i32
    %321 = arith.addi %259, %c1_i32_166 : i32
    %c1_167 = arith.constant 1 : index
    %322 = arith.index_cast %321 : i32 to index
    %c0_168 = arith.constant 0 : index
    %c0_169 = arith.constant 0 : index
    %323 = vector.load %arg1[%c1_167, %322, %c0_168, %c0_169] : memref<5x19x7x288xf32, #tpu.memory_space<vmem>>, vector<1x1x7x288xf32>
    %324 = vector.shape_cast %323 : vector<1x1x7x288xf32> to vector<7x288xf32>
    %c6_170 = arith.constant 6 : index
    %c0_171 = arith.constant 0 : index
    %325 = vector.load %arg2[%c6_170, %c0_171] : memref<25x288xf32, #tpu.memory_space<vmem>>, vector<1x288xf32>
    %326 = vector.shape_cast %325 : vector<1x288xf32> to vector<288xf32>
    %327 = vector.shape_cast %326 : vector<288xf32> to vector<1x288xf32>
    %328 = vector.broadcast %327 : vector<1x288xf32> to vector<7x288xf32>
    %329 = arith.mulf %324, %328 : vector<7x288xf32>
    %330 = arith.addf %320, %329 : vector<7x288xf32>
    %c1_i32_172 = arith.constant 1 : i32
    %331 = arith.addi %259, %c1_i32_172 : i32
    %c2_173 = arith.constant 2 : index
    %332 = arith.index_cast %331 : i32 to index
    %c0_174 = arith.constant 0 : index
    %c0_175 = arith.constant 0 : index
    %333 = vector.load %arg1[%c2_173, %332, %c0_174, %c0_175] : memref<5x19x7x288xf32, #tpu.memory_space<vmem>>, vector<1x1x7x288xf32>
    %334 = vector.shape_cast %333 : vector<1x1x7x288xf32> to vector<7x288xf32>
    %c7_176 = arith.constant 7 : index
    %c0_177 = arith.constant 0 : index
    %335 = vector.load %arg2[%c7_176, %c0_177] : memref<25x288xf32, #tpu.memory_space<vmem>>, vector<1x288xf32>
    %336 = vector.shape_cast %335 : vector<1x288xf32> to vector<288xf32>
    %337 = vector.shape_cast %336 : vector<288xf32> to vector<1x288xf32>
    %338 = vector.broadcast %337 : vector<1x288xf32> to vector<7x288xf32>
    %339 = arith.mulf %334, %338 : vector<7x288xf32>
    %340 = arith.addf %330, %339 : vector<7x288xf32>
    %c1_i32_178 = arith.constant 1 : i32
    %341 = arith.addi %259, %c1_i32_178 : i32
    %c3_179 = arith.constant 3 : index
    %342 = arith.index_cast %341 : i32 to index
    %c0_180 = arith.constant 0 : index
    %c0_181 = arith.constant 0 : index
    %343 = vector.load %arg1[%c3_179, %342, %c0_180, %c0_181] : memref<5x19x7x288xf32, #tpu.memory_space<vmem>>, vector<1x1x7x288xf32>
    %344 = vector.shape_cast %343 : vector<1x1x7x288xf32> to vector<7x288xf32>
    %c8_182 = arith.constant 8 : index
    %c0_183 = arith.constant 0 : index
    %345 = vector.load %arg2[%c8_182, %c0_183] : memref<25x288xf32, #tpu.memory_space<vmem>>, vector<1x288xf32>
    %346 = vector.shape_cast %345 : vector<1x288xf32> to vector<288xf32>
    %347 = vector.shape_cast %346 : vector<288xf32> to vector<1x288xf32>
    %348 = vector.broadcast %347 : vector<1x288xf32> to vector<7x288xf32>
    %349 = arith.mulf %344, %348 : vector<7x288xf32>
    %350 = arith.addf %340, %349 : vector<7x288xf32>
    %c1_i32_184 = arith.constant 1 : i32
    %351 = arith.addi %259, %c1_i32_184 : i32
    %c4_185 = arith.constant 4 : index
    %352 = arith.index_cast %351 : i32 to index
    %c0_186 = arith.constant 0 : index
    %c0_187 = arith.constant 0 : index
    %353 = vector.load %arg1[%c4_185, %352, %c0_186, %c0_187] : memref<5x19x7x288xf32, #tpu.memory_space<vmem>>, vector<1x1x7x288xf32>
    %354 = vector.shape_cast %353 : vector<1x1x7x288xf32> to vector<7x288xf32>
    %c9_188 = arith.constant 9 : index
    %c0_189 = arith.constant 0 : index
    %355 = vector.load %arg2[%c9_188, %c0_189] : memref<25x288xf32, #tpu.memory_space<vmem>>, vector<1x288xf32>
    %356 = vector.shape_cast %355 : vector<1x288xf32> to vector<288xf32>
    %357 = vector.shape_cast %356 : vector<288xf32> to vector<1x288xf32>
    %358 = vector.broadcast %357 : vector<1x288xf32> to vector<7x288xf32>
    %359 = arith.mulf %354, %358 : vector<7x288xf32>
    %360 = arith.addf %350, %359 : vector<7x288xf32>
    %c2_i32_190 = arith.constant 2 : i32
    %361 = arith.addi %259, %c2_i32_190 : i32
    %c0_191 = arith.constant 0 : index
    %362 = arith.index_cast %361 : i32 to index
    %c0_192 = arith.constant 0 : index
    %c0_193 = arith.constant 0 : index
    %363 = vector.load %arg1[%c0_191, %362, %c0_192, %c0_193] : memref<5x19x7x288xf32, #tpu.memory_space<vmem>>, vector<1x1x7x288xf32>
    %364 = vector.shape_cast %363 : vector<1x1x7x288xf32> to vector<7x288xf32>
    %c10_194 = arith.constant 10 : index
    %c0_195 = arith.constant 0 : index
    %365 = vector.load %arg2[%c10_194, %c0_195] : memref<25x288xf32, #tpu.memory_space<vmem>>, vector<1x288xf32>
    %366 = vector.shape_cast %365 : vector<1x288xf32> to vector<288xf32>
    %367 = vector.shape_cast %366 : vector<288xf32> to vector<1x288xf32>
    %368 = vector.broadcast %367 : vector<1x288xf32> to vector<7x288xf32>
    %369 = arith.mulf %364, %368 : vector<7x288xf32>
    %370 = arith.addf %360, %369 : vector<7x288xf32>
    %c2_i32_196 = arith.constant 2 : i32
    %371 = arith.addi %259, %c2_i32_196 : i32
    %c1_197 = arith.constant 1 : index
    %372 = arith.index_cast %371 : i32 to index
    %c0_198 = arith.constant 0 : index
    %c0_199 = arith.constant 0 : index
    %373 = vector.load %arg1[%c1_197, %372, %c0_198, %c0_199] : memref<5x19x7x288xf32, #tpu.memory_space<vmem>>, vector<1x1x7x288xf32>
    %374 = vector.shape_cast %373 : vector<1x1x7x288xf32> to vector<7x288xf32>
    %c11_200 = arith.constant 11 : index
    %c0_201 = arith.constant 0 : index
    %375 = vector.load %arg2[%c11_200, %c0_201] : memref<25x288xf32, #tpu.memory_space<vmem>>, vector<1x288xf32>
    %376 = vector.shape_cast %375 : vector<1x288xf32> to vector<288xf32>
    %377 = vector.shape_cast %376 : vector<288xf32> to vector<1x288xf32>
    %378 = vector.broadcast %377 : vector<1x288xf32> to vector<7x288xf32>
    %379 = arith.mulf %374, %378 : vector<7x288xf32>
    %380 = arith.addf %370, %379 : vector<7x288xf32>
    %c2_i32_202 = arith.constant 2 : i32
    %381 = arith.addi %259, %c2_i32_202 : i32
    %c2_203 = arith.constant 2 : index
    %382 = arith.index_cast %381 : i32 to index
    %c0_204 = arith.constant 0 : index
    %c0_205 = arith.constant 0 : index
    %383 = vector.load %arg1[%c2_203, %382, %c0_204, %c0_205] : memref<5x19x7x288xf32, #tpu.memory_space<vmem>>, vector<1x1x7x288xf32>
    %384 = vector.shape_cast %383 : vector<1x1x7x288xf32> to vector<7x288xf32>
    %c12_206 = arith.constant 12 : index
    %c0_207 = arith.constant 0 : index
    %385 = vector.load %arg2[%c12_206, %c0_207] : memref<25x288xf32, #tpu.memory_space<vmem>>, vector<1x288xf32>
    %386 = vector.shape_cast %385 : vector<1x288xf32> to vector<288xf32>
    %387 = vector.shape_cast %386 : vector<288xf32> to vector<1x288xf32>
    %388 = vector.broadcast %387 : vector<1x288xf32> to vector<7x288xf32>
    %389 = arith.mulf %384, %388 : vector<7x288xf32>
    %390 = arith.addf %380, %389 : vector<7x288xf32>
    %c2_i32_208 = arith.constant 2 : i32
    %391 = arith.addi %259, %c2_i32_208 : i32
    %c3_209 = arith.constant 3 : index
    %392 = arith.index_cast %391 : i32 to index
    %c0_210 = arith.constant 0 : index
    %c0_211 = arith.constant 0 : index
    %393 = vector.load %arg1[%c3_209, %392, %c0_210, %c0_211] : memref<5x19x7x288xf32, #tpu.memory_space<vmem>>, vector<1x1x7x288xf32>
    %394 = vector.shape_cast %393 : vector<1x1x7x288xf32> to vector<7x288xf32>
    %c13_212 = arith.constant 13 : index
    %c0_213 = arith.constant 0 : index
    %395 = vector.load %arg2[%c13_212, %c0_213] : memref<25x288xf32, #tpu.memory_space<vmem>>, vector<1x288xf32>
    %396 = vector.shape_cast %395 : vector<1x288xf32> to vector<288xf32>
    %397 = vector.shape_cast %396 : vector<288xf32> to vector<1x288xf32>
    %398 = vector.broadcast %397 : vector<1x288xf32> to vector<7x288xf32>
    %399 = arith.mulf %394, %398 : vector<7x288xf32>
    %400 = arith.addf %390, %399 : vector<7x288xf32>
    %c2_i32_214 = arith.constant 2 : i32
    %401 = arith.addi %259, %c2_i32_214 : i32
    %c4_215 = arith.constant 4 : index
    %402 = arith.index_cast %401 : i32 to index
    %c0_216 = arith.constant 0 : index
    %c0_217 = arith.constant 0 : index
    %403 = vector.load %arg1[%c4_215, %402, %c0_216, %c0_217] : memref<5x19x7x288xf32, #tpu.memory_space<vmem>>, vector<1x1x7x288xf32>
    %404 = vector.shape_cast %403 : vector<1x1x7x288xf32> to vector<7x288xf32>
    %c14_218 = arith.constant 14 : index
    %c0_219 = arith.constant 0 : index
    %405 = vector.load %arg2[%c14_218, %c0_219] : memref<25x288xf32, #tpu.memory_space<vmem>>, vector<1x288xf32>
    %406 = vector.shape_cast %405 : vector<1x288xf32> to vector<288xf32>
    %407 = vector.shape_cast %406 : vector<288xf32> to vector<1x288xf32>
    %408 = vector.broadcast %407 : vector<1x288xf32> to vector<7x288xf32>
    %409 = arith.mulf %404, %408 : vector<7x288xf32>
    %410 = arith.addf %400, %409 : vector<7x288xf32>
    %c3_i32_220 = arith.constant 3 : i32
    %411 = arith.addi %259, %c3_i32_220 : i32
    %c0_221 = arith.constant 0 : index
    %412 = arith.index_cast %411 : i32 to index
    %c0_222 = arith.constant 0 : index
    %c0_223 = arith.constant 0 : index
    %413 = vector.load %arg1[%c0_221, %412, %c0_222, %c0_223] : memref<5x19x7x288xf32, #tpu.memory_space<vmem>>, vector<1x1x7x288xf32>
    %414 = vector.shape_cast %413 : vector<1x1x7x288xf32> to vector<7x288xf32>
    %c15_224 = arith.constant 15 : index
    %c0_225 = arith.constant 0 : index
    %415 = vector.load %arg2[%c15_224, %c0_225] : memref<25x288xf32, #tpu.memory_space<vmem>>, vector<1x288xf32>
    %416 = vector.shape_cast %415 : vector<1x288xf32> to vector<288xf32>
    %417 = vector.shape_cast %416 : vector<288xf32> to vector<1x288xf32>
    %418 = vector.broadcast %417 : vector<1x288xf32> to vector<7x288xf32>
    %419 = arith.mulf %414, %418 : vector<7x288xf32>
    %420 = arith.addf %410, %419 : vector<7x288xf32>
    %c3_i32_226 = arith.constant 3 : i32
    %421 = arith.addi %259, %c3_i32_226 : i32
    %c1_227 = arith.constant 1 : index
    %422 = arith.index_cast %421 : i32 to index
    %c0_228 = arith.constant 0 : index
    %c0_229 = arith.constant 0 : index
    %423 = vector.load %arg1[%c1_227, %422, %c0_228, %c0_229] : memref<5x19x7x288xf32, #tpu.memory_space<vmem>>, vector<1x1x7x288xf32>
    %424 = vector.shape_cast %423 : vector<1x1x7x288xf32> to vector<7x288xf32>
    %c16_230 = arith.constant 16 : index
    %c0_231 = arith.constant 0 : index
    %425 = vector.load %arg2[%c16_230, %c0_231] : memref<25x288xf32, #tpu.memory_space<vmem>>, vector<1x288xf32>
    %426 = vector.shape_cast %425 : vector<1x288xf32> to vector<288xf32>
    %427 = vector.shape_cast %426 : vector<288xf32> to vector<1x288xf32>
    %428 = vector.broadcast %427 : vector<1x288xf32> to vector<7x288xf32>
    %429 = arith.mulf %424, %428 : vector<7x288xf32>
    %430 = arith.addf %420, %429 : vector<7x288xf32>
    %c3_i32_232 = arith.constant 3 : i32
    %431 = arith.addi %259, %c3_i32_232 : i32
    %c2_233 = arith.constant 2 : index
    %432 = arith.index_cast %431 : i32 to index
    %c0_234 = arith.constant 0 : index
    %c0_235 = arith.constant 0 : index
    %433 = vector.load %arg1[%c2_233, %432, %c0_234, %c0_235] : memref<5x19x7x288xf32, #tpu.memory_space<vmem>>, vector<1x1x7x288xf32>
    %434 = vector.shape_cast %433 : vector<1x1x7x288xf32> to vector<7x288xf32>
    %c17_236 = arith.constant 17 : index
    %c0_237 = arith.constant 0 : index
    %435 = vector.load %arg2[%c17_236, %c0_237] : memref<25x288xf32, #tpu.memory_space<vmem>>, vector<1x288xf32>
    %436 = vector.shape_cast %435 : vector<1x288xf32> to vector<288xf32>
    %437 = vector.shape_cast %436 : vector<288xf32> to vector<1x288xf32>
    %438 = vector.broadcast %437 : vector<1x288xf32> to vector<7x288xf32>
    %439 = arith.mulf %434, %438 : vector<7x288xf32>
    %440 = arith.addf %430, %439 : vector<7x288xf32>
    %c3_i32_238 = arith.constant 3 : i32
    %441 = arith.addi %259, %c3_i32_238 : i32
    %c3_239 = arith.constant 3 : index
    %442 = arith.index_cast %441 : i32 to index
    %c0_240 = arith.constant 0 : index
    %c0_241 = arith.constant 0 : index
    %443 = vector.load %arg1[%c3_239, %442, %c0_240, %c0_241] : memref<5x19x7x288xf32, #tpu.memory_space<vmem>>, vector<1x1x7x288xf32>
    %444 = vector.shape_cast %443 : vector<1x1x7x288xf32> to vector<7x288xf32>
    %c18_242 = arith.constant 18 : index
    %c0_243 = arith.constant 0 : index
    %445 = vector.load %arg2[%c18_242, %c0_243] : memref<25x288xf32, #tpu.memory_space<vmem>>, vector<1x288xf32>
    %446 = vector.shape_cast %445 : vector<1x288xf32> to vector<288xf32>
    %447 = vector.shape_cast %446 : vector<288xf32> to vector<1x288xf32>
    %448 = vector.broadcast %447 : vector<1x288xf32> to vector<7x288xf32>
    %449 = arith.mulf %444, %448 : vector<7x288xf32>
    %450 = arith.addf %440, %449 : vector<7x288xf32>
    %c3_i32_244 = arith.constant 3 : i32
    %451 = arith.addi %259, %c3_i32_244 : i32
    %c4_245 = arith.constant 4 : index
    %452 = arith.index_cast %451 : i32 to index
    %c0_246 = arith.constant 0 : index
    %c0_247 = arith.constant 0 : index
    %453 = vector.load %arg1[%c4_245, %452, %c0_246, %c0_247] : memref<5x19x7x288xf32, #tpu.memory_space<vmem>>, vector<1x1x7x288xf32>
    %454 = vector.shape_cast %453 : vector<1x1x7x288xf32> to vector<7x288xf32>
    %c19_248 = arith.constant 19 : index
    %c0_249 = arith.constant 0 : index
    %455 = vector.load %arg2[%c19_248, %c0_249] : memref<25x288xf32, #tpu.memory_space<vmem>>, vector<1x288xf32>
    %456 = vector.shape_cast %455 : vector<1x288xf32> to vector<288xf32>
    %457 = vector.shape_cast %456 : vector<288xf32> to vector<1x288xf32>
    %458 = vector.broadcast %457 : vector<1x288xf32> to vector<7x288xf32>
    %459 = arith.mulf %454, %458 : vector<7x288xf32>
    %460 = arith.addf %450, %459 : vector<7x288xf32>
    %c4_i32_250 = arith.constant 4 : i32
    %461 = arith.addi %259, %c4_i32_250 : i32
    %c0_251 = arith.constant 0 : index
    %462 = arith.index_cast %461 : i32 to index
    %c0_252 = arith.constant 0 : index
    %c0_253 = arith.constant 0 : index
    %463 = vector.load %arg1[%c0_251, %462, %c0_252, %c0_253] : memref<5x19x7x288xf32, #tpu.memory_space<vmem>>, vector<1x1x7x288xf32>
    %464 = vector.shape_cast %463 : vector<1x1x7x288xf32> to vector<7x288xf32>
    %c20_254 = arith.constant 20 : index
    %c0_255 = arith.constant 0 : index
    %465 = vector.load %arg2[%c20_254, %c0_255] : memref<25x288xf32, #tpu.memory_space<vmem>>, vector<1x288xf32>
    %466 = vector.shape_cast %465 : vector<1x288xf32> to vector<288xf32>
    %467 = vector.shape_cast %466 : vector<288xf32> to vector<1x288xf32>
    %468 = vector.broadcast %467 : vector<1x288xf32> to vector<7x288xf32>
    %469 = arith.mulf %464, %468 : vector<7x288xf32>
    %470 = arith.addf %460, %469 : vector<7x288xf32>
    %c4_i32_256 = arith.constant 4 : i32
    %471 = arith.addi %259, %c4_i32_256 : i32
    %c1_257 = arith.constant 1 : index
    %472 = arith.index_cast %471 : i32 to index
    %c0_258 = arith.constant 0 : index
    %c0_259 = arith.constant 0 : index
    %473 = vector.load %arg1[%c1_257, %472, %c0_258, %c0_259] : memref<5x19x7x288xf32, #tpu.memory_space<vmem>>, vector<1x1x7x288xf32>
    %474 = vector.shape_cast %473 : vector<1x1x7x288xf32> to vector<7x288xf32>
    %c21_260 = arith.constant 21 : index
    %c0_261 = arith.constant 0 : index
    %475 = vector.load %arg2[%c21_260, %c0_261] : memref<25x288xf32, #tpu.memory_space<vmem>>, vector<1x288xf32>
    %476 = vector.shape_cast %475 : vector<1x288xf32> to vector<288xf32>
    %477 = vector.shape_cast %476 : vector<288xf32> to vector<1x288xf32>
    %478 = vector.broadcast %477 : vector<1x288xf32> to vector<7x288xf32>
    %479 = arith.mulf %474, %478 : vector<7x288xf32>
    %480 = arith.addf %470, %479 : vector<7x288xf32>
    %c4_i32_262 = arith.constant 4 : i32
    %481 = arith.addi %259, %c4_i32_262 : i32
    %c2_263 = arith.constant 2 : index
    %482 = arith.index_cast %481 : i32 to index
    %c0_264 = arith.constant 0 : index
    %c0_265 = arith.constant 0 : index
    %483 = vector.load %arg1[%c2_263, %482, %c0_264, %c0_265] : memref<5x19x7x288xf32, #tpu.memory_space<vmem>>, vector<1x1x7x288xf32>
    %484 = vector.shape_cast %483 : vector<1x1x7x288xf32> to vector<7x288xf32>
    %c22_266 = arith.constant 22 : index
    %c0_267 = arith.constant 0 : index
    %485 = vector.load %arg2[%c22_266, %c0_267] : memref<25x288xf32, #tpu.memory_space<vmem>>, vector<1x288xf32>
    %486 = vector.shape_cast %485 : vector<1x288xf32> to vector<288xf32>
    %487 = vector.shape_cast %486 : vector<288xf32> to vector<1x288xf32>
    %488 = vector.broadcast %487 : vector<1x288xf32> to vector<7x288xf32>
    %489 = arith.mulf %484, %488 : vector<7x288xf32>
    %490 = arith.addf %480, %489 : vector<7x288xf32>
    %c4_i32_268 = arith.constant 4 : i32
    %491 = arith.addi %259, %c4_i32_268 : i32
    %c3_269 = arith.constant 3 : index
    %492 = arith.index_cast %491 : i32 to index
    %c0_270 = arith.constant 0 : index
    %c0_271 = arith.constant 0 : index
    %493 = vector.load %arg1[%c3_269, %492, %c0_270, %c0_271] : memref<5x19x7x288xf32, #tpu.memory_space<vmem>>, vector<1x1x7x288xf32>
    %494 = vector.shape_cast %493 : vector<1x1x7x288xf32> to vector<7x288xf32>
    %c23_272 = arith.constant 23 : index
    %c0_273 = arith.constant 0 : index
    %495 = vector.load %arg2[%c23_272, %c0_273] : memref<25x288xf32, #tpu.memory_space<vmem>>, vector<1x288xf32>
    %496 = vector.shape_cast %495 : vector<1x288xf32> to vector<288xf32>
    %497 = vector.shape_cast %496 : vector<288xf32> to vector<1x288xf32>
    %498 = vector.broadcast %497 : vector<1x288xf32> to vector<7x288xf32>
    %499 = arith.mulf %494, %498 : vector<7x288xf32>
    %500 = arith.addf %490, %499 : vector<7x288xf32>
    %c4_i32_274 = arith.constant 4 : i32
    %501 = arith.addi %259, %c4_i32_274 : i32
    %c4_275 = arith.constant 4 : index
    %502 = arith.index_cast %501 : i32 to index
    %c0_276 = arith.constant 0 : index
    %c0_277 = arith.constant 0 : index
    %503 = vector.load %arg1[%c4_275, %502, %c0_276, %c0_277] : memref<5x19x7x288xf32, #tpu.memory_space<vmem>>, vector<1x1x7x288xf32>
    %504 = vector.shape_cast %503 : vector<1x1x7x288xf32> to vector<7x288xf32>
    %c24_278 = arith.constant 24 : index
    %c0_279 = arith.constant 0 : index
    %505 = vector.load %arg2[%c24_278, %c0_279] : memref<25x288xf32, #tpu.memory_space<vmem>>, vector<1x288xf32>
    %506 = vector.shape_cast %505 : vector<1x288xf32> to vector<288xf32>
    %507 = vector.shape_cast %506 : vector<288xf32> to vector<1x288xf32>
    %508 = vector.broadcast %507 : vector<1x288xf32> to vector<7x288xf32>
    %509 = arith.mulf %504, %508 : vector<7x288xf32>
    %510 = arith.addf %500, %509 : vector<7x288xf32>
    %c1_280 = arith.constant 1 : index
    %c0_281 = arith.constant 0 : index
    %c0_282 = arith.constant 0 : index
    %511 = vector.load %arg3[%c1_280, %c0_281, %c0_282] : memref<4x7x288xf32, #tpu.memory_space<vmem>>, vector<1x7x288xf32>
    %512 = vector.shape_cast %511 : vector<1x7x288xf32> to vector<7x288xf32>
    %513 = vector.shape_cast %510 : vector<7x288xf32> to vector<1x7x288xf32>
    tpu.vector_store %arg3[%c1_280, %c0_281, %c0_282], %513 {strides = array<i32>} : memref<4x7x288xf32, #tpu.memory_space<vmem>>, vector<1x7x288xf32>,
    %c4_i32_283 = arith.constant 4 : i32
    %514 = arith.muli %arg0, %c4_i32_283 : i32
    %c2_i32_284 = arith.constant 2 : i32
    %515 = arith.addi %514, %c2_i32_284 : i32
    %c2_i32_285 = arith.constant 2 : i32
    %516 = arith.muli %c2_i32_285, %515 : i32
    %cst_286 = arith.constant 0.000000e+00 : f32
    %517 = vector.broadcast %cst_286 : f32 to vector<7x288xf32>
    %c0_i32_287 = arith.constant 0 : i32
    %518 = arith.addi %516, %c0_i32_287 : i32
    %c0_288 = arith.constant 0 : index
    %519 = arith.index_cast %518 : i32 to index
    %c0_289 = arith.constant 0 : index
    %c0_290 = arith.constant 0 : index
    %520 = vector.load %arg1[%c0_288, %519, %c0_289, %c0_290] : memref<5x19x7x288xf32, #tpu.memory_space<vmem>>, vector<1x1x7x288xf32>
    %521 = vector.shape_cast %520 : vector<1x1x7x288xf32> to vector<7x288xf32>
    %c0_291 = arith.constant 0 : index
    %c0_292 = arith.constant 0 : index
    %522 = vector.load %arg2[%c0_291, %c0_292] : memref<25x288xf32, #tpu.memory_space<vmem>>, vector<1x288xf32>
    %523 = vector.shape_cast %522 : vector<1x288xf32> to vector<288xf32>
    %524 = vector.shape_cast %523 : vector<288xf32> to vector<1x288xf32>
    %525 = vector.broadcast %524 : vector<1x288xf32> to vector<7x288xf32>
    %526 = arith.mulf %521, %525 : vector<7x288xf32>
    %527 = arith.addf %517, %526 : vector<7x288xf32>
    %c0_i32_293 = arith.constant 0 : i32
    %528 = arith.addi %516, %c0_i32_293 : i32
    %c1_294 = arith.constant 1 : index
    %529 = arith.index_cast %528 : i32 to index
    %c0_295 = arith.constant 0 : index
    %c0_296 = arith.constant 0 : index
    %530 = vector.load %arg1[%c1_294, %529, %c0_295, %c0_296] : memref<5x19x7x288xf32, #tpu.memory_space<vmem>>, vector<1x1x7x288xf32>
    %531 = vector.shape_cast %530 : vector<1x1x7x288xf32> to vector<7x288xf32>
    %c1_297 = arith.constant 1 : index
    %c0_298 = arith.constant 0 : index
    %532 = vector.load %arg2[%c1_297, %c0_298] : memref<25x288xf32, #tpu.memory_space<vmem>>, vector<1x288xf32>
    %533 = vector.shape_cast %532 : vector<1x288xf32> to vector<288xf32>
    %534 = vector.shape_cast %533 : vector<288xf32> to vector<1x288xf32>
    %535 = vector.broadcast %534 : vector<1x288xf32> to vector<7x288xf32>
    %536 = arith.mulf %531, %535 : vector<7x288xf32>
    %537 = arith.addf %527, %536 : vector<7x288xf32>
    %c0_i32_299 = arith.constant 0 : i32
    %538 = arith.addi %516, %c0_i32_299 : i32
    %c2_300 = arith.constant 2 : index
    %539 = arith.index_cast %538 : i32 to index
    %c0_301 = arith.constant 0 : index
    %c0_302 = arith.constant 0 : index
    %540 = vector.load %arg1[%c2_300, %539, %c0_301, %c0_302] : memref<5x19x7x288xf32, #tpu.memory_space<vmem>>, vector<1x1x7x288xf32>
    %541 = vector.shape_cast %540 : vector<1x1x7x288xf32> to vector<7x288xf32>
    %c2_303 = arith.constant 2 : index
    %c0_304 = arith.constant 0 : index
    %542 = vector.load %arg2[%c2_303, %c0_304] : memref<25x288xf32, #tpu.memory_space<vmem>>, vector<1x288xf32>
    %543 = vector.shape_cast %542 : vector<1x288xf32> to vector<288xf32>
    %544 = vector.shape_cast %543 : vector<288xf32> to vector<1x288xf32>
    %545 = vector.broadcast %544 : vector<1x288xf32> to vector<7x288xf32>
    %546 = arith.mulf %541, %545 : vector<7x288xf32>
    %547 = arith.addf %537, %546 : vector<7x288xf32>
    %c0_i32_305 = arith.constant 0 : i32
    %548 = arith.addi %516, %c0_i32_305 : i32
    %c3_306 = arith.constant 3 : index
    %549 = arith.index_cast %548 : i32 to index
    %c0_307 = arith.constant 0 : index
    %c0_308 = arith.constant 0 : index
    %550 = vector.load %arg1[%c3_306, %549, %c0_307, %c0_308] : memref<5x19x7x288xf32, #tpu.memory_space<vmem>>, vector<1x1x7x288xf32>
    %551 = vector.shape_cast %550 : vector<1x1x7x288xf32> to vector<7x288xf32>
    %c3_309 = arith.constant 3 : index
    %c0_310 = arith.constant 0 : index
    %552 = vector.load %arg2[%c3_309, %c0_310] : memref<25x288xf32, #tpu.memory_space<vmem>>, vector<1x288xf32>
    %553 = vector.shape_cast %552 : vector<1x288xf32> to vector<288xf32>
    %554 = vector.shape_cast %553 : vector<288xf32> to vector<1x288xf32>
    %555 = vector.broadcast %554 : vector<1x288xf32> to vector<7x288xf32>
    %556 = arith.mulf %551, %555 : vector<7x288xf32>
    %557 = arith.addf %547, %556 : vector<7x288xf32>
    %c0_i32_311 = arith.constant 0 : i32
    %558 = arith.addi %516, %c0_i32_311 : i32
    %c4_312 = arith.constant 4 : index
    %559 = arith.index_cast %558 : i32 to index
    %c0_313 = arith.constant 0 : index
    %c0_314 = arith.constant 0 : index
    %560 = vector.load %arg1[%c4_312, %559, %c0_313, %c0_314] : memref<5x19x7x288xf32, #tpu.memory_space<vmem>>, vector<1x1x7x288xf32>
    %561 = vector.shape_cast %560 : vector<1x1x7x288xf32> to vector<7x288xf32>
    %c4_315 = arith.constant 4 : index
    %c0_316 = arith.constant 0 : index
    %562 = vector.load %arg2[%c4_315, %c0_316] : memref<25x288xf32, #tpu.memory_space<vmem>>, vector<1x288xf32>
    %563 = vector.shape_cast %562 : vector<1x288xf32> to vector<288xf32>
    %564 = vector.shape_cast %563 : vector<288xf32> to vector<1x288xf32>
    %565 = vector.broadcast %564 : vector<1x288xf32> to vector<7x288xf32>
    %566 = arith.mulf %561, %565 : vector<7x288xf32>
    %567 = arith.addf %557, %566 : vector<7x288xf32>
    %c1_i32_317 = arith.constant 1 : i32
    %568 = arith.addi %516, %c1_i32_317 : i32
    %c0_318 = arith.constant 0 : index
    %569 = arith.index_cast %568 : i32 to index
    %c0_319 = arith.constant 0 : index
    %c0_320 = arith.constant 0 : index
    %570 = vector.load %arg1[%c0_318, %569, %c0_319, %c0_320] : memref<5x19x7x288xf32, #tpu.memory_space<vmem>>, vector<1x1x7x288xf32>
    %571 = vector.shape_cast %570 : vector<1x1x7x288xf32> to vector<7x288xf32>
    %c5_321 = arith.constant 5 : index
    %c0_322 = arith.constant 0 : index
    %572 = vector.load %arg2[%c5_321, %c0_322] : memref<25x288xf32, #tpu.memory_space<vmem>>, vector<1x288xf32>
    %573 = vector.shape_cast %572 : vector<1x288xf32> to vector<288xf32>
    %574 = vector.shape_cast %573 : vector<288xf32> to vector<1x288xf32>
    %575 = vector.broadcast %574 : vector<1x288xf32> to vector<7x288xf32>
    %576 = arith.mulf %571, %575 : vector<7x288xf32>
    %577 = arith.addf %567, %576 : vector<7x288xf32>
    %c1_i32_323 = arith.constant 1 : i32
    %578 = arith.addi %516, %c1_i32_323 : i32
    %c1_324 = arith.constant 1 : index
    %579 = arith.index_cast %578 : i32 to index
    %c0_325 = arith.constant 0 : index
    %c0_326 = arith.constant 0 : index
    %580 = vector.load %arg1[%c1_324, %579, %c0_325, %c0_326] : memref<5x19x7x288xf32, #tpu.memory_space<vmem>>, vector<1x1x7x288xf32>
    %581 = vector.shape_cast %580 : vector<1x1x7x288xf32> to vector<7x288xf32>
    %c6_327 = arith.constant 6 : index
    %c0_328 = arith.constant 0 : index
    %582 = vector.load %arg2[%c6_327, %c0_328] : memref<25x288xf32, #tpu.memory_space<vmem>>, vector<1x288xf32>
    %583 = vector.shape_cast %582 : vector<1x288xf32> to vector<288xf32>
    %584 = vector.shape_cast %583 : vector<288xf32> to vector<1x288xf32>
    %585 = vector.broadcast %584 : vector<1x288xf32> to vector<7x288xf32>
    %586 = arith.mulf %581, %585 : vector<7x288xf32>
    %587 = arith.addf %577, %586 : vector<7x288xf32>
    %c1_i32_329 = arith.constant 1 : i32
    %588 = arith.addi %516, %c1_i32_329 : i32
    %c2_330 = arith.constant 2 : index
    %589 = arith.index_cast %588 : i32 to index
    %c0_331 = arith.constant 0 : index
    %c0_332 = arith.constant 0 : index
    %590 = vector.load %arg1[%c2_330, %589, %c0_331, %c0_332] : memref<5x19x7x288xf32, #tpu.memory_space<vmem>>, vector<1x1x7x288xf32>
    %591 = vector.shape_cast %590 : vector<1x1x7x288xf32> to vector<7x288xf32>
    %c7_333 = arith.constant 7 : index
    %c0_334 = arith.constant 0 : index
    %592 = vector.load %arg2[%c7_333, %c0_334] : memref<25x288xf32, #tpu.memory_space<vmem>>, vector<1x288xf32>
    %593 = vector.shape_cast %592 : vector<1x288xf32> to vector<288xf32>
    %594 = vector.shape_cast %593 : vector<288xf32> to vector<1x288xf32>
    %595 = vector.broadcast %594 : vector<1x288xf32> to vector<7x288xf32>
    %596 = arith.mulf %591, %595 : vector<7x288xf32>
    %597 = arith.addf %587, %596 : vector<7x288xf32>
    %c1_i32_335 = arith.constant 1 : i32
    %598 = arith.addi %516, %c1_i32_335 : i32
    %c3_336 = arith.constant 3 : index
    %599 = arith.index_cast %598 : i32 to index
    %c0_337 = arith.constant 0 : index
    %c0_338 = arith.constant 0 : index
    %600 = vector.load %arg1[%c3_336, %599, %c0_337, %c0_338] : memref<5x19x7x288xf32, #tpu.memory_space<vmem>>, vector<1x1x7x288xf32>
    %601 = vector.shape_cast %600 : vector<1x1x7x288xf32> to vector<7x288xf32>
    %c8_339 = arith.constant 8 : index
    %c0_340 = arith.constant 0 : index
    %602 = vector.load %arg2[%c8_339, %c0_340] : memref<25x288xf32, #tpu.memory_space<vmem>>, vector<1x288xf32>
    %603 = vector.shape_cast %602 : vector<1x288xf32> to vector<288xf32>
    %604 = vector.shape_cast %603 : vector<288xf32> to vector<1x288xf32>
    %605 = vector.broadcast %604 : vector<1x288xf32> to vector<7x288xf32>
    %606 = arith.mulf %601, %605 : vector<7x288xf32>
    %607 = arith.addf %597, %606 : vector<7x288xf32>
    %c1_i32_341 = arith.constant 1 : i32
    %608 = arith.addi %516, %c1_i32_341 : i32
    %c4_342 = arith.constant 4 : index
    %609 = arith.index_cast %608 : i32 to index
    %c0_343 = arith.constant 0 : index
    %c0_344 = arith.constant 0 : index
    %610 = vector.load %arg1[%c4_342, %609, %c0_343, %c0_344] : memref<5x19x7x288xf32, #tpu.memory_space<vmem>>, vector<1x1x7x288xf32>
    %611 = vector.shape_cast %610 : vector<1x1x7x288xf32> to vector<7x288xf32>
    %c9_345 = arith.constant 9 : index
    %c0_346 = arith.constant 0 : index
    %612 = vector.load %arg2[%c9_345, %c0_346] : memref<25x288xf32, #tpu.memory_space<vmem>>, vector<1x288xf32>
    %613 = vector.shape_cast %612 : vector<1x288xf32> to vector<288xf32>
    %614 = vector.shape_cast %613 : vector<288xf32> to vector<1x288xf32>
    %615 = vector.broadcast %614 : vector<1x288xf32> to vector<7x288xf32>
    %616 = arith.mulf %611, %615 : vector<7x288xf32>
    %617 = arith.addf %607, %616 : vector<7x288xf32>
    %c2_i32_347 = arith.constant 2 : i32
    %618 = arith.addi %516, %c2_i32_347 : i32
    %c0_348 = arith.constant 0 : index
    %619 = arith.index_cast %618 : i32 to index
    %c0_349 = arith.constant 0 : index
    %c0_350 = arith.constant 0 : index
    %620 = vector.load %arg1[%c0_348, %619, %c0_349, %c0_350] : memref<5x19x7x288xf32, #tpu.memory_space<vmem>>, vector<1x1x7x288xf32>
    %621 = vector.shape_cast %620 : vector<1x1x7x288xf32> to vector<7x288xf32>
    %c10_351 = arith.constant 10 : index
    %c0_352 = arith.constant 0 : index
    %622 = vector.load %arg2[%c10_351, %c0_352] : memref<25x288xf32, #tpu.memory_space<vmem>>, vector<1x288xf32>
    %623 = vector.shape_cast %622 : vector<1x288xf32> to vector<288xf32>
    %624 = vector.shape_cast %623 : vector<288xf32> to vector<1x288xf32>
    %625 = vector.broadcast %624 : vector<1x288xf32> to vector<7x288xf32>
    %626 = arith.mulf %621, %625 : vector<7x288xf32>
    %627 = arith.addf %617, %626 : vector<7x288xf32>
    %c2_i32_353 = arith.constant 2 : i32
    %628 = arith.addi %516, %c2_i32_353 : i32
    %c1_354 = arith.constant 1 : index
    %629 = arith.index_cast %628 : i32 to index
    %c0_355 = arith.constant 0 : index
    %c0_356 = arith.constant 0 : index
    %630 = vector.load %arg1[%c1_354, %629, %c0_355, %c0_356] : memref<5x19x7x288xf32, #tpu.memory_space<vmem>>, vector<1x1x7x288xf32>
    %631 = vector.shape_cast %630 : vector<1x1x7x288xf32> to vector<7x288xf32>
    %c11_357 = arith.constant 11 : index
    %c0_358 = arith.constant 0 : index
    %632 = vector.load %arg2[%c11_357, %c0_358] : memref<25x288xf32, #tpu.memory_space<vmem>>, vector<1x288xf32>
    %633 = vector.shape_cast %632 : vector<1x288xf32> to vector<288xf32>
    %634 = vector.shape_cast %633 : vector<288xf32> to vector<1x288xf32>
    %635 = vector.broadcast %634 : vector<1x288xf32> to vector<7x288xf32>
    %636 = arith.mulf %631, %635 : vector<7x288xf32>
    %637 = arith.addf %627, %636 : vector<7x288xf32>
    %c2_i32_359 = arith.constant 2 : i32
    %638 = arith.addi %516, %c2_i32_359 : i32
    %c2_360 = arith.constant 2 : index
    %639 = arith.index_cast %638 : i32 to index
    %c0_361 = arith.constant 0 : index
    %c0_362 = arith.constant 0 : index
    %640 = vector.load %arg1[%c2_360, %639, %c0_361, %c0_362] : memref<5x19x7x288xf32, #tpu.memory_space<vmem>>, vector<1x1x7x288xf32>
    %641 = vector.shape_cast %640 : vector<1x1x7x288xf32> to vector<7x288xf32>
    %c12_363 = arith.constant 12 : index
    %c0_364 = arith.constant 0 : index
    %642 = vector.load %arg2[%c12_363, %c0_364] : memref<25x288xf32, #tpu.memory_space<vmem>>, vector<1x288xf32>
    %643 = vector.shape_cast %642 : vector<1x288xf32> to vector<288xf32>
    %644 = vector.shape_cast %643 : vector<288xf32> to vector<1x288xf32>
    %645 = vector.broadcast %644 : vector<1x288xf32> to vector<7x288xf32>
    %646 = arith.mulf %641, %645 : vector<7x288xf32>
    %647 = arith.addf %637, %646 : vector<7x288xf32>
    %c2_i32_365 = arith.constant 2 : i32
    %648 = arith.addi %516, %c2_i32_365 : i32
    %c3_366 = arith.constant 3 : index
    %649 = arith.index_cast %648 : i32 to index
    %c0_367 = arith.constant 0 : index
    %c0_368 = arith.constant 0 : index
    %650 = vector.load %arg1[%c3_366, %649, %c0_367, %c0_368] : memref<5x19x7x288xf32, #tpu.memory_space<vmem>>, vector<1x1x7x288xf32>
    %651 = vector.shape_cast %650 : vector<1x1x7x288xf32> to vector<7x288xf32>
    %c13_369 = arith.constant 13 : index
    %c0_370 = arith.constant 0 : index
    %652 = vector.load %arg2[%c13_369, %c0_370] : memref<25x288xf32, #tpu.memory_space<vmem>>, vector<1x288xf32>
    %653 = vector.shape_cast %652 : vector<1x288xf32> to vector<288xf32>
    %654 = vector.shape_cast %653 : vector<288xf32> to vector<1x288xf32>
    %655 = vector.broadcast %654 : vector<1x288xf32> to vector<7x288xf32>
    %656 = arith.mulf %651, %655 : vector<7x288xf32>
    %657 = arith.addf %647, %656 : vector<7x288xf32>
    %c2_i32_371 = arith.constant 2 : i32
    %658 = arith.addi %516, %c2_i32_371 : i32
    %c4_372 = arith.constant 4 : index
    %659 = arith.index_cast %658 : i32 to index
    %c0_373 = arith.constant 0 : index
    %c0_374 = arith.constant 0 : index
    %660 = vector.load %arg1[%c4_372, %659, %c0_373, %c0_374] : memref<5x19x7x288xf32, #tpu.memory_space<vmem>>, vector<1x1x7x288xf32>
    %661 = vector.shape_cast %660 : vector<1x1x7x288xf32> to vector<7x288xf32>
    %c14_375 = arith.constant 14 : index
    %c0_376 = arith.constant 0 : index
    %662 = vector.load %arg2[%c14_375, %c0_376] : memref<25x288xf32, #tpu.memory_space<vmem>>, vector<1x288xf32>
    %663 = vector.shape_cast %662 : vector<1x288xf32> to vector<288xf32>
    %664 = vector.shape_cast %663 : vector<288xf32> to vector<1x288xf32>
    %665 = vector.broadcast %664 : vector<1x288xf32> to vector<7x288xf32>
    %666 = arith.mulf %661, %665 : vector<7x288xf32>
    %667 = arith.addf %657, %666 : vector<7x288xf32>
    %c3_i32_377 = arith.constant 3 : i32
    %668 = arith.addi %516, %c3_i32_377 : i32
    %c0_378 = arith.constant 0 : index
    %669 = arith.index_cast %668 : i32 to index
    %c0_379 = arith.constant 0 : index
    %c0_380 = arith.constant 0 : index
    %670 = vector.load %arg1[%c0_378, %669, %c0_379, %c0_380] : memref<5x19x7x288xf32, #tpu.memory_space<vmem>>, vector<1x1x7x288xf32>
    %671 = vector.shape_cast %670 : vector<1x1x7x288xf32> to vector<7x288xf32>
    %c15_381 = arith.constant 15 : index
    %c0_382 = arith.constant 0 : index
    %672 = vector.load %arg2[%c15_381, %c0_382] : memref<25x288xf32, #tpu.memory_space<vmem>>, vector<1x288xf32>
    %673 = vector.shape_cast %672 : vector<1x288xf32> to vector<288xf32>
    %674 = vector.shape_cast %673 : vector<288xf32> to vector<1x288xf32>
    %675 = vector.broadcast %674 : vector<1x288xf32> to vector<7x288xf32>
    %676 = arith.mulf %671, %675 : vector<7x288xf32>
    %677 = arith.addf %667, %676 : vector<7x288xf32>
    %c3_i32_383 = arith.constant 3 : i32
    %678 = arith.addi %516, %c3_i32_383 : i32
    %c1_384 = arith.constant 1 : index
    %679 = arith.index_cast %678 : i32 to index
    %c0_385 = arith.constant 0 : index
    %c0_386 = arith.constant 0 : index
    %680 = vector.load %arg1[%c1_384, %679, %c0_385, %c0_386] : memref<5x19x7x288xf32, #tpu.memory_space<vmem>>, vector<1x1x7x288xf32>
    %681 = vector.shape_cast %680 : vector<1x1x7x288xf32> to vector<7x288xf32>
    %c16_387 = arith.constant 16 : index
    %c0_388 = arith.constant 0 : index
    %682 = vector.load %arg2[%c16_387, %c0_388] : memref<25x288xf32, #tpu.memory_space<vmem>>, vector<1x288xf32>
    %683 = vector.shape_cast %682 : vector<1x288xf32> to vector<288xf32>
    %684 = vector.shape_cast %683 : vector<288xf32> to vector<1x288xf32>
    %685 = vector.broadcast %684 : vector<1x288xf32> to vector<7x288xf32>
    %686 = arith.mulf %681, %685 : vector<7x288xf32>
    %687 = arith.addf %677, %686 : vector<7x288xf32>
    %c3_i32_389 = arith.constant 3 : i32
    %688 = arith.addi %516, %c3_i32_389 : i32
    %c2_390 = arith.constant 2 : index
    %689 = arith.index_cast %688 : i32 to index
    %c0_391 = arith.constant 0 : index
    %c0_392 = arith.constant 0 : index
    %690 = vector.load %arg1[%c2_390, %689, %c0_391, %c0_392] : memref<5x19x7x288xf32, #tpu.memory_space<vmem>>, vector<1x1x7x288xf32>
    %691 = vector.shape_cast %690 : vector<1x1x7x288xf32> to vector<7x288xf32>
    %c17_393 = arith.constant 17 : index
    %c0_394 = arith.constant 0 : index
    %692 = vector.load %arg2[%c17_393, %c0_394] : memref<25x288xf32, #tpu.memory_space<vmem>>, vector<1x288xf32>
    %693 = vector.shape_cast %692 : vector<1x288xf32> to vector<288xf32>
    %694 = vector.shape_cast %693 : vector<288xf32> to vector<1x288xf32>
    %695 = vector.broadcast %694 : vector<1x288xf32> to vector<7x288xf32>
    %696 = arith.mulf %691, %695 : vector<7x288xf32>
    %697 = arith.addf %687, %696 : vector<7x288xf32>
    %c3_i32_395 = arith.constant 3 : i32
    %698 = arith.addi %516, %c3_i32_395 : i32
    %c3_396 = arith.constant 3 : index
    %699 = arith.index_cast %698 : i32 to index
    %c0_397 = arith.constant 0 : index
    %c0_398 = arith.constant 0 : index
    %700 = vector.load %arg1[%c3_396, %699, %c0_397, %c0_398] : memref<5x19x7x288xf32, #tpu.memory_space<vmem>>, vector<1x1x7x288xf32>
    %701 = vector.shape_cast %700 : vector<1x1x7x288xf32> to vector<7x288xf32>
    %c18_399 = arith.constant 18 : index
    %c0_400 = arith.constant 0 : index
    %702 = vector.load %arg2[%c18_399, %c0_400] : memref<25x288xf32, #tpu.memory_space<vmem>>, vector<1x288xf32>
    %703 = vector.shape_cast %702 : vector<1x288xf32> to vector<288xf32>
    %704 = vector.shape_cast %703 : vector<288xf32> to vector<1x288xf32>
    %705 = vector.broadcast %704 : vector<1x288xf32> to vector<7x288xf32>
    %706 = arith.mulf %701, %705 : vector<7x288xf32>
    %707 = arith.addf %697, %706 : vector<7x288xf32>
    %c3_i32_401 = arith.constant 3 : i32
    %708 = arith.addi %516, %c3_i32_401 : i32
    %c4_402 = arith.constant 4 : index
    %709 = arith.index_cast %708 : i32 to index
    %c0_403 = arith.constant 0 : index
    %c0_404 = arith.constant 0 : index
    %710 = vector.load %arg1[%c4_402, %709, %c0_403, %c0_404] : memref<5x19x7x288xf32, #tpu.memory_space<vmem>>, vector<1x1x7x288xf32>
    %711 = vector.shape_cast %710 : vector<1x1x7x288xf32> to vector<7x288xf32>
    %c19_405 = arith.constant 19 : index
    %c0_406 = arith.constant 0 : index
    %712 = vector.load %arg2[%c19_405, %c0_406] : memref<25x288xf32, #tpu.memory_space<vmem>>, vector<1x288xf32>
    %713 = vector.shape_cast %712 : vector<1x288xf32> to vector<288xf32>
    %714 = vector.shape_cast %713 : vector<288xf32> to vector<1x288xf32>
    %715 = vector.broadcast %714 : vector<1x288xf32> to vector<7x288xf32>
    %716 = arith.mulf %711, %715 : vector<7x288xf32>
    %717 = arith.addf %707, %716 : vector<7x288xf32>
    %c4_i32_407 = arith.constant 4 : i32
    %718 = arith.addi %516, %c4_i32_407 : i32
    %c0_408 = arith.constant 0 : index
    %719 = arith.index_cast %718 : i32 to index
    %c0_409 = arith.constant 0 : index
    %c0_410 = arith.constant 0 : index
    %720 = vector.load %arg1[%c0_408, %719, %c0_409, %c0_410] : memref<5x19x7x288xf32, #tpu.memory_space<vmem>>, vector<1x1x7x288xf32>
    %721 = vector.shape_cast %720 : vector<1x1x7x288xf32> to vector<7x288xf32>
    %c20_411 = arith.constant 20 : index
    %c0_412 = arith.constant 0 : index
    %722 = vector.load %arg2[%c20_411, %c0_412] : memref<25x288xf32, #tpu.memory_space<vmem>>, vector<1x288xf32>
    %723 = vector.shape_cast %722 : vector<1x288xf32> to vector<288xf32>
    %724 = vector.shape_cast %723 : vector<288xf32> to vector<1x288xf32>
    %725 = vector.broadcast %724 : vector<1x288xf32> to vector<7x288xf32>
    %726 = arith.mulf %721, %725 : vector<7x288xf32>
    %727 = arith.addf %717, %726 : vector<7x288xf32>
    %c4_i32_413 = arith.constant 4 : i32
    %728 = arith.addi %516, %c4_i32_413 : i32
    %c1_414 = arith.constant 1 : index
    %729 = arith.index_cast %728 : i32 to index
    %c0_415 = arith.constant 0 : index
    %c0_416 = arith.constant 0 : index
    %730 = vector.load %arg1[%c1_414, %729, %c0_415, %c0_416] : memref<5x19x7x288xf32, #tpu.memory_space<vmem>>, vector<1x1x7x288xf32>
    %731 = vector.shape_cast %730 : vector<1x1x7x288xf32> to vector<7x288xf32>
    %c21_417 = arith.constant 21 : index
    %c0_418 = arith.constant 0 : index
    %732 = vector.load %arg2[%c21_417, %c0_418] : memref<25x288xf32, #tpu.memory_space<vmem>>, vector<1x288xf32>
    %733 = vector.shape_cast %732 : vector<1x288xf32> to vector<288xf32>
    %734 = vector.shape_cast %733 : vector<288xf32> to vector<1x288xf32>
    %735 = vector.broadcast %734 : vector<1x288xf32> to vector<7x288xf32>
    %736 = arith.mulf %731, %735 : vector<7x288xf32>
    %737 = arith.addf %727, %736 : vector<7x288xf32>
    %c4_i32_419 = arith.constant 4 : i32
    %738 = arith.addi %516, %c4_i32_419 : i32
    %c2_420 = arith.constant 2 : index
    %739 = arith.index_cast %738 : i32 to index
    %c0_421 = arith.constant 0 : index
    %c0_422 = arith.constant 0 : index
    %740 = vector.load %arg1[%c2_420, %739, %c0_421, %c0_422] : memref<5x19x7x288xf32, #tpu.memory_space<vmem>>, vector<1x1x7x288xf32>
    %741 = vector.shape_cast %740 : vector<1x1x7x288xf32> to vector<7x288xf32>
    %c22_423 = arith.constant 22 : index
    %c0_424 = arith.constant 0 : index
    %742 = vector.load %arg2[%c22_423, %c0_424] : memref<25x288xf32, #tpu.memory_space<vmem>>, vector<1x288xf32>
    %743 = vector.shape_cast %742 : vector<1x288xf32> to vector<288xf32>
    %744 = vector.shape_cast %743 : vector<288xf32> to vector<1x288xf32>
    %745 = vector.broadcast %744 : vector<1x288xf32> to vector<7x288xf32>
    %746 = arith.mulf %741, %745 : vector<7x288xf32>
    %747 = arith.addf %737, %746 : vector<7x288xf32>
    %c4_i32_425 = arith.constant 4 : i32
    %748 = arith.addi %516, %c4_i32_425 : i32
    %c3_426 = arith.constant 3 : index
    %749 = arith.index_cast %748 : i32 to index
    %c0_427 = arith.constant 0 : index
    %c0_428 = arith.constant 0 : index
    %750 = vector.load %arg1[%c3_426, %749, %c0_427, %c0_428] : memref<5x19x7x288xf32, #tpu.memory_space<vmem>>, vector<1x1x7x288xf32>
    %751 = vector.shape_cast %750 : vector<1x1x7x288xf32> to vector<7x288xf32>
    %c23_429 = arith.constant 23 : index
    %c0_430 = arith.constant 0 : index
    %752 = vector.load %arg2[%c23_429, %c0_430] : memref<25x288xf32, #tpu.memory_space<vmem>>, vector<1x288xf32>
    %753 = vector.shape_cast %752 : vector<1x288xf32> to vector<288xf32>
    %754 = vector.shape_cast %753 : vector<288xf32> to vector<1x288xf32>
    %755 = vector.broadcast %754 : vector<1x288xf32> to vector<7x288xf32>
    %756 = arith.mulf %751, %755 : vector<7x288xf32>
    %757 = arith.addf %747, %756 : vector<7x288xf32>
    %c4_i32_431 = arith.constant 4 : i32
    %758 = arith.addi %516, %c4_i32_431 : i32
    %c4_432 = arith.constant 4 : index
    %759 = arith.index_cast %758 : i32 to index
    %c0_433 = arith.constant 0 : index
    %c0_434 = arith.constant 0 : index
    %760 = vector.load %arg1[%c4_432, %759, %c0_433, %c0_434] : memref<5x19x7x288xf32, #tpu.memory_space<vmem>>, vector<1x1x7x288xf32>
    %761 = vector.shape_cast %760 : vector<1x1x7x288xf32> to vector<7x288xf32>
    %c24_435 = arith.constant 24 : index
    %c0_436 = arith.constant 0 : index
    %762 = vector.load %arg2[%c24_435, %c0_436] : memref<25x288xf32, #tpu.memory_space<vmem>>, vector<1x288xf32>
    %763 = vector.shape_cast %762 : vector<1x288xf32> to vector<288xf32>
    %764 = vector.shape_cast %763 : vector<288xf32> to vector<1x288xf32>
    %765 = vector.broadcast %764 : vector<1x288xf32> to vector<7x288xf32>
    %766 = arith.mulf %761, %765 : vector<7x288xf32>
    %767 = arith.addf %757, %766 : vector<7x288xf32>
    %c2_437 = arith.constant 2 : index
    %c0_438 = arith.constant 0 : index
    %c0_439 = arith.constant 0 : index
    %768 = vector.load %arg3[%c2_437, %c0_438, %c0_439] : memref<4x7x288xf32, #tpu.memory_space<vmem>>, vector<1x7x288xf32>
    %769 = vector.shape_cast %768 : vector<1x7x288xf32> to vector<7x288xf32>
    %770 = vector.shape_cast %767 : vector<7x288xf32> to vector<1x7x288xf32>
    tpu.vector_store %arg3[%c2_437, %c0_438, %c0_439], %770 {strides = array<i32>} : memref<4x7x288xf32, #tpu.memory_space<vmem>>, vector<1x7x288xf32>,
    %c4_i32_440 = arith.constant 4 : i32
    %771 = arith.muli %arg0, %c4_i32_440 : i32
    %c3_i32_441 = arith.constant 3 : i32
    %772 = arith.addi %771, %c3_i32_441 : i32
    %c2_i32_442 = arith.constant 2 : i32
    %773 = arith.muli %c2_i32_442, %772 : i32
    %cst_443 = arith.constant 0.000000e+00 : f32
    %774 = vector.broadcast %cst_443 : f32 to vector<7x288xf32>
    %c0_i32_444 = arith.constant 0 : i32
    %775 = arith.addi %773, %c0_i32_444 : i32
    %c0_445 = arith.constant 0 : index
    %776 = arith.index_cast %775 : i32 to index
    %c0_446 = arith.constant 0 : index
    %c0_447 = arith.constant 0 : index
    %777 = vector.load %arg1[%c0_445, %776, %c0_446, %c0_447] : memref<5x19x7x288xf32, #tpu.memory_space<vmem>>, vector<1x1x7x288xf32>
    %778 = vector.shape_cast %777 : vector<1x1x7x288xf32> to vector<7x288xf32>
    %c0_448 = arith.constant 0 : index
    %c0_449 = arith.constant 0 : index
    %779 = vector.load %arg2[%c0_448, %c0_449] : memref<25x288xf32, #tpu.memory_space<vmem>>, vector<1x288xf32>
    %780 = vector.shape_cast %779 : vector<1x288xf32> to vector<288xf32>
    %781 = vector.shape_cast %780 : vector<288xf32> to vector<1x288xf32>
    %782 = vector.broadcast %781 : vector<1x288xf32> to vector<7x288xf32>
    %783 = arith.mulf %778, %782 : vector<7x288xf32>
    %784 = arith.addf %774, %783 : vector<7x288xf32>
    %c0_i32_450 = arith.constant 0 : i32
    %785 = arith.addi %773, %c0_i32_450 : i32
    %c1_451 = arith.constant 1 : index
    %786 = arith.index_cast %785 : i32 to index
    %c0_452 = arith.constant 0 : index
    %c0_453 = arith.constant 0 : index
    %787 = vector.load %arg1[%c1_451, %786, %c0_452, %c0_453] : memref<5x19x7x288xf32, #tpu.memory_space<vmem>>, vector<1x1x7x288xf32>
    %788 = vector.shape_cast %787 : vector<1x1x7x288xf32> to vector<7x288xf32>
    %c1_454 = arith.constant 1 : index
    %c0_455 = arith.constant 0 : index
    %789 = vector.load %arg2[%c1_454, %c0_455] : memref<25x288xf32, #tpu.memory_space<vmem>>, vector<1x288xf32>
    %790 = vector.shape_cast %789 : vector<1x288xf32> to vector<288xf32>
    %791 = vector.shape_cast %790 : vector<288xf32> to vector<1x288xf32>
    %792 = vector.broadcast %791 : vector<1x288xf32> to vector<7x288xf32>
    %793 = arith.mulf %788, %792 : vector<7x288xf32>
    %794 = arith.addf %784, %793 : vector<7x288xf32>
    %c0_i32_456 = arith.constant 0 : i32
    %795 = arith.addi %773, %c0_i32_456 : i32
    %c2_457 = arith.constant 2 : index
    %796 = arith.index_cast %795 : i32 to index
    %c0_458 = arith.constant 0 : index
    %c0_459 = arith.constant 0 : index
    %797 = vector.load %arg1[%c2_457, %796, %c0_458, %c0_459] : memref<5x19x7x288xf32, #tpu.memory_space<vmem>>, vector<1x1x7x288xf32>
    %798 = vector.shape_cast %797 : vector<1x1x7x288xf32> to vector<7x288xf32>
    %c2_460 = arith.constant 2 : index
    %c0_461 = arith.constant 0 : index
    %799 = vector.load %arg2[%c2_460, %c0_461] : memref<25x288xf32, #tpu.memory_space<vmem>>, vector<1x288xf32>
    %800 = vector.shape_cast %799 : vector<1x288xf32> to vector<288xf32>
    %801 = vector.shape_cast %800 : vector<288xf32> to vector<1x288xf32>
    %802 = vector.broadcast %801 : vector<1x288xf32> to vector<7x288xf32>
    %803 = arith.mulf %798, %802 : vector<7x288xf32>
    %804 = arith.addf %794, %803 : vector<7x288xf32>
    %c0_i32_462 = arith.constant 0 : i32
    %805 = arith.addi %773, %c0_i32_462 : i32
    %c3_463 = arith.constant 3 : index
    %806 = arith.index_cast %805 : i32 to index
    %c0_464 = arith.constant 0 : index
    %c0_465 = arith.constant 0 : index
    %807 = vector.load %arg1[%c3_463, %806, %c0_464, %c0_465] : memref<5x19x7x288xf32, #tpu.memory_space<vmem>>, vector<1x1x7x288xf32>
    %808 = vector.shape_cast %807 : vector<1x1x7x288xf32> to vector<7x288xf32>
    %c3_466 = arith.constant 3 : index
    %c0_467 = arith.constant 0 : index
    %809 = vector.load %arg2[%c3_466, %c0_467] : memref<25x288xf32, #tpu.memory_space<vmem>>, vector<1x288xf32>
    %810 = vector.shape_cast %809 : vector<1x288xf32> to vector<288xf32>
    %811 = vector.shape_cast %810 : vector<288xf32> to vector<1x288xf32>
    %812 = vector.broadcast %811 : vector<1x288xf32> to vector<7x288xf32>
    %813 = arith.mulf %808, %812 : vector<7x288xf32>
    %814 = arith.addf %804, %813 : vector<7x288xf32>
    %c0_i32_468 = arith.constant 0 : i32
    %815 = arith.addi %773, %c0_i32_468 : i32
    %c4_469 = arith.constant 4 : index
    %816 = arith.index_cast %815 : i32 to index
    %c0_470 = arith.constant 0 : index
    %c0_471 = arith.constant 0 : index
    %817 = vector.load %arg1[%c4_469, %816, %c0_470, %c0_471] : memref<5x19x7x288xf32, #tpu.memory_space<vmem>>, vector<1x1x7x288xf32>
    %818 = vector.shape_cast %817 : vector<1x1x7x288xf32> to vector<7x288xf32>
    %c4_472 = arith.constant 4 : index
    %c0_473 = arith.constant 0 : index
    %819 = vector.load %arg2[%c4_472, %c0_473] : memref<25x288xf32, #tpu.memory_space<vmem>>, vector<1x288xf32>
    %820 = vector.shape_cast %819 : vector<1x288xf32> to vector<288xf32>
    %821 = vector.shape_cast %820 : vector<288xf32> to vector<1x288xf32>
    %822 = vector.broadcast %821 : vector<1x288xf32> to vector<7x288xf32>
    %823 = arith.mulf %818, %822 : vector<7x288xf32>
    %824 = arith.addf %814, %823 : vector<7x288xf32>
    %c1_i32_474 = arith.constant 1 : i32
    %825 = arith.addi %773, %c1_i32_474 : i32
    %c0_475 = arith.constant 0 : index
    %826 = arith.index_cast %825 : i32 to index
    %c0_476 = arith.constant 0 : index
    %c0_477 = arith.constant 0 : index
    %827 = vector.load %arg1[%c0_475, %826, %c0_476, %c0_477] : memref<5x19x7x288xf32, #tpu.memory_space<vmem>>, vector<1x1x7x288xf32>
    %828 = vector.shape_cast %827 : vector<1x1x7x288xf32> to vector<7x288xf32>
    %c5_478 = arith.constant 5 : index
    %c0_479 = arith.constant 0 : index
    %829 = vector.load %arg2[%c5_478, %c0_479] : memref<25x288xf32, #tpu.memory_space<vmem>>, vector<1x288xf32>
    %830 = vector.shape_cast %829 : vector<1x288xf32> to vector<288xf32>
    %831 = vector.shape_cast %830 : vector<288xf32> to vector<1x288xf32>
    %832 = vector.broadcast %831 : vector<1x288xf32> to vector<7x288xf32>
    %833 = arith.mulf %828, %832 : vector<7x288xf32>
    %834 = arith.addf %824, %833 : vector<7x288xf32>
    %c1_i32_480 = arith.constant 1 : i32
    %835 = arith.addi %773, %c1_i32_480 : i32
    %c1_481 = arith.constant 1 : index
    %836 = arith.index_cast %835 : i32 to index
    %c0_482 = arith.constant 0 : index
    %c0_483 = arith.constant 0 : index
    %837 = vector.load %arg1[%c1_481, %836, %c0_482, %c0_483] : memref<5x19x7x288xf32, #tpu.memory_space<vmem>>, vector<1x1x7x288xf32>
    %838 = vector.shape_cast %837 : vector<1x1x7x288xf32> to vector<7x288xf32>
    %c6_484 = arith.constant 6 : index
    %c0_485 = arith.constant 0 : index
    %839 = vector.load %arg2[%c6_484, %c0_485] : memref<25x288xf32, #tpu.memory_space<vmem>>, vector<1x288xf32>
    %840 = vector.shape_cast %839 : vector<1x288xf32> to vector<288xf32>
    %841 = vector.shape_cast %840 : vector<288xf32> to vector<1x288xf32>
    %842 = vector.broadcast %841 : vector<1x288xf32> to vector<7x288xf32>
    %843 = arith.mulf %838, %842 : vector<7x288xf32>
    %844 = arith.addf %834, %843 : vector<7x288xf32>
    %c1_i32_486 = arith.constant 1 : i32
    %845 = arith.addi %773, %c1_i32_486 : i32
    %c2_487 = arith.constant 2 : index
    %846 = arith.index_cast %845 : i32 to index
    %c0_488 = arith.constant 0 : index
    %c0_489 = arith.constant 0 : index
    %847 = vector.load %arg1[%c2_487, %846, %c0_488, %c0_489] : memref<5x19x7x288xf32, #tpu.memory_space<vmem>>, vector<1x1x7x288xf32>
    %848 = vector.shape_cast %847 : vector<1x1x7x288xf32> to vector<7x288xf32>
    %c7_490 = arith.constant 7 : index
    %c0_491 = arith.constant 0 : index
    %849 = vector.load %arg2[%c7_490, %c0_491] : memref<25x288xf32, #tpu.memory_space<vmem>>, vector<1x288xf32>
    %850 = vector.shape_cast %849 : vector<1x288xf32> to vector<288xf32>
    %851 = vector.shape_cast %850 : vector<288xf32> to vector<1x288xf32>
    %852 = vector.broadcast %851 : vector<1x288xf32> to vector<7x288xf32>
    %853 = arith.mulf %848, %852 : vector<7x288xf32>
    %854 = arith.addf %844, %853 : vector<7x288xf32>
    %c1_i32_492 = arith.constant 1 : i32
    %855 = arith.addi %773, %c1_i32_492 : i32
    %c3_493 = arith.constant 3 : index
    %856 = arith.index_cast %855 : i32 to index
    %c0_494 = arith.constant 0 : index
    %c0_495 = arith.constant 0 : index
    %857 = vector.load %arg1[%c3_493, %856, %c0_494, %c0_495] : memref<5x19x7x288xf32, #tpu.memory_space<vmem>>, vector<1x1x7x288xf32>
    %858 = vector.shape_cast %857 : vector<1x1x7x288xf32> to vector<7x288xf32>
    %c8_496 = arith.constant 8 : index
    %c0_497 = arith.constant 0 : index
    %859 = vector.load %arg2[%c8_496, %c0_497] : memref<25x288xf32, #tpu.memory_space<vmem>>, vector<1x288xf32>
    %860 = vector.shape_cast %859 : vector<1x288xf32> to vector<288xf32>
    %861 = vector.shape_cast %860 : vector<288xf32> to vector<1x288xf32>
    %862 = vector.broadcast %861 : vector<1x288xf32> to vector<7x288xf32>
    %863 = arith.mulf %858, %862 : vector<7x288xf32>
    %864 = arith.addf %854, %863 : vector<7x288xf32>
    %c1_i32_498 = arith.constant 1 : i32
    %865 = arith.addi %773, %c1_i32_498 : i32
    %c4_499 = arith.constant 4 : index
    %866 = arith.index_cast %865 : i32 to index
    %c0_500 = arith.constant 0 : index
    %c0_501 = arith.constant 0 : index
    %867 = vector.load %arg1[%c4_499, %866, %c0_500, %c0_501] : memref<5x19x7x288xf32, #tpu.memory_space<vmem>>, vector<1x1x7x288xf32>
    %868 = vector.shape_cast %867 : vector<1x1x7x288xf32> to vector<7x288xf32>
    %c9_502 = arith.constant 9 : index
    %c0_503 = arith.constant 0 : index
    %869 = vector.load %arg2[%c9_502, %c0_503] : memref<25x288xf32, #tpu.memory_space<vmem>>, vector<1x288xf32>
    %870 = vector.shape_cast %869 : vector<1x288xf32> to vector<288xf32>
    %871 = vector.shape_cast %870 : vector<288xf32> to vector<1x288xf32>
    %872 = vector.broadcast %871 : vector<1x288xf32> to vector<7x288xf32>
    %873 = arith.mulf %868, %872 : vector<7x288xf32>
    %874 = arith.addf %864, %873 : vector<7x288xf32>
    %c2_i32_504 = arith.constant 2 : i32
    %875 = arith.addi %773, %c2_i32_504 : i32
    %c0_505 = arith.constant 0 : index
    %876 = arith.index_cast %875 : i32 to index
    %c0_506 = arith.constant 0 : index
    %c0_507 = arith.constant 0 : index
    %877 = vector.load %arg1[%c0_505, %876, %c0_506, %c0_507] : memref<5x19x7x288xf32, #tpu.memory_space<vmem>>, vector<1x1x7x288xf32>
    %878 = vector.shape_cast %877 : vector<1x1x7x288xf32> to vector<7x288xf32>
    %c10_508 = arith.constant 10 : index
    %c0_509 = arith.constant 0 : index
    %879 = vector.load %arg2[%c10_508, %c0_509] : memref<25x288xf32, #tpu.memory_space<vmem>>, vector<1x288xf32>
    %880 = vector.shape_cast %879 : vector<1x288xf32> to vector<288xf32>
    %881 = vector.shape_cast %880 : vector<288xf32> to vector<1x288xf32>
    %882 = vector.broadcast %881 : vector<1x288xf32> to vector<7x288xf32>
    %883 = arith.mulf %878, %882 : vector<7x288xf32>
    %884 = arith.addf %874, %883 : vector<7x288xf32>
    %c2_i32_510 = arith.constant 2 : i32
    %885 = arith.addi %773, %c2_i32_510 : i32
    %c1_511 = arith.constant 1 : index
    %886 = arith.index_cast %885 : i32 to index
    %c0_512 = arith.constant 0 : index
    %c0_513 = arith.constant 0 : index
    %887 = vector.load %arg1[%c1_511, %886, %c0_512, %c0_513] : memref<5x19x7x288xf32, #tpu.memory_space<vmem>>, vector<1x1x7x288xf32>
    %888 = vector.shape_cast %887 : vector<1x1x7x288xf32> to vector<7x288xf32>
    %c11_514 = arith.constant 11 : index
    %c0_515 = arith.constant 0 : index
    %889 = vector.load %arg2[%c11_514, %c0_515] : memref<25x288xf32, #tpu.memory_space<vmem>>, vector<1x288xf32>
    %890 = vector.shape_cast %889 : vector<1x288xf32> to vector<288xf32>
    %891 = vector.shape_cast %890 : vector<288xf32> to vector<1x288xf32>
    %892 = vector.broadcast %891 : vector<1x288xf32> to vector<7x288xf32>
    %893 = arith.mulf %888, %892 : vector<7x288xf32>
    %894 = arith.addf %884, %893 : vector<7x288xf32>
    %c2_i32_516 = arith.constant 2 : i32
    %895 = arith.addi %773, %c2_i32_516 : i32
    %c2_517 = arith.constant 2 : index
    %896 = arith.index_cast %895 : i32 to index
    %c0_518 = arith.constant 0 : index
    %c0_519 = arith.constant 0 : index
    %897 = vector.load %arg1[%c2_517, %896, %c0_518, %c0_519] : memref<5x19x7x288xf32, #tpu.memory_space<vmem>>, vector<1x1x7x288xf32>
    %898 = vector.shape_cast %897 : vector<1x1x7x288xf32> to vector<7x288xf32>
    %c12_520 = arith.constant 12 : index
    %c0_521 = arith.constant 0 : index
    %899 = vector.load %arg2[%c12_520, %c0_521] : memref<25x288xf32, #tpu.memory_space<vmem>>, vector<1x288xf32>
    %900 = vector.shape_cast %899 : vector<1x288xf32> to vector<288xf32>
    %901 = vector.shape_cast %900 : vector<288xf32> to vector<1x288xf32>
    %902 = vector.broadcast %901 : vector<1x288xf32> to vector<7x288xf32>
    %903 = arith.mulf %898, %902 : vector<7x288xf32>
    %904 = arith.addf %894, %903 : vector<7x288xf32>
    %c2_i32_522 = arith.constant 2 : i32
    %905 = arith.addi %773, %c2_i32_522 : i32
    %c3_523 = arith.constant 3 : index
    %906 = arith.index_cast %905 : i32 to index
    %c0_524 = arith.constant 0 : index
    %c0_525 = arith.constant 0 : index
    %907 = vector.load %arg1[%c3_523, %906, %c0_524, %c0_525] : memref<5x19x7x288xf32, #tpu.memory_space<vmem>>, vector<1x1x7x288xf32>
    %908 = vector.shape_cast %907 : vector<1x1x7x288xf32> to vector<7x288xf32>
    %c13_526 = arith.constant 13 : index
    %c0_527 = arith.constant 0 : index
    %909 = vector.load %arg2[%c13_526, %c0_527] : memref<25x288xf32, #tpu.memory_space<vmem>>, vector<1x288xf32>
    %910 = vector.shape_cast %909 : vector<1x288xf32> to vector<288xf32>
    %911 = vector.shape_cast %910 : vector<288xf32> to vector<1x288xf32>
    %912 = vector.broadcast %911 : vector<1x288xf32> to vector<7x288xf32>
    %913 = arith.mulf %908, %912 : vector<7x288xf32>
    %914 = arith.addf %904, %913 : vector<7x288xf32>
    %c2_i32_528 = arith.constant 2 : i32
    %915 = arith.addi %773, %c2_i32_528 : i32
    %c4_529 = arith.constant 4 : index
    %916 = arith.index_cast %915 : i32 to index
    %c0_530 = arith.constant 0 : index
    %c0_531 = arith.constant 0 : index
    %917 = vector.load %arg1[%c4_529, %916, %c0_530, %c0_531] : memref<5x19x7x288xf32, #tpu.memory_space<vmem>>, vector<1x1x7x288xf32>
    %918 = vector.shape_cast %917 : vector<1x1x7x288xf32> to vector<7x288xf32>
    %c14_532 = arith.constant 14 : index
    %c0_533 = arith.constant 0 : index
    %919 = vector.load %arg2[%c14_532, %c0_533] : memref<25x288xf32, #tpu.memory_space<vmem>>, vector<1x288xf32>
    %920 = vector.shape_cast %919 : vector<1x288xf32> to vector<288xf32>
    %921 = vector.shape_cast %920 : vector<288xf32> to vector<1x288xf32>
    %922 = vector.broadcast %921 : vector<1x288xf32> to vector<7x288xf32>
    %923 = arith.mulf %918, %922 : vector<7x288xf32>
    %924 = arith.addf %914, %923 : vector<7x288xf32>
    %c3_i32_534 = arith.constant 3 : i32
    %925 = arith.addi %773, %c3_i32_534 : i32
    %c0_535 = arith.constant 0 : index
    %926 = arith.index_cast %925 : i32 to index
    %c0_536 = arith.constant 0 : index
    %c0_537 = arith.constant 0 : index
    %927 = vector.load %arg1[%c0_535, %926, %c0_536, %c0_537] : memref<5x19x7x288xf32, #tpu.memory_space<vmem>>, vector<1x1x7x288xf32>
    %928 = vector.shape_cast %927 : vector<1x1x7x288xf32> to vector<7x288xf32>
    %c15_538 = arith.constant 15 : index
    %c0_539 = arith.constant 0 : index
    %929 = vector.load %arg2[%c15_538, %c0_539] : memref<25x288xf32, #tpu.memory_space<vmem>>, vector<1x288xf32>
    %930 = vector.shape_cast %929 : vector<1x288xf32> to vector<288xf32>
    %931 = vector.shape_cast %930 : vector<288xf32> to vector<1x288xf32>
    %932 = vector.broadcast %931 : vector<1x288xf32> to vector<7x288xf32>
    %933 = arith.mulf %928, %932 : vector<7x288xf32>
    %934 = arith.addf %924, %933 : vector<7x288xf32>
    %c3_i32_540 = arith.constant 3 : i32
    %935 = arith.addi %773, %c3_i32_540 : i32
    %c1_541 = arith.constant 1 : index
    %936 = arith.index_cast %935 : i32 to index
    %c0_542 = arith.constant 0 : index
    %c0_543 = arith.constant 0 : index
    %937 = vector.load %arg1[%c1_541, %936, %c0_542, %c0_543] : memref<5x19x7x288xf32, #tpu.memory_space<vmem>>, vector<1x1x7x288xf32>
    %938 = vector.shape_cast %937 : vector<1x1x7x288xf32> to vector<7x288xf32>
    %c16_544 = arith.constant 16 : index
    %c0_545 = arith.constant 0 : index
    %939 = vector.load %arg2[%c16_544, %c0_545] : memref<25x288xf32, #tpu.memory_space<vmem>>, vector<1x288xf32>
    %940 = vector.shape_cast %939 : vector<1x288xf32> to vector<288xf32>
    %941 = vector.shape_cast %940 : vector<288xf32> to vector<1x288xf32>
    %942 = vector.broadcast %941 : vector<1x288xf32> to vector<7x288xf32>
    %943 = arith.mulf %938, %942 : vector<7x288xf32>
    %944 = arith.addf %934, %943 : vector<7x288xf32>
    %c3_i32_546 = arith.constant 3 : i32
    %945 = arith.addi %773, %c3_i32_546 : i32
    %c2_547 = arith.constant 2 : index
    %946 = arith.index_cast %945 : i32 to index
    %c0_548 = arith.constant 0 : index
    %c0_549 = arith.constant 0 : index
    %947 = vector.load %arg1[%c2_547, %946, %c0_548, %c0_549] : memref<5x19x7x288xf32, #tpu.memory_space<vmem>>, vector<1x1x7x288xf32>
    %948 = vector.shape_cast %947 : vector<1x1x7x288xf32> to vector<7x288xf32>
    %c17_550 = arith.constant 17 : index
    %c0_551 = arith.constant 0 : index
    %949 = vector.load %arg2[%c17_550, %c0_551] : memref<25x288xf32, #tpu.memory_space<vmem>>, vector<1x288xf32>
    %950 = vector.shape_cast %949 : vector<1x288xf32> to vector<288xf32>
    %951 = vector.shape_cast %950 : vector<288xf32> to vector<1x288xf32>
    %952 = vector.broadcast %951 : vector<1x288xf32> to vector<7x288xf32>
    %953 = arith.mulf %948, %952 : vector<7x288xf32>
    %954 = arith.addf %944, %953 : vector<7x288xf32>
    %c3_i32_552 = arith.constant 3 : i32
    %955 = arith.addi %773, %c3_i32_552 : i32
    %c3_553 = arith.constant 3 : index
    %956 = arith.index_cast %955 : i32 to index
    %c0_554 = arith.constant 0 : index
    %c0_555 = arith.constant 0 : index
    %957 = vector.load %arg1[%c3_553, %956, %c0_554, %c0_555] : memref<5x19x7x288xf32, #tpu.memory_space<vmem>>, vector<1x1x7x288xf32>
    %958 = vector.shape_cast %957 : vector<1x1x7x288xf32> to vector<7x288xf32>
    %c18_556 = arith.constant 18 : index
    %c0_557 = arith.constant 0 : index
    %959 = vector.load %arg2[%c18_556, %c0_557] : memref<25x288xf32, #tpu.memory_space<vmem>>, vector<1x288xf32>
    %960 = vector.shape_cast %959 : vector<1x288xf32> to vector<288xf32>
    %961 = vector.shape_cast %960 : vector<288xf32> to vector<1x288xf32>
    %962 = vector.broadcast %961 : vector<1x288xf32> to vector<7x288xf32>
    %963 = arith.mulf %958, %962 : vector<7x288xf32>
    %964 = arith.addf %954, %963 : vector<7x288xf32>
    %c3_i32_558 = arith.constant 3 : i32
    %965 = arith.addi %773, %c3_i32_558 : i32
    %c4_559 = arith.constant 4 : index
    %966 = arith.index_cast %965 : i32 to index
    %c0_560 = arith.constant 0 : index
    %c0_561 = arith.constant 0 : index
    %967 = vector.load %arg1[%c4_559, %966, %c0_560, %c0_561] : memref<5x19x7x288xf32, #tpu.memory_space<vmem>>, vector<1x1x7x288xf32>
    %968 = vector.shape_cast %967 : vector<1x1x7x288xf32> to vector<7x288xf32>
    %c19_562 = arith.constant 19 : index
    %c0_563 = arith.constant 0 : index
    %969 = vector.load %arg2[%c19_562, %c0_563] : memref<25x288xf32, #tpu.memory_space<vmem>>, vector<1x288xf32>
    %970 = vector.shape_cast %969 : vector<1x288xf32> to vector<288xf32>
    %971 = vector.shape_cast %970 : vector<288xf32> to vector<1x288xf32>
    %972 = vector.broadcast %971 : vector<1x288xf32> to vector<7x288xf32>
    %973 = arith.mulf %968, %972 : vector<7x288xf32>
    %974 = arith.addf %964, %973 : vector<7x288xf32>
    %c4_i32_564 = arith.constant 4 : i32
    %975 = arith.addi %773, %c4_i32_564 : i32
    %c0_565 = arith.constant 0 : index
    %976 = arith.index_cast %975 : i32 to index
    %c0_566 = arith.constant 0 : index
    %c0_567 = arith.constant 0 : index
    %977 = vector.load %arg1[%c0_565, %976, %c0_566, %c0_567] : memref<5x19x7x288xf32, #tpu.memory_space<vmem>>, vector<1x1x7x288xf32>
    %978 = vector.shape_cast %977 : vector<1x1x7x288xf32> to vector<7x288xf32>
    %c20_568 = arith.constant 20 : index
    %c0_569 = arith.constant 0 : index
    %979 = vector.load %arg2[%c20_568, %c0_569] : memref<25x288xf32, #tpu.memory_space<vmem>>, vector<1x288xf32>
    %980 = vector.shape_cast %979 : vector<1x288xf32> to vector<288xf32>
    %981 = vector.shape_cast %980 : vector<288xf32> to vector<1x288xf32>
    %982 = vector.broadcast %981 : vector<1x288xf32> to vector<7x288xf32>
    %983 = arith.mulf %978, %982 : vector<7x288xf32>
    %984 = arith.addf %974, %983 : vector<7x288xf32>
    %c4_i32_570 = arith.constant 4 : i32
    %985 = arith.addi %773, %c4_i32_570 : i32
    %c1_571 = arith.constant 1 : index
    %986 = arith.index_cast %985 : i32 to index
    %c0_572 = arith.constant 0 : index
    %c0_573 = arith.constant 0 : index
    %987 = vector.load %arg1[%c1_571, %986, %c0_572, %c0_573] : memref<5x19x7x288xf32, #tpu.memory_space<vmem>>, vector<1x1x7x288xf32>
    %988 = vector.shape_cast %987 : vector<1x1x7x288xf32> to vector<7x288xf32>
    %c21_574 = arith.constant 21 : index
    %c0_575 = arith.constant 0 : index
    %989 = vector.load %arg2[%c21_574, %c0_575] : memref<25x288xf32, #tpu.memory_space<vmem>>, vector<1x288xf32>
    %990 = vector.shape_cast %989 : vector<1x288xf32> to vector<288xf32>
    %991 = vector.shape_cast %990 : vector<288xf32> to vector<1x288xf32>
    %992 = vector.broadcast %991 : vector<1x288xf32> to vector<7x288xf32>
    %993 = arith.mulf %988, %992 : vector<7x288xf32>
    %994 = arith.addf %984, %993 : vector<7x288xf32>
    %c4_i32_576 = arith.constant 4 : i32
    %995 = arith.addi %773, %c4_i32_576 : i32
    %c2_577 = arith.constant 2 : index
    %996 = arith.index_cast %995 : i32 to index
    %c0_578 = arith.constant 0 : index
    %c0_579 = arith.constant 0 : index
    %997 = vector.load %arg1[%c2_577, %996, %c0_578, %c0_579] : memref<5x19x7x288xf32, #tpu.memory_space<vmem>>, vector<1x1x7x288xf32>
    %998 = vector.shape_cast %997 : vector<1x1x7x288xf32> to vector<7x288xf32>
    %c22_580 = arith.constant 22 : index
    %c0_581 = arith.constant 0 : index
    %999 = vector.load %arg2[%c22_580, %c0_581] : memref<25x288xf32, #tpu.memory_space<vmem>>, vector<1x288xf32>
    %1000 = vector.shape_cast %999 : vector<1x288xf32> to vector<288xf32>
    %1001 = vector.shape_cast %1000 : vector<288xf32> to vector<1x288xf32>
    %1002 = vector.broadcast %1001 : vector<1x288xf32> to vector<7x288xf32>
    %1003 = arith.mulf %998, %1002 : vector<7x288xf32>
    %1004 = arith.addf %994, %1003 : vector<7x288xf32>
    %c4_i32_582 = arith.constant 4 : i32
    %1005 = arith.addi %773, %c4_i32_582 : i32
    %c3_583 = arith.constant 3 : index
    %1006 = arith.index_cast %1005 : i32 to index
    %c0_584 = arith.constant 0 : index
    %c0_585 = arith.constant 0 : index
    %1007 = vector.load %arg1[%c3_583, %1006, %c0_584, %c0_585] : memref<5x19x7x288xf32, #tpu.memory_space<vmem>>, vector<1x1x7x288xf32>
    %1008 = vector.shape_cast %1007 : vector<1x1x7x288xf32> to vector<7x288xf32>
    %c23_586 = arith.constant 23 : index
    %c0_587 = arith.constant 0 : index
    %1009 = vector.load %arg2[%c23_586, %c0_587] : memref<25x288xf32, #tpu.memory_space<vmem>>, vector<1x288xf32>
    %1010 = vector.shape_cast %1009 : vector<1x288xf32> to vector<288xf32>
    %1011 = vector.shape_cast %1010 : vector<288xf32> to vector<1x288xf32>
    %1012 = vector.broadcast %1011 : vector<1x288xf32> to vector<7x288xf32>
    %1013 = arith.mulf %1008, %1012 : vector<7x288xf32>
    %1014 = arith.addf %1004, %1013 : vector<7x288xf32>
    %c4_i32_588 = arith.constant 4 : i32
    %1015 = arith.addi %773, %c4_i32_588 : i32
    %c4_589 = arith.constant 4 : index
    %1016 = arith.index_cast %1015 : i32 to index
    %c0_590 = arith.constant 0 : index
    %c0_591 = arith.constant 0 : index
    %1017 = vector.load %arg1[%c4_589, %1016, %c0_590, %c0_591] : memref<5x19x7x288xf32, #tpu.memory_space<vmem>>, vector<1x1x7x288xf32>
    %1018 = vector.shape_cast %1017 : vector<1x1x7x288xf32> to vector<7x288xf32>
    %c24_592 = arith.constant 24 : index
    %c0_593 = arith.constant 0 : index
    %1019 = vector.load %arg2[%c24_592, %c0_593] : memref<25x288xf32, #tpu.memory_space<vmem>>, vector<1x288xf32>
    %1020 = vector.shape_cast %1019 : vector<1x288xf32> to vector<288xf32>
    %1021 = vector.shape_cast %1020 : vector<288xf32> to vector<1x288xf32>
    %1022 = vector.broadcast %1021 : vector<1x288xf32> to vector<7x288xf32>
    %1023 = arith.mulf %1018, %1022 : vector<7x288xf32>
    %1024 = arith.addf %1014, %1023 : vector<7x288xf32>
    %c3_594 = arith.constant 3 : index
    %c0_595 = arith.constant 0 : index
    %c0_596 = arith.constant 0 : index
    %1025 = vector.load %arg3[%c3_594, %c0_595, %c0_596] : memref<4x7x288xf32, #tpu.memory_space<vmem>>, vector<1x7x288xf32>
    %1026 = vector.shape_cast %1025 : vector<1x7x288xf32> to vector<7x288xf32>
    %1027 = vector.shape_cast %1024 : vector<7x288xf32> to vector<1x7x288xf32>
    tpu.vector_store %arg3[%c3_594, %c0_595, %c0_596], %1027 {strides = array<i32>} : memref<4x7x288xf32, #tpu.memory_space<vmem>>, vector<1x7x288xf32>,
    return
  }
  func.func @transform_0(%arg0: i32) -> (i32, i32, i32, i32) {
    %c0_i32 = arith.constant 0 : i32
    %c0_i32_0 = arith.constant 0 : i32
    %c0_i32_1 = arith.constant 0 : i32
    %c0_i32_2 = arith.constant 0 : i32
    %c0_i32_3 = arith.constant 0 : i32
    return %c0_i32, %c0_i32_0, %c0_i32_1, %c0_i32_2 : i32, i32, i32, i32
  }
  func.func @transform_1(%arg0: i32) -> (i32, i32) {
    %c0_i32 = arith.constant 0 : i32
    %c0_i32_0 = arith.constant 0 : i32
    %c0_i32_1 = arith.constant 0 : i32
    return %c0_i32, %c0_i32_0 : i32, i32
  }
  func.func @transform_2(%arg0: i32) -> (i32, i32, i32) {
    %c0_i32 = arith.constant 0 : i32
    %c0_i32_0 = arith.constant 0 : i32
    %c0_i32_1 = arith.constant 0 : i32
    return %arg0, %c0_i32, %c0_i32_0 : i32, i32, i32
  }
}

</mosaic_0001>

<bundles_post_ra>
// kernel: squeeze.3
= control target key start
LH: loop header
LB: loop body
LE: loop exit
PB: predicated region body
PF: predicated region fallthrough
CT: control target
= control target key end

     0   :  { %vm4_vm0 = vcmask 261120   ;;  %s247_s0 = inlined_call_operand.vmem [shape: f32[288,5,5], index: 0, kind: input, shape index: {}]   ;;  %s248_s1 = inlined_call_operand.vmem [shape: f32[288,25], index: 1, kind: output, shape index: {}]  }
   0x1   :  { %v83_v0 = vld [vmem:[%s247_s0 + $0x10] sm:$0x1f]   ;;  %v85_v1 = vld [vmem:[%s247_s0 + $0x28] sm:$0x1f]   ;;  %v88_v2 = vld [vmem:[%s247_s0 + $0x40] sm:$0x1f]  }
   0x2   :  { %84 = vst.msk [vmem:[%s248_s1 + $0x10] sm:$0x1f] %vm4_vm0, %v83_v0   ;;  %86 = vst.msk [vmem:[%s248_s1 + $0x15] sm:$0x7] %vm4_vm0, %v85_v1   ;;  %v90_v3 = vld [vmem:[%s247_s0 + $0x58] sm:$0x1f]  }
   0x3   :  { %87 = vst.msk [vmem:[%s248_s1 + $0x25] sm:$0x18] %vm4_vm0, %v85_v1   ;;  %89 = vst.msk [vmem:[%s248_s1 + $0x2a] sm:$0x1f] %vm4_vm0, %v88_v2   ;;  %v93_v4 = vld [vmem:[%s247_s0 + $0x70] sm:$0x1f]  }
   0x4   :  { %v33_v5 = vld [vmem:[%s247_s0] sm:$0x1f]   ;;  %91 = vst.msk [vmem:[%s248_s1 + $0x2f] ss:$17 sm:$0x3] %vm4_vm0, %v90_v3  }
   0x5   :  { %92 = vst.msk [vmem:[%s248_s1 + $0x3f] sm:$0x1c] %vm4_vm0, %v90_v3   ;;  %94 = vst.msk [vmem:[%s248_s1 + $0x44] sm:$0xf] %vm4_vm0, %v93_v4   ;;  %v96_v6 = vld [vmem:[%s247_s0 + $0x8] sm:$0x1f]  }
   0x6   :  { %95 = vst.msk [vmem:[%s248_s1 + $0x54] sm:$0x10] %vm4_vm0, %v93_v4   ;;  %34 = vst [vmem:[%s248_s1] sm:$0x1f] %v33_v5   ;;  %v98_v7 = vld [vmem:[%s247_s0 + $0x18] sm:$0x1f]  }
   0x7   :  { %v101_v8 = vld [vmem:[%s247_s0 + $0x20] sm:$0x1f]   ;;  %97 = vst [vmem:[%s248_s1 + $0x8] sm:$0x1f] %v96_v6   ;;  %99 = vst [vmem:[%s248_s1 + $0x5] sm:$0x7] %v98_v7  }
   0x8   :  { %100 = vst [vmem:[%s248_s1 + $0x15] sm:$0x18] %v98_v7   ;;  %102 = vst [vmem:[%s248_s1 + $0xd] sm:$0x7] %v101_v8   ;;  %v104_v9 = vld [vmem:[%s247_s0 + $0x30] sm:$0x1f]  }
   0x9   :  { %103 = vst [vmem:[%s248_s1 + $0x1d] sm:$0x18] %v101_v8   ;;  %v106_v10 = vld [vmem:[%s247_s0 + $0x38] sm:$0x1f]   ;;  %v108_v11 = vld [vmem:[%s247_s0 + $0x48] sm:$0x1f]  }
   0xa   :  { %105 = vst [vmem:[%s248_s1 + $0x1a] sm:$0x1f] %v104_v9   ;;  %107 = vst [vmem:[%s248_s1 + $0x22] sm:$0x1f] %v106_v10   ;;  %v111_v12 = vld [vmem:[%s247_s0 + $0x50] sm:$0x1f]  }
   0xb   :  { %109 = vst [vmem:[%s248_s1 + $0x1f] ss:$17 sm:$0x3] %v108_v11   ;;  %110 = vst [vmem:[%s248_s1 + $0x2f] sm:$0x1c] %v108_v11  }
   0xc   :  { %v114_v13 = vld [vmem:[%s247_s0 + $0x60] sm:$0x1f]   ;;  %v117_v14 = vld [vmem:[%s247_s0 + $0x68] sm:$0x1f]   ;;  %113 = vst [vmem:[%s248_s1 + $0x37] sm:$0x1c] %v111_v12  }
   0xd   :  { %112 = vst [vmem:[%s248_s1 + $0x27] ss:$17 sm:$0x3] %v111_v12   ;;  %115 = vst [vmem:[%s248_s1 + $0x34] sm:$0xf] %v114_v13  }
   0xe   :  { %116 = vst [vmem:[%s248_s1 + $0x44] sm:$0x10] %v114_v13   ;;  %118 = vst [vmem:[%s248_s1 + $0x3c] sm:$0xf] %v117_v14  }
   0xf   :  { %119 = vst [vmem:[%s248_s1 + $0x4c] sm:$0x10] %v117_v14  }

// kernel: depthwise_conv2d_5x5_s2.1
= control target key start
LH: loop header
LB: loop body
LE: loop exit
PB: predicated region body
PF: predicated region fallthrough
CT: control target
= control target key end

     0   :  { %s4507_s9 = smov 0   ;;  %s5463_s0 = inlined_call_operand.vmem [shape: f32[5,19,7,288], index: 0, kind: input, shape index: {}]   ;;  %s5464_s1 = inlined_call_operand.vmem [shape: f32[25,288], index: 1, kind: input, shape index: {}]   ;;  %s5465_s2 = inlined_call_operand.vmem [shape: f32[8,7,288], index: 2, kind: output, shape index: {}]  }
   0x1 LB: > { %s3671_s10 = sadd.s32 4294967295, %s4490_s9   ;;  %p3674_p0 = scmp.ge.s32.totalorder %s4490_s9, 1  ;;  %s4490_s9 = sphi %s4507_s9, %s12_s9  }
   0x2   : > { %p102_p1 = scmp.lt.s32.totalorder %s4490_s9, 3 }
   0x4   : > { %p103_p2 = pnand %p3674_p0, %p102_p1 }
   0x5   : > { %s4414_s11 = smul.u32 (!%p103_p2), 192, %s3671_s10  ;;  %v136_v0 = vlaneseq (!%p103_p2)  ;;  %v134_v1 = vld [vmem:[%s5464_s1] ss:$8 sm:$0x7] (!%p103_p2)  ;;  %s4703_s30 = sshll.u32 (!%p103_p2), %s3671_s10, 2  ;;  %vm883_vm0 = vcmask (!%p103_p2), 260096  }
   0x6   : > { %106 = sbr.rel (%p103_p2) target bundleno = 237 (0xed), region = 28  ;;  %v3684_v3 = vld [vmem:[%s5464_s1 + $0x1] ss:$8 sm:$0x7] (!%p103_p2)  ;;  %p121_p3 = scmp.lt.s32.totalorder (!%p103_p2), %s4703_s30, 7 }
   0x7   : > { %s4520_s14 = scalar_lea.vmem (!%p103_p2), %s5463_s0, %s4414_s11  ;;  %v137_v2 = vshrl.u32 (!%p103_p2), %v136_v0, 7  ;;  %v3689_v4 = vld [vmem:[%s5464_s1 + $0x2] ss:$8 sm:$0x7] (!%p103_p2) }
   0x8   : > { %v131_v5 = vld [vmem:[%s4520_s14] sm:$0x7f] (!%p103_p2)  ;;  %v132_v9 = vld [vmem:[%s4520_s14 + $0x8] sm:$0x7f] (!%p103_p2)  ;;  %v133_v10 = vld [vmem:[%s4520_s14 + $0x10] sm:$0x7f] (!%p103_p2) }
   0x9   : > { %v4532_v6 = vsub.s32 (!%p103_p2), 0, %v137_v2  ;;  %v4534_v7 = vsub.s32 (!%p103_p2), 1, %v137_v2  ;;  %v4536_v8 = vsub.s32 (!%p103_p2), 2, %v137_v2  ;;  %v3681_v11 = vld [vmem:[%s4520_s14 + $0x1c8] sm:$0x7f] (!%p103_p2) }
   0xa   : > { %v3682_v15 = vld [vmem:[%s4520_s14 + $0x1d0] sm:$0x7f] (!%p103_p2)  ;;  %v3683_v16 = vld [vmem:[%s4520_s14 + $0x1d8] sm:$0x7f] (!%p103_p2)  ;;  %v3688_v28 = vld [vmem:[%s4520_s14 + $0x3a0] sm:$0x7f] (!%p103_p2) }
   0xb   : > { %v139_v12 = vrot.slane (!%p103_p2), %v134_v1, %v4532_v6  ;;  %v143_v13 = vrot.slane (!%p103_p2), %v134_v1, %v4534_v7  ;;  %v147_v14 = vrot.slane (!%p103_p2), %v134_v1, %v4536_v8  ;;  %v169_v17 = vrot.slane (!%p103_p2), %v3684_v3, %v4532_v6  ;;  %v3686_v18 = vld [vmem:[%s4520_s14 + $0x390] sm:$0x7f] (!%p103_p2)  ;;  %v3687_v21 = vld [vmem:[%s4520_s14 + $0x398] sm:$0x7f] (!%p103_p2)  ;;  %v3692_v35 = vld [vmem:[%s4520_s14 + $0x560] sm:$0x7f] (!%p103_p2) }
   0xc   : > { %v173_v19 = vrot.slane (!%p103_p2), %v3684_v3, %v4534_v7  ;;  %v177_v20 = vrot.slane (!%p103_p2), %v3684_v3, %v4536_v8  ;;  %v199_v22 = vrot.slane (!%p103_p2), %v3689_v4, %v4532_v6  ;;  %v203_v23 = vrot.slane (!%p103_p2), %v3689_v4, %v4534_v7  ;;  %v3694_v29 = vld [vmem:[%s5464_s1 + $0x3] ss:$8 sm:$0x7] (!%p103_p2)  ;;  %v3691_v34 = vld [vmem:[%s4520_s14 + $0x558] sm:$0x7f] (!%p103_p2) }
   0xd   : > { %v151_v24 = vmul.f32 %v139_v12, %v131_v5  ;;  %v152_v25 = vmul.f32 %v143_v13, %v132_v9  ;;  %v153_v26 = vmul.f32 %v147_v14, %v133_v10  ;;  %v181_v27 = vmul.f32 %v3681_v11, %v169_v17  ;;  %v3693_v38 = vld [vmem:[%s4520_s14 + $0x568] sm:$0x7f]  ;;  %v3696_v46 = vld [vmem:[%s4520_s14 + $0x720] sm:$0x7f]  ;;  %v3698_v56 = vld [vmem:[%s4520_s14 + $0x730] sm:$0x7f] }
   0xe   : > { %v182_v30 = vmul.f32 %v3682_v15, %v173_v19  ;;  %v183_v31 = vmul.f32 %v3683_v16, %v177_v20  ;;  %v207_v32 = vrot.slane %v3689_v4, %v4536_v8  ;;  %v211_v33 = vmul.f32 %v3686_v18, %v199_v22  ;;  %v3699_v41 = vld [vmem:[%s5464_s1 + $0x4] ss:$8 sm:$0x7]  ;;  %v3705_v52 = vld [vmem:[%s5464_s1 + $0x5] ss:$8 sm:$0x7] }
   0xf   : > { %v184_v36 = vadd.f32 %v181_v27, %v151_v24  ;;  %v212_v37 = vmul.f32 %v3687_v21, %v203_v23  ;;  %v229_v39 = vrot.slane %v3694_v29, %v4532_v6  ;;  %v233_v40 = vrot.slane %v3694_v29, %v4534_v7  ;;  %v3697_v50 = vld [vmem:[%s4520_s14 + $0x728] sm:$0x7f]  ;;  %v3702_v58 = vld [vmem:[%s4520_s14 + $0x18] sm:$0x7f]  ;;  %v3703_v62 = vld [vmem:[%s4520_s14 + $0x20] sm:$0x7f] }
  0x10   : > { %v185_v42 = vadd.f32 %v182_v30, %v152_v25  ;;  %v186_v43 = vadd.f32 %v183_v31, %v153_v26  ;;  %v213_v44 = vmul.f32 %v3688_v28, %v207_v32  ;;  %v237_v45 = vrot.slane %v3694_v29, %v4536_v8  ;;  %v3712_v0 = vld [vmem:[%s5464_s1 + $0x6] ss:$8 sm:$0x7]  ;;  %v3719_v15 = vld [vmem:[%s5464_s1 + $0x7] ss:$8 sm:$0x7] }
  0x11   : > { %v214_v47 = vadd.f32 %v211_v33, %v184_v36  ;;  %v241_v48 = vmul.f32 %v3691_v34, %v229_v39  ;;  %v242_v49 = vmul.f32 %v3692_v35, %v233_v40  ;;  %v259_v51 = vrot.slane %v3699_v41, %v4532_v6  ;;  %v3704_v4 = vld [vmem:[%s4520_s14 + $0x28] sm:$0x7f]  ;;  %v3709_v9 = vld [vmem:[%s4520_s14 + $0x1e0] sm:$0x7f]  ;;  %v3711_v18 = vld [vmem:[%s4520_s14 + $0x1f0] sm:$0x7f] }
  0x12   : > { %v215_v53 = vadd.f32 %v212_v37, %v185_v42  ;;  %v216_v54 = vadd.f32 %v213_v44, %v186_v43  ;;  %v243_v55 = vmul.f32 %v3693_v38, %v237_v45  ;;  %v263_v57 = vrot.slane %v3699_v41, %v4534_v7  ;;  %v3710_v14 = vld [vmem:[%s4520_s14 + $0x1e8] sm:$0x7f]  ;;  %v3717_v30 = vld [vmem:[%s4520_s14 + $0x3b0] sm:$0x7f]  ;;  %v3718_v31 = vld [vmem:[%s4520_s14 + $0x3b8] sm:$0x7f] }
  0x13   : > { %v244_v59 = vadd.f32 %v241_v48, %v214_v47  ;;  %v267_v60 = vrot.slane %v3699_v41, %v4536_v8  ;;  %v271_v61 = vmul.f32 %v3696_v46, %v259_v51  ;;  %v290_v63 = vrot.slane %v3705_v52, %v4532_v6  ;;  %v3716_v25 = vld [vmem:[%s4520_s14 + $0x3a8] sm:$0x7f]  ;;  %v3723_v37 = vld [vmem:[%s4520_s14 + $0x570] sm:$0x7f]  ;;  %v3724_v42 = vld [vmem:[%s4520_s14 + $0x578] sm:$0x7f] }
  0x14   : > { %v245_v1 = vadd.f32 %v242_v49, %v215_v53  ;;  %v246_v2 = vadd.f32 %v243_v55, %v216_v54  ;;  %v272_v3 = vmul.f32 %v3697_v50, %v263_v57  ;;  %v294_v5 = vrot.slane %v3705_v52, %v4534_v7  ;;  %v3726_v26 = vld [vmem:[%s5464_s1 + $0x18] ss:$8 sm:$0x7]  ;;  %v3733_v38 = vld [vmem:[%s5464_s1 + $0x19] ss:$8 sm:$0x7] }
  0x15   : > { %v273_v10 = vmul.f32 %v3698_v56, %v267_v60  ;;  %v274_v11 = vadd.f32 %v271_v61, %v244_v59  ;;  %v298_v12 = vrot.slane %v3705_v52, %v4536_v8  ;;  %v302_v13 = vmul.f32 %v3702_v58, %v290_v63  ;;  %v3725_v47 = vld [vmem:[%s4520_s14 + $0x580] sm:$0x7f]  ;;  %v3730_v49 = vld [vmem:[%s4520_s14 + $0x738] sm:$0x7f]  ;;  %v3732_v59 = vld [vmem:[%s4520_s14 + $0x748] sm:$0x7f] }
  0x16   : > { %v275_v16 = vadd.f32 %v272_v3, %v245_v1  ;;  %v303_v17 = vmul.f32 %v3703_v62, %v294_v5  ;;  %v320_v19 = vrot.slane %v3712_v0, %v4532_v6  ;;  %v324_v20 = vrot.slane %v3712_v0, %v4534_v7  ;;  %v3731_v53 = vld [vmem:[%s4520_s14 + $0x740] sm:$0x7f]  ;;  %v3736_v61 = vld [vmem:[%s4520_s14 + $0x30] sm:$0x7f]  ;;  %s5467_s30 = smov (!%p121_p3, %s4703_s30), 7 }
  0x17   : > { %v276_v21 = vadd.f32 %v273_v10, %v246_v2  ;;  %v304_v22 = vmul.f32 %v3704_v4, %v298_v12  ;;  %v305_v23 = vadd.f32 %v302_v13, %v274_v11  ;;  %v328_v24 = vrot.slane %v3712_v0, %v4536_v8  ;;  %v3739_v55 = vld [vmem:[%s5464_s1 + $0x1a] ss:$8 sm:$0x7]  ;;  %v3746_v3 = vld [vmem:[%s5464_s1 + $0x1b] ss:$8 sm:$0x7] }
  0x18   : > { %v306_v27 = vadd.f32 %v303_v17, %v275_v16  ;;  %v332_v28 = vmul.f32 %v3709_v9, %v320_v19  ;;  %v333_v29 = vmul.f32 %v3710_v14, %v324_v20  ;;  %v350_v32 = vrot.slane %v3719_v15, %v4532_v6  ;;  %v3737_v2 = vld [vmem:[%s4520_s14 + $0x38] sm:$0x7f]  ;;  %v3738_v9 = vld [vmem:[%s4520_s14 + $0x40] sm:$0x7f]  ;;  %s4475_s15 = smul.u32 24, %s5467_s30 }
  0x19   : > { %v307_v33 = vadd.f32 %v304_v22, %v276_v21  ;;  %v334_v34 = vmul.f32 %v3711_v18, %v328_v24  ;;  %v354_v35 = vrot.slane %v3719_v15, %v4534_v7  ;;  %v358_v36 = vrot.slane %v3719_v15, %v4536_v8  ;;  %v3743_v16 = vld [vmem:[%s4520_s14 + $0x1f8] sm:$0x7f]  ;;  %v3744_v21 = vld [vmem:[%s4520_s14 + $0x200] sm:$0x7f]  ;;  %v3745_v22 = vld [vmem:[%s4520_s14 + $0x208] sm:$0x7f] }
  0x1a   : > { %v335_v39 = vadd.f32 %v332_v28, %v305_v23  ;;  %v336_v40 = vadd.f32 %v333_v29, %v306_v27  ;;  %v362_v41 = vmul.f32 %v3716_v25, %v350_v32  ;;  %v380_v43 = vrot.slane %v3726_v26, %v4532_v6  ;;  %v3753_v17 = vld [vmem:[%s5464_s1 + $0x1c] ss:$8 sm:$0x7]  ;;  %v3760_v29 = vld [vmem:[%s5464_s1 + $0x1d] ss:$8 sm:$0x7]  ;;  %s4776_s22 = scalar_lea.vmem %s5465_s2, %s4475_s15 }
  0x1b   : > { %v337_v44 = vadd.f32 %v334_v34, %v307_v33  ;;  %v363_v45 = vmul.f32 %v3717_v30, %v354_v35  ;;  %v364_v46 = vmul.f32 %v3718_v31, %v358_v36  ;;  %v384_v48 = vrot.slane %v3726_v26, %v4534_v7  ;;  %v3750_v28 = vld [vmem:[%s4520_s14 + $0x3c0] sm:$0x7f]  ;;  %v3751_v33 = vld [vmem:[%s4520_s14 + $0x3c8] sm:$0x7f] }
  0x1c   : > { %v365_v50 = vadd.f32 %v362_v41, %v335_v39  ;;  %v388_v51 = vrot.slane %v3726_v26, %v4536_v8  ;;  %v392_v52 = vmul.f32 %v3723_v37, %v380_v43  ;;  %v410_v54 = vrot.slane %v3733_v38, %v4532_v6 }
  0x1d   : > { %v366_v56 = vadd.f32 %v363_v45, %v336_v40  ;;  %v367_v57 = vadd.f32 %v364_v46, %v337_v44  ;;  %v393_v58 = vmul.f32 %v3724_v42, %v384_v48  ;;  %v414_v60 = vrot.slane %v3733_v38, %v4534_v7  ;;  %v3757_v40 = vld [vmem:[%s4520_s14 + $0x588] sm:$0x7f]  ;;  %v3758_v44 = vld [vmem:[%s4520_s14 + $0x590] sm:$0x7f] }
  0x1e   : > { %v394_v62 = vmul.f32 %v3725_v47, %v388_v51  ;;  %v395_v63 = vadd.f32 %v392_v52, %v365_v50  ;;  %v418_v0 = vrot.slane %v3733_v38, %v4536_v8  ;;  %v422_v1 = vmul.f32 %v3730_v49, %v410_v54  ;;  %v3752_v38 = vld [vmem:[%s4520_s14 + $0x3d0] sm:$0x7f]  ;;  %v3767_v46 = vld [vmem:[%s5464_s1 + $0x1e] ss:$8 sm:$0x7] }
  0x1f   : > { %v396_v4 = vadd.f32 %v393_v58, %v366_v56  ;;  %v423_v5 = vmul.f32 %v3731_v53, %v414_v60  ;;  %v441_v10 = vrot.slane %v3739_v55, %v4532_v6  ;;  %v445_v11 = vrot.slane %v3739_v55, %v4534_v7  ;;  %v3759_v50 = vld [vmem:[%s4520_s14 + $0x598] sm:$0x7f]  ;;  %v3764_v52 = vld [vmem:[%s4520_s14 + $0x750] sm:$0x7f] }
  0x20   : > { %v397_v12 = vadd.f32 %v394_v62, %v367_v57  ;;  %v424_v13 = vmul.f32 %v3732_v59, %v418_v0  ;;  %v425_v14 = vadd.f32 %v422_v1, %v395_v63  ;;  %v449_v15 = vrot.slane %v3739_v55, %v4536_v8  ;;  %v3765_v57 = vld [vmem:[%s4520_s14 + $0x758] sm:$0x7f]  ;;  %v3773_v58 = vld [vmem:[%s5464_s1 + $0x1f] ss:$8 sm:$0x7] }
  0x21   : > { %v426_v18 = vadd.f32 %v423_v5, %v396_v4  ;;  %v453_v19 = vmul.f32 %v3736_v61, %v441_v10  ;;  %v454_v20 = vmul.f32 %v3737_v2, %v445_v11  ;;  %v471_v23 = vrot.slane %v3746_v3, %v4532_v6  ;;  %v3766_v61 = vld [vmem:[%s4520_s14 + $0x760] sm:$0x7f]  ;;  %v3770_v4 = vld [vmem:[%s4520_s14 + $0x48] sm:$0x7f] }
  0x22   : > { %v427_v24 = vadd.f32 %v424_v13, %v397_v12  ;;  %v455_v25 = vmul.f32 %v3738_v9, %v449_v15  ;;  %v475_v26 = vrot.slane %v3746_v3, %v4534_v7  ;;  %v479_v27 = vrot.slane %v3746_v3, %v4536_v8  ;;  %v3780_v5 = vld [vmem:[%s5464_s1 + $0x30] ss:$8 sm:$0x7] }
  0x23   : > { %v456_v30 = vadd.f32 %v453_v19, %v425_v14  ;;  %v457_v31 = vadd.f32 %v454_v20, %v426_v18  ;;  %v483_v32 = vmul.f32 %v3743_v16, %v471_v23  ;;  %v501_v34 = vrot.slane %v3753_v17, %v4532_v6  ;;  %v3771_v12 = vld [vmem:[%s4520_s14 + $0x50] sm:$0x7f]  ;;  %v3772_v13 = vld [vmem:[%s4520_s14 + $0x58] sm:$0x7f] }
  0x24   : > { %v458_v35 = vadd.f32 %v455_v25, %v427_v24  ;;  %v484_v36 = vmul.f32 %v3744_v21, %v475_v26  ;;  %v485_v37 = vmul.f32 %v3745_v22, %v479_v27  ;;  %v505_v39 = vrot.slane %v3753_v17, %v4534_v7  ;;  %v3777_v19 = vld [vmem:[%s4520_s14 + $0x210] sm:$0x7f]  ;;  %v3778_v24 = vld [vmem:[%s4520_s14 + $0x218] sm:$0x7f] }
  0x25   : > { %v486_v41 = vadd.f32 %v483_v32, %v456_v30  ;;  %v509_v42 = vrot.slane %v3753_v17, %v4536_v8  ;;  %v513_v43 = vmul.f32 %v3750_v28, %v501_v34  ;;  %v531_v45 = vrot.slane %v3760_v29, %v4532_v6  ;;  %v3787_v20 = vld [vmem:[%s5464_s1 + $0x31] ss:$8 sm:$0x7] }
  0x26   : > { %v487_v47 = vadd.f32 %v484_v36, %v457_v31  ;;  %v488_v48 = vadd.f32 %v485_v37, %v458_v35  ;;  %v514_v49 = vmul.f32 %v3751_v33, %v505_v39  ;;  %v535_v51 = vrot.slane %v3760_v29, %v4534_v7  ;;  %v3784_v31 = vld [vmem:[%s4520_s14 + $0x3d8] sm:$0x7f]  ;;  %v3785_v35 = vld [vmem:[%s4520_s14 + $0x3e0] sm:$0x7f] }
  0x27   : > { %v515_v53 = vmul.f32 %v3752_v38, %v509_v42  ;;  %v516_v54 = vadd.f32 %v513_v43, %v486_v41  ;;  %v539_v55 = vrot.slane %v3760_v29, %v4536_v8  ;;  %v543_v56 = vmul.f32 %v3757_v40, %v531_v45  ;;  %v3779_v29 = vld [vmem:[%s4520_s14 + $0x220] sm:$0x7f]  ;;  %v3786_v41 = vld [vmem:[%s4520_s14 + $0x3e8] sm:$0x7f] }
  0x28   : > { %v517_v59 = vadd.f32 %v514_v49, %v487_v47  ;;  %v544_v60 = vmul.f32 %v3758_v44, %v535_v51  ;;  %v561_v62 = vrot.slane %v3767_v46, %v4532_v6  ;;  %v565_v63 = vrot.slane %v3767_v46, %v4534_v7  ;;  %v3794_v37 = vld [vmem:[%s5464_s1 + $0x32] ss:$8 sm:$0x7]  ;;  %v3801_v49 = vld [vmem:[%s5464_s1 + $0x33] ss:$8 sm:$0x7] }
  0x29   : > { %v518_v0 = vadd.f32 %v515_v53, %v488_v48  ;;  %v545_v1 = vmul.f32 %v3759_v50, %v539_v55  ;;  %v546_v2 = vadd.f32 %v543_v56, %v516_v54  ;;  %v569_v3 = vrot.slane %v3767_v46, %v4536_v8  ;;  %v3791_v43 = vld [vmem:[%s4520_s14 + $0x5a0] sm:$0x7f]  ;;  %v3792_v48 = vld [vmem:[%s4520_s14 + $0x5a8] sm:$0x7f] }
  0x2a   : > { %v547_v9 = vadd.f32 %v544_v60, %v517_v59  ;;  %v573_v10 = vmul.f32 %v3764_v52, %v561_v62  ;;  %v574_v11 = vmul.f32 %v3765_v57, %v565_v63  ;;  %v592_v14 = vrot.slane %v3773_v58, %v4532_v6  ;;  %v3793_v52 = vld [vmem:[%s4520_s14 + $0x5b0] sm:$0x7f]  ;;  %v3798_v59 = vld [vmem:[%s4520_s14 + $0x768] sm:$0x7f] }
  0x2b   : > { %v548_v15 = vadd.f32 %v545_v1, %v518_v0  ;;  %v575_v16 = vmul.f32 %v3766_v61, %v569_v3  ;;  %v596_v17 = vrot.slane %v3773_v58, %v4534_v7  ;;  %v600_v18 = vrot.slane %v3773_v58, %v4536_v8  ;;  %v3807_v60 = vld [vmem:[%s5464_s1 + $0x34] ss:$8 sm:$0x7] }
  0x2c   : > { %v576_v21 = vadd.f32 %v573_v10, %v546_v2  ;;  %v577_v22 = vadd.f32 %v574_v11, %v547_v9  ;;  %v604_v23 = vmul.f32 %v3770_v4, %v592_v14  ;;  %v622_v25 = vrot.slane %v3780_v5, %v4532_v6  ;;  %v3799_v0 = vld [vmem:[%s4520_s14 + $0x770] sm:$0x7f]  ;;  %v3800_v1 = vld [vmem:[%s4520_s14 + $0x778] sm:$0x7f]  ;;  %v3804_v10 = vld [vmem:[%s4520_s14 + $0x60] sm:$0x7f] }
  0x2d   : > { %v578_v26 = vadd.f32 %v575_v16, %v548_v15  ;;  %v605_v27 = vmul.f32 %v3771_v12, %v596_v17  ;;  %v606_v28 = vmul.f32 %v3772_v13, %v600_v18  ;;  %v626_v30 = vrot.slane %v3780_v5, %v4534_v7  ;;  %v3814_v11 = vld [vmem:[%s5464_s1 + $0x35] ss:$8 sm:$0x7]  ;;  %v3805_v15 = vld [vmem:[%s4520_s14 + $0x68] sm:$0x7f] }
  0x2e   : > { %v607_v32 = vadd.f32 %v604_v23, %v576_v21  ;;  %v630_v33 = vrot.slane %v3780_v5, %v4536_v8  ;;  %v634_v34 = vmul.f32 %v3777_v19, %v622_v25  ;;  %v652_v36 = vrot.slane %v3787_v20, %v4532_v6 }
  0x2f   : > { %v608_v38 = vadd.f32 %v605_v27, %v577_v22  ;;  %v609_v39 = vadd.f32 %v606_v28, %v578_v26  ;;  %v635_v40 = vmul.f32 %v3778_v24, %v626_v30  ;;  %v656_v42 = vrot.slane %v3787_v20, %v4534_v7  ;;  %v3811_v22 = vld [vmem:[%s4520_s14 + $0x228] sm:$0x7f]  ;;  %v3812_v26 = vld [vmem:[%s4520_s14 + $0x230] sm:$0x7f] }
  0x30   : > { %v636_v44 = vmul.f32 %v3779_v29, %v630_v33  ;;  %v637_v45 = vadd.f32 %v634_v34, %v607_v32  ;;  %v660_v46 = vrot.slane %v3787_v20, %v4536_v8  ;;  %v664_v47 = vmul.f32 %v3784_v31, %v652_v36  ;;  %v3806_v20 = vld [vmem:[%s4520_s14 + $0x70] sm:$0x7f]  ;;  %v3813_v32 = vld [vmem:[%s4520_s14 + $0x238] sm:$0x7f] }
  0x31   : > { %v638_v50 = vadd.f32 %v635_v40, %v608_v38  ;;  %v665_v51 = vmul.f32 %v3785_v35, %v656_v42  ;;  %v682_v53 = vrot.slane %v3794_v37, %v4532_v6  ;;  %v686_v54 = vrot.slane %v3794_v37, %v4534_v7  ;;  %v3821_v28 = vld [vmem:[%s5464_s1 + $0x36] ss:$8 sm:$0x7]  ;;  %v3828_v40 = vld [vmem:[%s5464_s1 + $0x37] ss:$8 sm:$0x7] }
  0x32   : > { %v639_v55 = vadd.f32 %v636_v44, %v609_v39  ;;  %v666_v56 = vmul.f32 %v3786_v41, %v660_v46  ;;  %v667_v57 = vadd.f32 %v664_v47, %v637_v45  ;;  %v690_v58 = vrot.slane %v3794_v37, %v4536_v8  ;;  %v3818_v34 = vld [vmem:[%s4520_s14 + $0x3f0] sm:$0x7f]  ;;  %v3819_v39 = vld [vmem:[%s4520_s14 + $0x3f8] sm:$0x7f] }
  0x33   : > { %v668_v61 = vadd.f32 %v665_v51, %v638_v50  ;;  %v694_v62 = vmul.f32 %v3791_v43, %v682_v53  ;;  %v695_v63 = vmul.f32 %v3792_v48, %v686_v54  ;;  %v712_v2 = vrot.slane %v3801_v49, %v4532_v6  ;;  %v3820_v43 = vld [vmem:[%s4520_s14 + $0x400] sm:$0x7f]  ;;  %v3825_v50 = vld [vmem:[%s4520_s14 + $0x5b8] sm:$0x7f] }
  0x34   : > { %v669_v3 = vadd.f32 %v666_v56, %v639_v55  ;;  %v696_v4 = vmul.f32 %v3793_v52, %v690_v58  ;;  %v716_v5 = vrot.slane %v3801_v49, %v4534_v7  ;;  %v720_v9 = vrot.slane %v3801_v49, %v4536_v8  ;;  %v3835_v51 = vld [vmem:[%s5464_s1 + $0x48] ss:$8 sm:$0x7]  ;;  %v3826_v55 = vld [vmem:[%s4520_s14 + $0x5c0] sm:$0x7f] }
  0x35   : > { %v697_v12 = vadd.f32 %v694_v62, %v667_v57  ;;  %v698_v13 = vadd.f32 %v695_v63, %v668_v61  ;;  %v724_v14 = vmul.f32 %v3798_v59, %v712_v2  ;;  %v743_v16 = vrot.slane %v3807_v60, %v4532_v6  ;;  %v3827_v56 = vld [vmem:[%s4520_s14 + $0x5c8] sm:$0x7f]  ;;  %v3832_v62 = vld [vmem:[%s4520_s14 + $0x780] sm:$0x7f] }
  0x36   : > { %v699_v17 = vadd.f32 %v696_v4, %v669_v3  ;;  %v725_v18 = vmul.f32 %v3799_v0, %v716_v5  ;;  %v726_v19 = vmul.f32 %v3800_v1, %v720_v9  ;;  %v747_v21 = vrot.slane %v3807_v60, %v4534_v7  ;;  %v894_v63 = vld [vmem:[%s5464_s1] ss:$8 sm:$0x7] }
  0x37   : > { %v727_v23 = vadd.f32 %v724_v14, %v697_v12  ;;  %v751_v24 = vrot.slane %v3807_v60, %v4536_v8  ;;  %v755_v25 = vmul.f32 %v3804_v10, %v743_v16  ;;  %v773_v27 = vrot.slane %v3814_v11, %v4532_v6  ;;  %v3833_v3 = vld [vmem:[%s4520_s14 + $0x788] sm:$0x7f] }
  0x38   : > { %v728_v29 = vadd.f32 %v725_v18, %v698_v13  ;;  %v729_v30 = vadd.f32 %v726_v19, %v699_v17  ;;  %v756_v31 = vmul.f32 %v3805_v15, %v747_v21  ;;  %v777_v33 = vrot.slane %v3814_v11, %v4534_v7  ;;  %v3838_v13 = vld [vmem:[%s4520_s14 + $0x30] sm:$0x7f]  ;;  %v3839_v17 = vld [vmem:[%s4520_s14 + $0x38] sm:$0x7f] }
  0x39   : > { %v757_v35 = vmul.f32 %v3806_v20, %v751_v24  ;;  %v758_v36 = vadd.f32 %v755_v25, %v727_v23  ;;  %v781_v37 = vrot.slane %v3814_v11, %v4536_v8  ;;  %v785_v38 = vmul.f32 %v3811_v22, %v773_v27  ;;  %v3834_v11 = vld [vmem:[%s4520_s14 + $0x790] sm:$0x7f]  ;;  %v3840_v23 = vld [vmem:[%s4520_s14 + $0x40] sm:$0x7f] }
  0x3a   : > { %v759_v41 = vadd.f32 %v756_v31, %v728_v29  ;;  %v786_v42 = vmul.f32 %v3812_v26, %v777_v33  ;;  %v803_v44 = vrot.slane %v3821_v28, %v4532_v6  ;;  %v807_v45 = vrot.slane %v3821_v28, %v4534_v7  ;;  %v3847_v19 = vld [vmem:[%s5464_s1 + $0x1] ss:$8 sm:$0x7]  ;;  %v3854_v25 = vld [vmem:[%s5464_s1 + $0x2] ss:$8 sm:$0x7] }
  0x3b   : > { %v760_v46 = vadd.f32 %v757_v35, %v729_v30  ;;  %v787_v47 = vmul.f32 %v3813_v32, %v781_v37  ;;  %v788_v48 = vadd.f32 %v785_v38, %v758_v36  ;;  %v811_v49 = vrot.slane %v3821_v28, %v4536_v8  ;;  %v3844_v30 = vld [vmem:[%s4520_s14 + $0x1f8] sm:$0x7f]  ;;  %v3845_v31 = vld [vmem:[%s4520_s14 + $0x200] sm:$0x7f]  ;;  %v3846_v32 = vld [vmem:[%s4520_s14 + $0x208] sm:$0x7f] }
  0x3c   : > { %v789_v52 = vadd.f32 %v786_v42, %v759_v41  ;;  %v815_v53 = vmul.f32 %v3818_v34, %v803_v44  ;;  %v816_v54 = vmul.f32 %v3819_v39, %v807_v45  ;;  %v833_v57 = vrot.slane %v3828_v40, %v4532_v6  ;;  %v3851_v37 = vld [vmem:[%s4520_s14 + $0x3c0] sm:$0x7f]  ;;  %v3852_v42 = vld [vmem:[%s4520_s14 + $0x3c8] sm:$0x7f] }
  0x3d   : > { %v790_v58 = vadd.f32 %v787_v47, %v760_v46  ;;  %v817_v59 = vmul.f32 %v3820_v43, %v811_v49  ;;  %v837_v60 = vrot.slane %v3828_v40, %v4534_v7  ;;  %v841_v61 = vrot.slane %v3828_v40, %v4536_v8  ;;  %v3861_v38 = vld [vmem:[%s5464_s1 + $0x3] ss:$8 sm:$0x7] }
  0x3e   : > { %v818_v0 = vadd.f32 %v815_v53, %v788_v48  ;;  %v819_v1 = vadd.f32 %v816_v54, %v789_v52  ;;  %v845_v2 = vmul.f32 %v3825_v50, %v833_v57  ;;  %v863_v4 = vrot.slane %v3835_v51, %v4532_v6  ;;  %v3853_v43 = vld [vmem:[%s4520_s14 + $0x3d0] sm:$0x7f]  ;;  %v3858_v49 = vld [vmem:[%s4520_s14 + $0x588] sm:$0x7f] }
  0x3f   : > { %v820_v5 = vadd.f32 %v817_v59, %v790_v58  ;;  %v846_v9 = vmul.f32 %v3826_v55, %v837_v60  ;;  %v847_v10 = vmul.f32 %v3827_v56, %v841_v61  ;;  %v867_v12 = vrot.slane %v3835_v51, %v4534_v7  ;;  %v3859_v50 = vld [vmem:[%s4520_s14 + $0x590] sm:$0x7f]  ;;  %v3860_v60 = vld [vmem:[%s4520_s14 + $0x598] sm:$0x7f] }
  0x40   : > { %v848_v14 = vadd.f32 %v845_v2, %v818_v0  ;;  %v871_v15 = vrot.slane %v3835_v51, %v4536_v8  ;;  %v875_v16 = vmul.f32 %v3832_v62, %v863_v4  ;;  %v899_v18 = vrot.slane %v894_v63, %v4532_v6  ;;  %v3868_v55 = vld [vmem:[%s5464_s1 + $0x4] ss:$8 sm:$0x7]  ;;  %v3875_v61 = vld [vmem:[%s5464_s1 + $0x5] ss:$8 sm:$0x7] }
  0x41   : > { %v849_v20 = vadd.f32 %v846_v9, %v819_v1  ;;  %v850_v21 = vadd.f32 %v847_v10, %v820_v5  ;;  %v876_v22 = vmul.f32 %v3833_v3, %v867_v12  ;;  %v903_v24 = vrot.slane %v894_v63, %v4534_v7  ;;  %v3865_v2 = vld [vmem:[%s4520_s14 + $0x750] sm:$0x7f]  ;;  %v3866_v3 = vld [vmem:[%s4520_s14 + $0x758] sm:$0x7f]  ;;  %v3867_v9 = vld [vmem:[%s4520_s14 + $0x760] sm:$0x7f] }
  0x42   : > { %v877_v26 = vmul.f32 %v3834_v11, %v871_v15  ;;  %v878_v27 = vadd.f32 %v875_v16, %v848_v14  ;;  %v907_v28 = vrot.slane %v894_v63, %v4536_v8  ;;  %v911_v29 = vmul.f32 %v3838_v13, %v899_v18  ;;  %v3872_v15 = vld [vmem:[%s4520_s14 + $0x48] sm:$0x7f] }
  0x43   : > { %v879_v33 = vadd.f32 %v876_v22, %v849_v20  ;;  %v912_v34 = vmul.f32 %v3839_v17, %v903_v24  ;;  %v928_v35 = vrot.slane %v3847_v19, %v4532_v6  ;;  %v932_v36 = vrot.slane %v3847_v19, %v4534_v7  ;;  %v3883_v17 = vld [vmem:[%s5464_s1 + $0x6] ss:$8 sm:$0x7] }
  0x44   : > { %v880_v39 = vadd.f32 %v877_v26, %v850_v21  ;;  %881 = vst [vmem:[%s4776_s22] sm:$0x7f] %v878_v27  ;;  %v913_v40 = vmul.f32 %v3840_v23, %v907_v28  ;;  %v936_v41 = vrot.slane %v3847_v19, %v4536_v8  ;;  %v957_v44 = vrot.slane %v3854_v25, %v4532_v6  ;;  %v3873_v22 = vld [vmem:[%s4520_s14 + $0x50] sm:$0x7f]  ;;  %v3874_v23 = vld [vmem:[%s4520_s14 + $0x58] sm:$0x7f] }
  0x45   : > { %882 = vst [vmem:[%s4776_s22 + $0x8] sm:$0x7f] %v879_v33  ;;  %v940_v45 = vmul.f32 %v3844_v30, %v928_v35  ;;  %v941_v46 = vmul.f32 %v3845_v31, %v932_v36  ;;  %v961_v47 = vrot.slane %v3854_v25, %v4534_v7  ;;  %v965_v48 = vrot.slane %v3854_v25, %v4536_v8  ;;  %v3880_v28 = vld [vmem:[%s4520_s14 + $0x210] sm:$0x7f]  ;;  %v3881_v33 = vld [vmem:[%s4520_s14 + $0x218] sm:$0x7f] }
  0x46   : > { %884 = vst.msk [vmem:[%s4776_s22 + $0x10] sm:$0x7f] %vm883_vm0, %v880_v39  ;;  %v942_v51 = vmul.f32 %v3846_v32, %v936_v41  ;;  %v969_v52 = vmul.f32 %v3851_v37, %v957_v44  ;;  %v986_v53 = vrot.slane %v3861_v38, %v4532_v6  ;;  %v990_v54 = vrot.slane %v3861_v38, %v4534_v7  ;;  %v3889_v44 = vld [vmem:[%s4520_s14 + $0x3e0] sm:$0x7f] }
  0x47   : > { %v943_v56 = vadd.f32 %v940_v45, %v911_v29  ;;  %v944_v57 = vadd.f32 %v941_v46, %v912_v34  ;;  %v970_v58 = vmul.f32 %v3852_v42, %v961_v47  ;;  %v971_v59 = vmul.f32 %v3853_v43, %v965_v48  ;;  %v3891_v29 = vld [vmem:[%s5464_s1 + $0x7] ss:$8 sm:$0x7]  ;;  %v3899_v46 = vld [vmem:[%s5464_s1 + $0x18] ss:$8 sm:$0x7] }
  0x48   : > { %v945_v62 = vadd.f32 %v942_v51, %v913_v40  ;;  %v994_v63 = vrot.slane %v3861_v38, %v4536_v8  ;;  %v998_v0 = vmul.f32 %v3858_v49, %v986_v53  ;;  %v999_v1 = vmul.f32 %v3859_v50, %v990_v54  ;;  %v3882_v38 = vld [vmem:[%s4520_s14 + $0x220] sm:$0x7f]  ;;  %v3888_v40 = vld [vmem:[%s4520_s14 + $0x3d8] sm:$0x7f]  ;;  %v3890_v50 = vld [vmem:[%s4520_s14 + $0x3e8] sm:$0x7f] }
  0x49   : > { %v972_v4 = vadd.f32 %v969_v52, %v943_v56  ;;  %v973_v5 = vadd.f32 %v970_v58, %v944_v57  ;;  %v1015_v10 = vrot.slane %v3868_v55, %v4532_v6  ;;  %v1019_v11 = vrot.slane %v3868_v55, %v4534_v7  ;;  %v3896_v52 = vld [vmem:[%s4520_s14 + $0x5a0] sm:$0x7f]  ;;  %v3897_v57 = vld [vmem:[%s4520_s14 + $0x5a8] sm:$0x7f] }
  0x4a   : > { %v974_v12 = vadd.f32 %v971_v59, %v945_v62  ;;  %v1000_v13 = vmul.f32 %v3860_v60, %v994_v63  ;;  %v1023_v14 = vrot.slane %v3868_v55, %v4536_v8  ;;  %v1045_v16 = vrot.slane %v3875_v61, %v4532_v6  ;;  %v3907_v58 = vld [vmem:[%s5464_s1 + $0x19] ss:$8 sm:$0x7] }
  0x4b   : > { %v1001_v18 = vadd.f32 %v998_v0, %v972_v4  ;;  %v1002_v19 = vadd.f32 %v999_v1, %v973_v5  ;;  %v1027_v20 = vmul.f32 %v3865_v2, %v1015_v10  ;;  %v1028_v21 = vmul.f32 %v3866_v3, %v1019_v11  ;;  %v3904_v4 = vld [vmem:[%s4520_s14 + $0x768] sm:$0x7f] }
  0x4c   : > { %v1003_v24 = vadd.f32 %v1000_v13, %v974_v12  ;;  %v1029_v25 = vmul.f32 %v3867_v9, %v1023_v14  ;;  %v1049_v26 = vrot.slane %v3875_v61, %v4534_v7  ;;  %v1053_v27 = vrot.slane %v3875_v61, %v4536_v8  ;;  %v3898_v61 = vld [vmem:[%s4520_s14 + $0x5b0] sm:$0x7f]  ;;  %v3914_v5 = vld [vmem:[%s5464_s1 + $0x1a] ss:$8 sm:$0x7] }
  0x4d   : > { %v1030_v30 = vadd.f32 %v1027_v20, %v1001_v18  ;;  %v1031_v31 = vadd.f32 %v1028_v21, %v1002_v19  ;;  %v1057_v32 = vmul.f32 %v3872_v15, %v1045_v16  ;;  %v1074_v34 = vrot.slane %v3883_v17, %v4532_v6  ;;  %v3905_v12 = vld [vmem:[%s4520_s14 + $0x770] sm:$0x7f]  ;;  %v3906_v13 = vld [vmem:[%s4520_s14 + $0x778] sm:$0x7f]  ;;  %v3911_v19 = vld [vmem:[%s4520_s14 + $0x60] sm:$0x7f] }
  0x4e   : > { %v1032_v35 = vadd.f32 %v1029_v25, %v1003_v24  ;;  %v1058_v36 = vmul.f32 %v3873_v22, %v1049_v26  ;;  %v1059_v37 = vmul.f32 %v3874_v23, %v1053_v27  ;;  %v1078_v39 = vrot.slane %v3883_v17, %v4534_v7  ;;  %v3922_v20 = vld [vmem:[%s5464_s1 + $0x1b] ss:$8 sm:$0x7] }
  0x4f   : > { %v1060_v41 = vadd.f32 %v1057_v32, %v1030_v30  ;;  %v1082_v42 = vrot.slane %v3883_v17, %v4536_v8  ;;  %v1086_v43 = vmul.f32 %v3880_v28, %v1074_v34  ;;  %v1103_v45 = vrot.slane %v3891_v29, %v4532_v6  ;;  %v3912_v24 = vld [vmem:[%s4520_s14 + $0x68] sm:$0x7f] }
  0x50   : > { %v1061_v47 = vadd.f32 %v1058_v36, %v1031_v31  ;;  %v1062_v48 = vadd.f32 %v1059_v37, %v1032_v35  ;;  %v1087_v49 = vmul.f32 %v3881_v33, %v1078_v39  ;;  %v1107_v51 = vrot.slane %v3891_v29, %v4534_v7  ;;  %v3919_v31 = vld [vmem:[%s4520_s14 + $0x228] sm:$0x7f]  ;;  %v3920_v35 = vld [vmem:[%s4520_s14 + $0x230] sm:$0x7f] }
  0x51   : > { %v1088_v53 = vmul.f32 %v3882_v38, %v1082_v42  ;;  %v1089_v54 = vadd.f32 %v1086_v43, %v1060_v41  ;;  %v1111_v55 = vrot.slane %v3891_v29, %v4536_v8  ;;  %v1115_v56 = vmul.f32 %v3888_v40, %v1103_v45  ;;  %v3913_v29 = vld [vmem:[%s4520_s14 + $0x70] sm:$0x7f]  ;;  %v3930_v37 = vld [vmem:[%s5464_s1 + $0x1c] ss:$8 sm:$0x7] }
  0x52   : > { %v1090_v59 = vadd.f32 %v1087_v49, %v1061_v47  ;;  %v1116_v60 = vmul.f32 %v3889_v44, %v1107_v51  ;;  %v1132_v62 = vrot.slane %v3899_v46, %v4532_v6  ;;  %v1136_v63 = vrot.slane %v3899_v46, %v4534_v7  ;;  %v3921_v41 = vld [vmem:[%s4520_s14 + $0x238] sm:$0x7f]  ;;  %v3927_v43 = vld [vmem:[%s4520_s14 + $0x3f0] sm:$0x7f] }
  0x53   : > { %v1091_v0 = vadd.f32 %v1088_v53, %v1062_v48  ;;  %v1117_v1 = vmul.f32 %v3890_v50, %v1111_v55  ;;  %v1118_v2 = vadd.f32 %v1115_v56, %v1089_v54  ;;  %v1140_v3 = vrot.slane %v3899_v46, %v4536_v8  ;;  %v3928_v48 = vld [vmem:[%s4520_s14 + $0x3f8] sm:$0x7f] }
  0x54   : > { %v1119_v9 = vadd.f32 %v1116_v60, %v1090_v59  ;;  %v1144_v10 = vmul.f32 %v3896_v52, %v1132_v62  ;;  %v1145_v11 = vmul.f32 %v3897_v57, %v1136_v63  ;;  %v1161_v14 = vrot.slane %v3907_v58, %v4532_v6  ;;  %v3938_v49 = vld [vmem:[%s5464_s1 + $0x1d] ss:$8 sm:$0x7]  ;;  %v3946_v60 = vld [vmem:[%s5464_s1 + $0x1e] ss:$8 sm:$0x7] }
  0x55   : > { %v1120_v15 = vadd.f32 %v1117_v1, %v1091_v0  ;;  %v1146_v16 = vmul.f32 %v3898_v61, %v1140_v3  ;;  %v1165_v17 = vrot.slane %v3907_v58, %v4534_v7  ;;  %v1169_v18 = vrot.slane %v3907_v58, %v4536_v8  ;;  %v3929_v52 = vld [vmem:[%s4520_s14 + $0x400] sm:$0x7f]  ;;  %v3935_v59 = vld [vmem:[%s4520_s14 + $0x5b8] sm:$0x7f]  ;;  %v3937_v1 = vld [vmem:[%s4520_s14 + $0x5c8] sm:$0x7f] }
  0x56   : > { %v1147_v21 = vadd.f32 %v1144_v10, %v1118_v2  ;;  %v1148_v22 = vadd.f32 %v1145_v11, %v1119_v9  ;;  %v1173_v23 = vmul.f32 %v3904_v4, %v1161_v14  ;;  %v1191_v25 = vrot.slane %v3914_v5, %v4532_v6  ;;  %v3936_v0 = vld [vmem:[%s4520_s14 + $0x5c0] sm:$0x7f]  ;;  %v3953_v11 = vld [vmem:[%s5464_s1 + $0x1f] ss:$8 sm:$0x7] }
  0x57   : > { %v1149_v26 = vadd.f32 %v1146_v16, %v1120_v15  ;;  %v1174_v27 = vmul.f32 %v3905_v12, %v1165_v17  ;;  %v1175_v28 = vmul.f32 %v3906_v13, %v1169_v18  ;;  %v1195_v30 = vrot.slane %v3914_v5, %v4534_v7  ;;  %v3943_v10 = vld [vmem:[%s4520_s14 + $0x780] sm:$0x7f]  ;;  %v3944_v15 = vld [vmem:[%s4520_s14 + $0x788] sm:$0x7f] }
  0x58   : > { %v1176_v32 = vadd.f32 %v1173_v23, %v1147_v21  ;;  %v1199_v33 = vrot.slane %v3914_v5, %v4536_v8  ;;  %v1203_v34 = vmul.f32 %v3911_v19, %v1191_v25  ;;  %v1220_v36 = vrot.slane %v3922_v20, %v4532_v6 }
  0x59   : > { %v1177_v38 = vadd.f32 %v1174_v27, %v1148_v22  ;;  %v1178_v39 = vadd.f32 %v1175_v28, %v1149_v26  ;;  %v1204_v40 = vmul.f32 %v3912_v24, %v1195_v30  ;;  %v1224_v42 = vrot.slane %v3922_v20, %v4534_v7  ;;  %v3950_v22 = vld [vmem:[%s4520_s14 + $0x78] sm:$0x7f]  ;;  %v3951_v26 = vld [vmem:[%s4520_s14 + $0x80] sm:$0x7f] }
  0x5a   : > { %v1205_v44 = vmul.f32 %v3913_v29, %v1199_v33  ;;  %v1206_v45 = vadd.f32 %v1203_v34, %v1176_v32  ;;  %v1228_v46 = vrot.slane %v3922_v20, %v4536_v8  ;;  %v1232_v47 = vmul.f32 %v3919_v31, %v1220_v36  ;;  %v3945_v20 = vld [vmem:[%s4520_s14 + $0x790] sm:$0x7f]  ;;  %v3952_v32 = vld [vmem:[%s4520_s14 + $0x88] sm:$0x7f]  ;;  %v3958_v34 = vld [vmem:[%s4520_s14 + $0x240] sm:$0x7f] }
  0x5b   : > { %v1207_v50 = vadd.f32 %v1204_v40, %v1177_v38  ;;  %v1233_v51 = vmul.f32 %v3920_v35, %v1224_v42  ;;  %v1249_v53 = vrot.slane %v3930_v37, %v4532_v6  ;;  %v1253_v54 = vrot.slane %v3930_v37, %v4534_v7  ;;  %v3961_v28 = vld [vmem:[%s5464_s1 + $0x30] ss:$8 sm:$0x7]  ;;  %v3969_v40 = vld [vmem:[%s5464_s1 + $0x31] ss:$8 sm:$0x7] }
  0x5c   : > { %v1208_v55 = vadd.f32 %v1205_v44, %v1178_v39  ;;  %v1234_v56 = vmul.f32 %v3921_v41, %v1228_v46  ;;  %v1235_v57 = vadd.f32 %v1232_v47, %v1206_v45  ;;  %v1257_v58 = vrot.slane %v3930_v37, %v4536_v8  ;;  %v3959_v39 = vld [vmem:[%s4520_s14 + $0x248] sm:$0x7f] }
  0x5d   : > { %v1236_v61 = vadd.f32 %v1233_v51, %v1207_v50  ;;  %v1261_v62 = vmul.f32 %v3927_v43, %v1249_v53  ;;  %v1262_v63 = vmul.f32 %v3928_v48, %v1253_v54  ;;  %v1278_v2 = vrot.slane %v3938_v49, %v4532_v6  ;;  %v3960_v43 = vld [vmem:[%s4520_s14 + $0x250] sm:$0x7f]  ;;  %v3966_v50 = vld [vmem:[%s4520_s14 + $0x408] sm:$0x7f] }
  0x5e   : > { %v1237_v3 = vadd.f32 %v1234_v56, %v1208_v55  ;;  %v1263_v4 = vmul.f32 %v3929_v52, %v1257_v58  ;;  %v1282_v5 = vrot.slane %v3938_v49, %v4534_v7  ;;  %v1286_v9 = vrot.slane %v3938_v49, %v4536_v8  ;;  %v3977_v51 = vld [vmem:[%s5464_s1 + $0x32] ss:$8 sm:$0x7] }
  0x5f   : > { %v1264_v12 = vadd.f32 %v1261_v62, %v1235_v57  ;;  %v1265_v13 = vadd.f32 %v1262_v63, %v1236_v61  ;;  %v1290_v14 = vmul.f32 %v3935_v59, %v1278_v2  ;;  %v1307_v16 = vrot.slane %v3946_v60, %v4532_v6  ;;  %v3967_v55 = vld [vmem:[%s4520_s14 + $0x410] sm:$0x7f]  ;;  %v3968_v56 = vld [vmem:[%s4520_s14 + $0x418] sm:$0x7f] }
  0x60   : > { %v1266_v17 = vadd.f32 %v1263_v4, %v1237_v3  ;;  %v1291_v18 = vmul.f32 %v3936_v0, %v1282_v5  ;;  %v1292_v19 = vmul.f32 %v3937_v1, %v1286_v9  ;;  %v1311_v21 = vrot.slane %v3946_v60, %v4534_v7  ;;  %v3974_v62 = vld [vmem:[%s4520_s14 + $0x5d0] sm:$0x7f]  ;;  %v3975_v3 = vld [vmem:[%s4520_s14 + $0x5d8] sm:$0x7f] }
  0x61   : > { %v1293_v23 = vadd.f32 %v1290_v14, %v1264_v12  ;;  %v1315_v24 = vrot.slane %v3946_v60, %v4536_v8  ;;  %v1319_v25 = vmul.f32 %v3943_v10, %v1307_v16  ;;  %v1337_v27 = vrot.slane %v3953_v11, %v4532_v6  ;;  %v3985_v63 = vld [vmem:[%s5464_s1 + $0x33] ss:$8 sm:$0x7] }
  0x62   : > { %v1294_v29 = vadd.f32 %v1291_v18, %v1265_v13  ;;  %v1295_v30 = vadd.f32 %v1292_v19, %v1266_v17  ;;  %v1320_v31 = vmul.f32 %v3944_v15, %v1311_v21  ;;  %v1341_v33 = vrot.slane %v3953_v11, %v4534_v7  ;;  %v3982_v13 = vld [vmem:[%s4520_s14 + $0x798] sm:$0x7f]  ;;  %v3983_v17 = vld [vmem:[%s4520_s14 + $0x7a0] sm:$0x7f] }
  0x63   : > { %v1321_v35 = vmul.f32 %v3945_v20, %v1315_v24  ;;  %v1322_v36 = vadd.f32 %v1319_v25, %v1293_v23  ;;  %v1345_v37 = vrot.slane %v3953_v11, %v4536_v8  ;;  %v1349_v38 = vmul.f32 %v3950_v22, %v1337_v27  ;;  %v3976_v11 = vld [vmem:[%s4520_s14 + $0x5e0] sm:$0x7f]  ;;  %v3984_v23 = vld [vmem:[%s4520_s14 + $0x7a8] sm:$0x7f]  ;;  %v3989_v25 = vld [vmem:[%s4520_s14 + $0x90] sm:$0x7f] }
  0x64   : > { %v1323_v41 = vadd.f32 %v1320_v31, %v1294_v29  ;;  %v1350_v42 = vmul.f32 %v3951_v26, %v1341_v33  ;;  %v1366_v44 = vrot.slane %v3961_v28, %v4532_v6  ;;  %v1370_v45 = vrot.slane %v3961_v28, %v4534_v7  ;;  %v3992_v19 = vld [vmem:[%s5464_s1 + $0x34] ss:$8 sm:$0x7]  ;;  %v4000_v31 = vld [vmem:[%s5464_s1 + $0x35] ss:$8 sm:$0x7] }
  0x65   : > { %v1324_v46 = vadd.f32 %v1321_v35, %v1295_v30  ;;  %v1351_v47 = vmul.f32 %v3952_v32, %v1345_v37  ;;  %v1352_v48 = vadd.f32 %v1349_v38, %v1322_v36  ;;  %v1374_v49 = vrot.slane %v3961_v28, %v4536_v8  ;;  %v3990_v30 = vld [vmem:[%s4520_s14 + $0x98] sm:$0x7f] }
  0x66   : > { %v1353_v52 = vadd.f32 %v1350_v42, %v1323_v41  ;;  %v1378_v53 = vmul.f32 %v3958_v34, %v1366_v44  ;;  %v1379_v54 = vmul.f32 %v3959_v39, %v1370_v45  ;;  %v1395_v57 = vrot.slane %v3969_v40, %v4532_v6  ;;  %v3991_v34 = vld [vmem:[%s4520_s14 + $0xa0] sm:$0x7f]  ;;  %v3997_v41 = vld [vmem:[%s4520_s14 + $0x258] sm:$0x7f] }
  0x67   : > { %v1354_v58 = vadd.f32 %v1351_v47, %v1324_v46  ;;  %v1380_v59 = vmul.f32 %v3960_v43, %v1374_v49  ;;  %v1399_v60 = vrot.slane %v3969_v40, %v4534_v7  ;;  %v1403_v61 = vrot.slane %v3969_v40, %v4536_v8  ;;  %v4008_v42 = vld [vmem:[%s5464_s1 + $0x36] ss:$8 sm:$0x7]  ;;  %v3999_v47 = vld [vmem:[%s4520_s14 + $0x268] sm:$0x7f] }
  0x68   : > { %v1381_v0 = vadd.f32 %v1378_v53, %v1352_v48  ;;  %v1382_v1 = vadd.f32 %v1379_v54, %v1353_v52  ;;  %v1407_v2 = vmul.f32 %v3966_v50, %v1395_v57  ;;  %v1424_v4 = vrot.slane %v3977_v51, %v4532_v6  ;;  %v3998_v46 = vld [vmem:[%s4520_s14 + $0x260] sm:$0x7f]  ;;  %v4016_v54 = vld [vmem:[%s5464_s1 + $0x37] ss:$8 sm:$0x7] }
  0x69   : > { %v1383_v5 = vadd.f32 %v1380_v59, %v1354_v58  ;;  %v1408_v9 = vmul.f32 %v3967_v55, %v1399_v60  ;;  %v1409_v10 = vmul.f32 %v3968_v56, %v1403_v61  ;;  %v1428_v12 = vrot.slane %v3977_v51, %v4534_v7  ;;  %v4005_v53 = vld [vmem:[%s4520_s14 + $0x420] sm:$0x7f]  ;;  %v4006_v58 = vld [vmem:[%s4520_s14 + $0x428] sm:$0x7f] }
  0x6a   : > { %v1410_v14 = vadd.f32 %v1407_v2, %v1381_v0  ;;  %v1432_v15 = vrot.slane %v3977_v51, %v4536_v8  ;;  %v1436_v16 = vmul.f32 %v3974_v62, %v1424_v4  ;;  %v1453_v18 = vrot.slane %v3985_v63, %v4532_v6 }
  0x6b   : > { %v1411_v20 = vadd.f32 %v1408_v9, %v1382_v1  ;;  %v1412_v21 = vadd.f32 %v1409_v10, %v1383_v5  ;;  %v1437_v22 = vmul.f32 %v3975_v3, %v1428_v12  ;;  %v1457_v24 = vrot.slane %v3985_v63, %v4534_v7  ;;  %v4013_v1 = vld [vmem:[%s4520_s14 + $0x5e8] sm:$0x7f]  ;;  %v4014_v5 = vld [vmem:[%s4520_s14 + $0x5f0] sm:$0x7f] }
  0x6c   : > { %v1438_v26 = vmul.f32 %v3976_v11, %v1432_v15  ;;  %v1439_v27 = vadd.f32 %v1436_v16, %v1410_v14  ;;  %v1461_v28 = vrot.slane %v3985_v63, %v4536_v8  ;;  %v1465_v29 = vmul.f32 %v3982_v13, %v1453_v18  ;;  %v4007_v63 = vld [vmem:[%s4520_s14 + $0x430] sm:$0x7f]  ;;  %v4015_v14 = vld [vmem:[%s4520_s14 + $0x5f8] sm:$0x7f] }
  0x6d   : > { %v1440_v32 = vadd.f32 %v1437_v22, %v1411_v20  ;;  %v1466_v33 = vmul.f32 %v3983_v17, %v1457_v24  ;;  %v1483_v35 = vrot.slane %v3992_v19, %v4532_v6  ;;  %v1487_v36 = vrot.slane %v3992_v19, %v4534_v7  ;;  %v4024_v10 = vld [vmem:[%s5464_s1 + $0x48] ss:$8 sm:$0x7] }
  0x6e   : > { %v1441_v37 = vadd.f32 %v1438_v26, %v1412_v21  ;;  %v1467_v38 = vmul.f32 %v3984_v23, %v1461_v28  ;;  %v1468_v39 = vadd.f32 %v1465_v29, %v1439_v27  ;;  %v1491_v40 = vrot.slane %v3992_v19, %v4536_v8  ;;  %v4021_v16 = vld [vmem:[%s4520_s14 + $0x7b0] sm:$0x7f]  ;;  %v4022_v21 = vld [vmem:[%s4520_s14 + $0x7b8] sm:$0x7f] }
  0x6f   : > { %v1469_v43 = vadd.f32 %v1466_v33, %v1440_v32  ;;  %v1495_v44 = vmul.f32 %v3989_v25, %v1483_v35  ;;  %v1496_v45 = vmul.f32 %v3990_v30, %v1487_v36  ;;  %v1512_v48 = vrot.slane %v4000_v31, %v4532_v6  ;;  %v1629_v22 = vld [vmem:[%s5464_s1] ss:$8 sm:$0x7]  ;;  %v4039_v33 = vld [vmem:[%s5464_s1 + $0x1] ss:$8 sm:$0x7] }
  0x70   : > { %v1470_v49 = vadd.f32 %v1467_v38, %v1441_v37  ;;  %v1497_v50 = vmul.f32 %v3991_v34, %v1491_v40  ;;  %v1516_v51 = vrot.slane %v4000_v31, %v4534_v7  ;;  %v1520_v52 = vrot.slane %v4000_v31, %v4536_v8  ;;  %v4023_v25 = vld [vmem:[%s4520_s14 + $0x7c0] sm:$0x7f]  ;;  %v4031_v37 = vld [vmem:[%s4520_s14 + $0x68] sm:$0x7f]  ;;  %v4032_v38 = vld [vmem:[%s4520_s14 + $0x70] sm:$0x7f] }
  0x71   : > { %v1498_v55 = vadd.f32 %v1495_v44, %v1468_v39  ;;  %v1499_v56 = vadd.f32 %v1496_v45, %v1469_v43  ;;  %v1524_v57 = vmul.f32 %v3997_v41, %v1512_v48  ;;  %v1541_v59 = vrot.slane %v4008_v42, %v4532_v6  ;;  %v4030_v32 = vld [vmem:[%s4520_s14 + $0x60] sm:$0x7f]  ;;  %v4036_v44 = vld [vmem:[%s4520_s14 + $0x228] sm:$0x7f] }
  0x72   : > { %v1500_v60 = vadd.f32 %v1497_v50, %v1470_v49  ;;  %v1525_v61 = vmul.f32 %v3998_v46, %v1516_v51  ;;  %v1526_v62 = vmul.f32 %v3999_v47, %v1520_v52  ;;  %v1545_v0 = vrot.slane %v4008_v42, %v4534_v7  ;;  %v4046_v45 = vld [vmem:[%s5464_s1 + $0x2] ss:$8 sm:$0x7]  ;;  %v4053_v51 = vld [vmem:[%s5464_s1 + $0x3] ss:$8 sm:$0x7] }
  0x73   : > { %v1527_v2 = vadd.f32 %v1524_v57, %v1498_v55  ;;  %v1549_v3 = vrot.slane %v4008_v42, %v4536_v8  ;;  %v1553_v4 = vmul.f32 %v4005_v53, %v1541_v59  ;;  %v1570_v9 = vrot.slane %v4016_v54, %v4532_v6  ;;  %v4037_v49 = vld [vmem:[%s4520_s14 + $0x230] sm:$0x7f]  ;;  %v4038_v55 = vld [vmem:[%s4520_s14 + $0x238] sm:$0x7f] }
  0x74   : > { %v1528_v11 = vadd.f32 %v1525_v61, %v1499_v56  ;;  %v1529_v12 = vadd.f32 %v1526_v62, %v1500_v60  ;;  %v1554_v13 = vmul.f32 %v4006_v58, %v1545_v0  ;;  %v1574_v15 = vrot.slane %v4016_v54, %v4534_v7  ;;  %v4043_v57 = vld [vmem:[%s4520_s14 + $0x3f0] sm:$0x7f]  ;;  %v4044_v58 = vld [vmem:[%s4520_s14 + $0x3f8] sm:$0x7f]  ;;  %v4045_v61 = vld [vmem:[%s4520_s14 + $0x400] sm:$0x7f] }
  0x75   : > { %v1555_v17 = vmul.f32 %v4007_v63, %v1549_v3  ;;  %v1556_v18 = vadd.f32 %v1553_v4, %v1527_v2  ;;  %v1578_v19 = vrot.slane %v4016_v54, %v4536_v8  ;;  %v1582_v20 = vmul.f32 %v4013_v1, %v1570_v9  ;;  %v4050_v0 = vld [vmem:[%s4520_s14 + $0x5b8] sm:$0x7f]  ;;  %v4051_v3 = vld [vmem:[%s4520_s14 + $0x5c0] sm:$0x7f] }
  0x76   : > { %v1557_v23 = vadd.f32 %v1554_v13, %v1528_v11  ;;  %v1583_v24 = vmul.f32 %v4014_v5, %v1574_v15  ;;  %v1599_v26 = vrot.slane %v4024_v10, %v4532_v6  ;;  %v1603_v27 = vrot.slane %v4024_v10, %v4534_v7  ;;  %v4060_v9 = vld [vmem:[%s5464_s1 + $0x4] ss:$8 sm:$0x7] }
  0x77   : > { %v1558_v28 = vadd.f32 %v1555_v17, %v1529_v12  ;;  %v1584_v29 = vmul.f32 %v4015_v14, %v1578_v19  ;;  %v1585_v30 = vadd.f32 %v1582_v20, %v1556_v18  ;;  %v1607_v31 = vrot.slane %v4024_v10, %v4536_v8  ;;  %v4052_v14 = vld [vmem:[%s4520_s14 + $0x5c8] sm:$0x7f]  ;;  %v4057_v19 = vld [vmem:[%s4520_s14 + $0x780] sm:$0x7f] }
  0x78   : > { %v1586_v34 = vadd.f32 %v1583_v24, %v1557_v23  ;;  %v1611_v35 = vmul.f32 %v4021_v16, %v1599_v26  ;;  %v1612_v36 = vmul.f32 %v4022_v21, %v1603_v27  ;;  %v1634_v39 = vrot.slane %v1629_v22, %v4532_v6  ;;  %v4067_v20 = vld [vmem:[%s5464_s1 + $0x5] ss:$8 sm:$0x7] }
  0x79   : > { %v1587_v40 = vadd.f32 %v1584_v29, %v1558_v28  ;;  %v1613_v41 = vmul.f32 %v4023_v25, %v1607_v31  ;;  %v1638_v42 = vrot.slane %v1629_v22, %v4534_v7  ;;  %v1642_v43 = vrot.slane %v1629_v22, %v4536_v8  ;;  %v4058_v24 = vld [vmem:[%s4520_s14 + $0x788] sm:$0x7f]  ;;  %v4059_v25 = vld [vmem:[%s4520_s14 + $0x790] sm:$0x7f]  ;;  %v4064_v31 = vld [vmem:[%s4520_s14 + $0x78] sm:$0x7f] }
  0x7a   : > { %v1614_v46 = vadd.f32 %v1611_v35, %v1585_v30  ;;  %v1615_v47 = vadd.f32 %v1612_v36, %v1586_v34  ;;  %v1646_v48 = vmul.f32 %v4030_v32, %v1634_v39  ;;  %v1663_v50 = vrot.slane %v4039_v33, %v4532_v6  ;;  %v4065_v35 = vld [vmem:[%s4520_s14 + $0x80] sm:$0x7f] }
  0x7b   : > { %v1616_v52 = vadd.f32 %v1613_v41, %v1587_v40  ;;  %v1647_v53 = vmul.f32 %v4031_v37, %v1638_v42  ;;  %v1648_v54 = vmul.f32 %v4032_v38, %v1642_v43  ;;  %v1667_v56 = vrot.slane %v4039_v33, %v4534_v7  ;;  %v4075_v37 = vld [vmem:[%s5464_s1 + $0x6] ss:$8 sm:$0x7] }
  0x7c   : > { %4025 = vst [vmem:[%s4776_s22 + $0x18] sm:$0x7f] %v1614_v46  ;;  %4026 = vst [vmem:[%s4776_s22 + $0x20] sm:$0x7f] %v1615_v47  ;;  %v1671_v59 = vrot.slane %v4039_v33, %v4536_v8  ;;  %v1675_v60 = vmul.f32 %v4036_v44, %v1663_v50  ;;  %v1692_v62 = vrot.slane %v4046_v45, %v4532_v6  ;;  %v4066_v41 = vld [vmem:[%s4520_s14 + $0x88] sm:$0x7f] }
  0x7d   : > { %v1696_v63 = vrot.slane %v4046_v45, %v4534_v7  ;;  %4027 = vst.msk [vmem:[%s4776_s22 + $0x28] sm:$0x7f] %vm883_vm0, %v1616_v52  ;;  %v1676_v1 = vmul.f32 %v4037_v49, %v1667_v56  ;;  %v1700_v2 = vrot.slane %v4046_v45, %v4536_v8  ;;  %v1721_v4 = vrot.slane %v4053_v51, %v4532_v6  ;;  %v4072_v43 = vld [vmem:[%s4520_s14 + $0x240] sm:$0x7f]  ;;  %v4074_v52 = vld [vmem:[%s4520_s14 + $0x250] sm:$0x7f] }
  0x7e   : > { %v1725_v5 = vrot.slane %v4053_v51, %v4534_v7  ;;  %v1677_v10 = vmul.f32 %v4038_v55, %v1671_v59  ;;  %v1678_v11 = vadd.f32 %v1675_v60, %v1646_v48  ;;  %v1704_v12 = vmul.f32 %v4043_v57, %v1692_v62  ;;  %v4073_v48 = vld [vmem:[%s4520_s14 + $0x248] sm:$0x7f]  ;;  %v4083_v49 = vld [vmem:[%s5464_s1 + $0x7] ss:$8 sm:$0x7] }
  0x7f   : > { %v1705_v13 = vmul.f32 %v4044_v58, %v1696_v63  ;;  %v1679_v15 = vadd.f32 %v1676_v1, %v1647_v53  ;;  %v1706_v16 = vmul.f32 %v4045_v61, %v1700_v2  ;;  %v1729_v17 = vrot.slane %v4053_v51, %v4536_v8  ;;  %v4080_v59 = vld [vmem:[%s4520_s14 + $0x408] sm:$0x7f]  ;;  %v4082_v1 = vld [vmem:[%s4520_s14 + $0x418] sm:$0x7f] }
  0x80   : > { %v1733_v18 = vmul.f32 %v4050_v0, %v1721_v4  ;;  %v1680_v21 = vadd.f32 %v1677_v10, %v1648_v54  ;;  %v1707_v22 = vadd.f32 %v1704_v12, %v1678_v11  ;;  %v1734_v23 = vmul.f32 %v4051_v3, %v1725_v5  ;;  %v4091_v60 = vld [vmem:[%s5464_s1 + $0x18] ss:$8 sm:$0x7]  ;;  %v4081_v0 = vld [vmem:[%s4520_s14 + $0x410] sm:$0x7f] }
  0x81   : > { %v1750_v26 = vrot.slane %v4060_v9, %v4532_v6  ;;  %v1708_v27 = vadd.f32 %v1705_v13, %v1679_v15  ;;  %v1735_v28 = vmul.f32 %v4052_v14, %v1729_v17  ;;  %v1754_v29 = vrot.slane %v4060_v9, %v4534_v7  ;;  %v4088_v10 = vld [vmem:[%s4520_s14 + $0x5d0] sm:$0x7f]  ;;  %v4099_v11 = vld [vmem:[%s5464_s1 + $0x19] ss:$8 sm:$0x7] }
  0x82   : > { %v1758_v30 = vrot.slane %v4060_v9, %v4536_v8  ;;  %v1709_v32 = vadd.f32 %v1706_v16, %v1680_v21  ;;  %v1736_v33 = vadd.f32 %v1733_v18, %v1707_v22  ;;  %v1780_v36 = vrot.slane %v4067_v20, %v4532_v6  ;;  %v4089_v15 = vld [vmem:[%s4520_s14 + $0x5d8] sm:$0x7f] }
  0x83   : > { %v1762_v34 = vmul.f32 %v4057_v19, %v1750_v26  ;;  %v1737_v38 = vadd.f32 %v1734_v23, %v1708_v27  ;;  %v1763_v39 = vmul.f32 %v4058_v24, %v1754_v29  ;;  %v1784_v42 = vrot.slane %v4067_v20, %v4534_v7  ;;  %v4096_v22 = vld [vmem:[%s4520_s14 + $0x798] sm:$0x7f]  ;;  %v4097_v26 = vld [vmem:[%s4520_s14 + $0x7a0] sm:$0x7f] }
  0x84   : > { %v1764_v40 = vmul.f32 %v4059_v25, %v1758_v30  ;;  %v1738_v44 = vadd.f32 %v1735_v28, %v1709_v32  ;;  %v1788_v46 = vrot.slane %v4067_v20, %v4536_v8  ;;  %v1792_v47 = vmul.f32 %v4064_v31, %v1780_v36  ;;  %v4090_v20 = vld [vmem:[%s4520_s14 + $0x5e0] sm:$0x7f]  ;;  %v4098_v32 = vld [vmem:[%s4520_s14 + $0x7a8] sm:$0x7f] }
  0x85   : > { %v1765_v45 = vadd.f32 %v1762_v34, %v1736_v33  ;;  %v1766_v50 = vadd.f32 %v1763_v39, %v1737_v38  ;;  %v1793_v51 = vmul.f32 %v4065_v35, %v1784_v42  ;;  %v1809_v53 = vrot.slane %v4075_v37, %v4532_v6  ;;  %v4106_v28 = vld [vmem:[%s5464_s1 + $0x1a] ss:$8 sm:$0x7]  ;;  %v4103_v34 = vld [vmem:[%s4520_s14 + $0x90] sm:$0x7f] }
  0x86   : > { %v1813_v54 = vrot.slane %v4075_v37, %v4534_v7  ;;  %v1767_v55 = vadd.f32 %v1764_v40, %v1738_v44  ;;  %v1794_v56 = vmul.f32 %v4066_v41, %v1788_v46  ;;  %v1817_v58 = vrot.slane %v4075_v37, %v4536_v8  ;;  %v4104_v39 = vld [vmem:[%s4520_s14 + $0x98] sm:$0x7f] }
  0x87   : > { %v1795_v57 = vadd.f32 %v1792_v47, %v1765_v45  ;;  %v1796_v61 = vadd.f32 %v1793_v51, %v1766_v50  ;;  %v1821_v62 = vmul.f32 %v4072_v43, %v1809_v53  ;;  %v1838_v2 = vrot.slane %v4083_v49, %v4532_v6  ;;  %v4114_v40 = vld [vmem:[%s5464_s1 + $0x1b] ss:$8 sm:$0x7]  ;;  %v4122_v51 = vld [vmem:[%s5464_s1 + $0x1c] ss:$8 sm:$0x7] }
  0x88   : > { %v1822_v63 = vmul.f32 %v4073_v48, %v1813_v54  ;;  %v1797_v3 = vadd.f32 %v1794_v56, %v1767_v55  ;;  %v1823_v4 = vmul.f32 %v4074_v52, %v1817_v58  ;;  %v1842_v5 = vrot.slane %v4083_v49, %v4534_v7  ;;  %v4105_v43 = vld [vmem:[%s4520_s14 + $0xa0] sm:$0x7f]  ;;  %v4111_v50 = vld [vmem:[%s4520_s14 + $0x258] sm:$0x7f]  ;;  %v4113_v56 = vld [vmem:[%s4520_s14 + $0x268] sm:$0x7f] }
  0x89   : > { %v1846_v9 = vrot.slane %v4083_v49, %v4536_v8  ;;  %v1824_v12 = vadd.f32 %v1821_v62, %v1795_v57  ;;  %v1850_v14 = vmul.f32 %v4080_v59, %v1838_v2  ;;  %v1867_v16 = vrot.slane %v4091_v60, %v4532_v6  ;;  %v4112_v55 = vld [vmem:[%s4520_s14 + $0x260] sm:$0x7f] }
  0x8a   : > { %v1825_v13 = vadd.f32 %v1822_v63, %v1796_v61  ;;  %v1826_v17 = vadd.f32 %v1823_v4, %v1797_v3  ;;  %v1851_v18 = vmul.f32 %v4081_v0, %v1842_v5  ;;  %v1871_v21 = vrot.slane %v4091_v60, %v4534_v7  ;;  %v4119_v62 = vld [vmem:[%s4520_s14 + $0x420] sm:$0x7f]  ;;  %v4120_v3 = vld [vmem:[%s4520_s14 + $0x428] sm:$0x7f] }
  0x8b   : > { %v1852_v19 = vmul.f32 %v4082_v1, %v1846_v9  ;;  %v1853_v23 = vadd.f32 %v1850_v14, %v1824_v12  ;;  %v1875_v24 = vrot.slane %v4091_v60, %v4536_v8  ;;  %v1879_v25 = vmul.f32 %v4088_v10, %v1867_v16  ;;  %v4130_v63 = vld [vmem:[%s5464_s1 + $0x1d] ss:$8 sm:$0x7] }
  0x8c   : > { %v1896_v27 = vrot.slane %v4099_v11, %v4532_v6  ;;  %v1854_v29 = vadd.f32 %v1851_v18, %v1825_v13  ;;  %v1880_v31 = vmul.f32 %v4089_v15, %v1871_v21  ;;  %v1900_v33 = vrot.slane %v4099_v11, %v4534_v7  ;;  %v4127_v13 = vld [vmem:[%s4520_s14 + $0x5e8] sm:$0x7f] }
  0x8d   : > { %v1855_v30 = vadd.f32 %v1852_v19, %v1826_v17  ;;  %v1881_v35 = vmul.f32 %v4090_v20, %v1875_v24  ;;  %v1882_v36 = vadd.f32 %v1879_v25, %v1853_v23  ;;  %v1904_v37 = vrot.slane %v4099_v11, %v4536_v8  ;;  %v4121_v11 = vld [vmem:[%s4520_s14 + $0x430] sm:$0x7f]  ;;  %v4138_v19 = vld [vmem:[%s5464_s1 + $0x1e] ss:$8 sm:$0x7] }
  0x8e   : > { %v1908_v38 = vmul.f32 %v4096_v22, %v1896_v27  ;;  %v1883_v41 = vadd.f32 %v1880_v31, %v1854_v29  ;;  %v1909_v42 = vmul.f32 %v4097_v26, %v1900_v33  ;;  %v1926_v44 = vrot.slane %v4106_v28, %v4532_v6  ;;  %v4128_v17 = vld [vmem:[%s4520_s14 + $0x5f0] sm:$0x7f]  ;;  %v4129_v23 = vld [vmem:[%s4520_s14 + $0x5f8] sm:$0x7f] }
  0x8f   : > { %v1930_v45 = vrot.slane %v4106_v28, %v4534_v7  ;;  %v1884_v46 = vadd.f32 %v1881_v35, %v1855_v30  ;;  %v1910_v47 = vmul.f32 %v4098_v32, %v1904_v37  ;;  %v1934_v49 = vrot.slane %v4106_v28, %v4536_v8  ;;  %v4135_v25 = vld [vmem:[%s4520_s14 + $0x7b0] sm:$0x7f]  ;;  %v4136_v30 = vld [vmem:[%s4520_s14 + $0x7b8] sm:$0x7f] }
  0x90   : > { %v1911_v48 = vadd.f32 %v1908_v38, %v1882_v36  ;;  %v1912_v52 = vadd.f32 %v1909_v42, %v1883_v41  ;;  %v1938_v53 = vmul.f32 %v4103_v34, %v1926_v44  ;;  %v1955_v57 = vrot.slane %v4114_v40, %v4532_v6  ;;  %v4145_v31 = vld [vmem:[%s5464_s1 + $0x1f] ss:$8 sm:$0x7]  ;;  %v4137_v34 = vld [vmem:[%s4520_s14 + $0x7c0] sm:$0x7f] }
  0x91   : > { %v1939_v54 = vmul.f32 %v4104_v39, %v1930_v45  ;;  %v1913_v58 = vadd.f32 %v1910_v47, %v1884_v46  ;;  %v1940_v59 = vmul.f32 %v4105_v43, %v1934_v49  ;;  %v1959_v60 = vrot.slane %v4114_v40, %v4534_v7  ;;  %v4142_v41 = vld [vmem:[%s4520_s14 + $0xa8] sm:$0x7f]  ;;  %v4153_v42 = vld [vmem:[%s5464_s1 + $0x30] ss:$8 sm:$0x7] }
  0x92   : > { %v1963_v61 = vrot.slane %v4114_v40, %v4536_v8  ;;  %v1941_v0 = vadd.f32 %v1938_v53, %v1911_v48  ;;  %v1967_v2 = vmul.f32 %v4111_v50, %v1955_v57  ;;  %v1984_v4 = vrot.slane %v4122_v51, %v4532_v6  ;;  %v4143_v46 = vld [vmem:[%s4520_s14 + $0xb0] sm:$0x7f]  ;;  %v4144_v47 = vld [vmem:[%s4520_s14 + $0xb8] sm:$0x7f] }
  0x93   : > { %v1942_v1 = vadd.f32 %v1939_v54, %v1912_v52  ;;  %v1943_v5 = vadd.f32 %v1940_v59, %v1913_v58  ;;  %v1968_v9 = vmul.f32 %v4112_v55, %v1959_v60  ;;  %v1988_v12 = vrot.slane %v4122_v51, %v4534_v7  ;;  %v4150_v53 = vld [vmem:[%s4520_s14 + $0x270] sm:$0x7f]  ;;  %v4151_v58 = vld [vmem:[%s4520_s14 + $0x278] sm:$0x7f] }
  0x94   : > { %v1969_v10 = vmul.f32 %v4113_v56, %v1963_v61  ;;  %v1970_v14 = vadd.f32 %v1967_v2, %v1941_v0  ;;  %v1992_v15 = vrot.slane %v4122_v51, %v4536_v8  ;;  %v1996_v16 = vmul.f32 %v4119_v62, %v1984_v4  ;;  %v4161_v54 = vld [vmem:[%s5464_s1 + $0x31] ss:$8 sm:$0x7] }
  0x95   : > { %v2013_v18 = vrot.slane %v4130_v63, %v4532_v6  ;;  %v1971_v20 = vadd.f32 %v1968_v9, %v1942_v1  ;;  %v1997_v22 = vmul.f32 %v4120_v3, %v1988_v12  ;;  %v2017_v24 = vrot.slane %v4130_v63, %v4534_v7  ;;  %v4158_v1 = vld [vmem:[%s4520_s14 + $0x438] sm:$0x7f] }
  0x96   : > { %v1972_v21 = vadd.f32 %v1969_v10, %v1943_v5  ;;  %v1998_v26 = vmul.f32 %v4121_v11, %v1992_v15  ;;  %v1999_v27 = vadd.f32 %v1996_v16, %v1970_v14  ;;  %v2021_v28 = vrot.slane %v4130_v63, %v4536_v8  ;;  %v4152_v63 = vld [vmem:[%s4520_s14 + $0x280] sm:$0x7f]  ;;  %v4160_v14 = vld [vmem:[%s4520_s14 + $0x448] sm:$0x7f] }
  0x97   : > { %v2025_v29 = vmul.f32 %v4127_v13, %v2013_v18  ;;  %v2000_v32 = vadd.f32 %v1997_v22, %v1971_v20  ;;  %v2026_v33 = vmul.f32 %v4128_v17, %v2017_v24  ;;  %v2042_v35 = vrot.slane %v4138_v19, %v4532_v6  ;;  %v4159_v5 = vld [vmem:[%s4520_s14 + $0x440] sm:$0x7f] }
  0x98   : > { %v2046_v36 = vrot.slane %v4138_v19, %v4534_v7  ;;  %v2001_v37 = vadd.f32 %v1998_v26, %v1972_v21  ;;  %v2027_v38 = vmul.f32 %v4129_v23, %v2021_v28  ;;  %v2050_v40 = vrot.slane %v4138_v19, %v4536_v8  ;;  %v4169_v10 = vld [vmem:[%s5464_s1 + $0x32] ss:$8 sm:$0x7]  ;;  %v4167_v21 = vld [vmem:[%s4520_s14 + $0x608] sm:$0x7f] }
  0x99   : > { %v2028_v39 = vadd.f32 %v2025_v29, %v1999_v27  ;;  %v2029_v43 = vadd.f32 %v2026_v33, %v2000_v32  ;;  %v2054_v44 = vmul.f32 %v4135_v25, %v2042_v35  ;;  %v2072_v48 = vrot.slane %v4145_v31, %v4532_v6  ;;  %v4166_v16 = vld [vmem:[%s4520_s14 + $0x600] sm:$0x7f]  ;;  %v4168_v25 = vld [vmem:[%s4520_s14 + $0x610] sm:$0x7f]  ;;  %v4174_v32 = vld [vmem:[%s4520_s14 + $0x7c8] sm:$0x7f] }
  0x9a   : > { %v2055_v45 = vmul.f32 %v4136_v30, %v2046_v36  ;;  %v2030_v49 = vadd.f32 %v2027_v38, %v2001_v37  ;;  %v2056_v50 = vmul.f32 %v4137_v34, %v2050_v40  ;;  %v2076_v51 = vrot.slane %v4145_v31, %v4534_v7  ;;  %v4177_v22 = vld [vmem:[%s5464_s1 + $0x33] ss:$8 sm:$0x7]  ;;  %v4184_v33 = vld [vmem:[%s5464_s1 + $0x34] ss:$8 sm:$0x7] }
  0x9b   : > { %v2080_v52 = vrot.slane %v4145_v31, %v4536_v8  ;;  %v2057_v55 = vadd.f32 %v2054_v44, %v2028_v39  ;;  %v2084_v57 = vmul.f32 %v4142_v41, %v2072_v48  ;;  %v2101_v59 = vrot.slane %v4153_v42, %v4532_v6  ;;  %v4175_v37 = vld [vmem:[%s4520_s14 + $0x7d0] sm:$0x7f]  ;;  %v4176_v38 = vld [vmem:[%s4520_s14 + $0x7d8] sm:$0x7f]  ;;  %v4181_v44 = vld [vmem:[%s4520_s14 + $0xc0] sm:$0x7f] }
  0x9c   : > { %v2058_v56 = vadd.f32 %v2055_v45, %v2029_v43  ;;  %v2059_v60 = vadd.f32 %v2056_v50, %v2030_v49  ;;  %v2085_v61 = vmul.f32 %v4143_v46, %v2076_v51  ;;  %v2105_v0 = vrot.slane %v4153_v42, %v4534_v7  ;;  %v4192_v45 = vld [vmem:[%s5464_s1 + $0x35] ss:$8 sm:$0x7]  ;;  %v4182_v49 = vld [vmem:[%s4520_s14 + $0xc8] sm:$0x7f] }
  0x9d   : > { %v2086_v62 = vmul.f32 %v4144_v47, %v2080_v52  ;;  %v2087_v2 = vadd.f32 %v2084_v57, %v2057_v55  ;;  %v2109_v3 = vrot.slane %v4153_v42, %v4536_v8  ;;  %v2113_v4 = vmul.f32 %v4150_v53, %v2101_v59 }
  0x9e   : > { %v2130_v9 = vrot.slane %v4161_v54, %v4532_v6  ;;  %v2088_v11 = vadd.f32 %v2085_v61, %v2058_v56  ;;  %v2114_v13 = vmul.f32 %v4151_v58, %v2105_v0  ;;  %v2134_v15 = vrot.slane %v4161_v54, %v4534_v7  ;;  %v4189_v56 = vld [vmem:[%s4520_s14 + $0x288] sm:$0x7f] }
  0x9f   : > { %v2089_v12 = vadd.f32 %v2086_v62, %v2059_v60  ;;  %v2115_v17 = vmul.f32 %v4152_v63, %v2109_v3  ;;  %v2116_v18 = vadd.f32 %v2113_v4, %v2087_v2  ;;  %v2138_v19 = vrot.slane %v4161_v54, %v4536_v8  ;;  %v4183_v54 = vld [vmem:[%s4520_s14 + $0xd0] sm:$0x7f]  ;;  %v4191_v2 = vld [vmem:[%s4520_s14 + $0x298] sm:$0x7f] }
  0xa0   : > { %v2142_v20 = vmul.f32 %v4158_v1, %v2130_v9  ;;  %v2117_v23 = vadd.f32 %v2114_v13, %v2088_v11  ;;  %v2143_v24 = vmul.f32 %v4159_v5, %v2134_v15  ;;  %v2159_v26 = vrot.slane %v4169_v10, %v4532_v6  ;;  %v4190_v60 = vld [vmem:[%s4520_s14 + $0x290] sm:$0x7f]  ;;  %v4208_v13 = vld [vmem:[%s5464_s1 + $0x37] ss:$8 sm:$0x7] }
  0xa1   : > { %v2163_v27 = vrot.slane %v4169_v10, %v4534_v7  ;;  %v2118_v28 = vadd.f32 %v2115_v17, %v2089_v12  ;;  %v2144_v29 = vmul.f32 %v4160_v14, %v2138_v19  ;;  %v2167_v31 = vrot.slane %v4169_v10, %v4536_v8  ;;  %v4200_v62 = vld [vmem:[%s5464_s1 + $0x36] ss:$8 sm:$0x7] }
  0xa2   : > { %v2145_v30 = vadd.f32 %v2142_v20, %v2116_v18  ;;  %v2146_v34 = vadd.f32 %v2143_v24, %v2117_v23  ;;  %v2171_v35 = vmul.f32 %v4166_v16, %v2159_v26  ;;  %v2188_v39 = vrot.slane %v4177_v22, %v4532_v6  ;;  %v4197_v4 = vld [vmem:[%s4520_s14 + $0x450] sm:$0x7f]  ;;  %v4198_v12 = vld [vmem:[%s4520_s14 + $0x458] sm:$0x7f]  ;;  %v4199_v16 = vld [vmem:[%s4520_s14 + $0x460] sm:$0x7f] }
  0xa3   : > { %v2172_v36 = vmul.f32 %v4167_v21, %v2163_v27  ;;  %v2147_v40 = vadd.f32 %v2144_v29, %v2118_v28  ;;  %v2173_v41 = vmul.f32 %v4168_v25, %v2167_v31  ;;  %v2192_v42 = vrot.slane %v4177_v22, %v4534_v7  ;;  %v4205_v23 = vld [vmem:[%s4520_s14 + $0x618] sm:$0x7f]  ;;  %v4206_v28 = vld [vmem:[%s4520_s14 + $0x620] sm:$0x7f]  ;;  %v4207_v29 = vld [vmem:[%s4520_s14 + $0x628] sm:$0x7f] }
  0xa4   : > { %v2196_v43 = vrot.slane %v4177_v22, %v4536_v8  ;;  %v2174_v46 = vadd.f32 %v2171_v35, %v2145_v30  ;;  %v2200_v48 = vmul.f32 %v4174_v32, %v2188_v39  ;;  %v2218_v50 = vrot.slane %v4184_v33, %v4532_v6  ;;  %v4216_v24 = vld [vmem:[%s5464_s1 + $0x48] ss:$8 sm:$0x7]  ;;  %v4213_v35 = vld [vmem:[%s4520_s14 + $0x7e0] sm:$0x7f] }
  0xa5   : > { %v2175_v47 = vadd.f32 %v2172_v36, %v2146_v34  ;;  %v2176_v51 = vadd.f32 %v2173_v41, %v2147_v40  ;;  %v2201_v52 = vmul.f32 %v4175_v37, %v2192_v42  ;;  %v2222_v55 = vrot.slane %v4184_v33, %v4534_v7  ;;  %v2364_v36 = vld [vmem:[%s5464_s1] ss:$8 sm:$0x7] }
  0xa6   : > { %v2202_v53 = vmul.f32 %v4176_v38, %v2196_v43  ;;  %v2203_v57 = vadd.f32 %v2200_v48, %v2174_v46  ;;  %v2226_v58 = vrot.slane %v4184_v33, %v4536_v8  ;;  %v2230_v59 = vmul.f32 %v4181_v44, %v2218_v50  ;;  %v4214_v40 = vld [vmem:[%s4520_s14 + $0x7e8] sm:$0x7f] }
  0xa7   : > { %v2247_v61 = vrot.slane %v4192_v45, %v4532_v6  ;;  %v2204_v63 = vadd.f32 %v2201_v52, %v2175_v47  ;;  %v2231_v1 = vmul.f32 %v4182_v49, %v2222_v55  ;;  %v2251_v3 = vrot.slane %v4192_v45, %v4534_v7  ;;  %v4222_v47 = vld [vmem:[%s4520_s14 + $0x90] sm:$0x7f] }
  0xa8   : > { %v2205_v0 = vadd.f32 %v2202_v53, %v2176_v51  ;;  %v2232_v5 = vmul.f32 %v4183_v54, %v2226_v58  ;;  %v2233_v9 = vadd.f32 %v2230_v59, %v2203_v57  ;;  %v2255_v10 = vrot.slane %v4192_v45, %v4536_v8  ;;  %v4215_v45 = vld [vmem:[%s4520_s14 + $0x7f0] sm:$0x7f]  ;;  %v4223_v51 = vld [vmem:[%s4520_s14 + $0x98] sm:$0x7f]  ;;  %v4224_v57 = vld [vmem:[%s4520_s14 + $0xa0] sm:$0x7f] }
  0xa9   : > { %v2259_v11 = vmul.f32 %v4189_v56, %v2247_v61  ;;  %v2234_v14 = vadd.f32 %v2231_v1, %v2204_v63  ;;  %v2260_v15 = vmul.f32 %v4190_v60, %v2251_v3  ;;  %v2276_v17 = vrot.slane %v4200_v62, %v4532_v6  ;;  %v4231_v53 = vld [vmem:[%s5464_s1 + $0x1] ss:$8 sm:$0x7]  ;;  %v4238_v59 = vld [vmem:[%s5464_s1 + $0x2] ss:$8 sm:$0x7] }
  0xaa   : > { %v2280_v18 = vrot.slane %v4200_v62, %v4534_v7  ;;  %v2235_v19 = vadd.f32 %v2232_v5, %v2205_v0  ;;  %v2261_v20 = vmul.f32 %v4191_v2, %v2255_v10  ;;  %v2284_v22 = vrot.slane %v4200_v62, %v4536_v8  ;;  %v4228_v0 = vld [vmem:[%s4520_s14 + $0x258] sm:$0x7f]  ;;  %v4229_v1 = vld [vmem:[%s4520_s14 + $0x260] sm:$0x7f]  ;;  %v4230_v2 = vld [vmem:[%s4520_s14 + $0x268] sm:$0x7f] }
  0xab   : > { %v2262_v21 = vadd.f32 %v2259_v11, %v2233_v9  ;;  %v2263_v25 = vadd.f32 %v2260_v15, %v2234_v14  ;;  %v2288_v26 = vmul.f32 %v4197_v4, %v2276_v17  ;;  %v2305_v30 = vrot.slane %v4208_v13, %v4532_v6  ;;  %v4235_v10 = vld [vmem:[%s4520_s14 + $0x420] sm:$0x7f]  ;;  %v4236_v15 = vld [vmem:[%s4520_s14 + $0x428] sm:$0x7f] }
  0xac   : > { %v2289_v27 = vmul.f32 %v4198_v12, %v2280_v18  ;;  %v2264_v31 = vadd.f32 %v2261_v20, %v2235_v19  ;;  %v2290_v32 = vmul.f32 %v4199_v16, %v2284_v22  ;;  %v2309_v33 = vrot.slane %v4208_v13, %v4534_v7  ;;  %v4245_v11 = vld [vmem:[%s5464_s1 + $0x3] ss:$8 sm:$0x7] }
  0xad   : > { %v2313_v34 = vrot.slane %v4208_v13, %v4536_v8  ;;  %v2291_v37 = vadd.f32 %v2288_v26, %v2262_v21  ;;  %v2317_v39 = vmul.f32 %v4205_v23, %v2305_v30  ;;  %v2334_v41 = vrot.slane %v4216_v24, %v4532_v6  ;;  %v4237_v16 = vld [vmem:[%s4520_s14 + $0x430] sm:$0x7f]  ;;  %v4242_v22 = vld [vmem:[%s4520_s14 + $0x5e8] sm:$0x7f] }
  0xae   : > { %v2292_v38 = vadd.f32 %v2289_v27, %v2263_v25  ;;  %v2293_v42 = vadd.f32 %v2290_v32, %v2264_v31  ;;  %v2318_v43 = vmul.f32 %v4206_v28, %v2309_v33  ;;  %v2338_v46 = vrot.slane %v4216_v24, %v4534_v7  ;;  %v4243_v23 = vld [vmem:[%s4520_s14 + $0x5f0] sm:$0x7f]  ;;  %v4244_v33 = vld [vmem:[%s4520_s14 + $0x5f8] sm:$0x7f] }
  0xaf   : > { %v2319_v44 = vmul.f32 %v4207_v29, %v2313_v34  ;;  %v2320_v48 = vadd.f32 %v2317_v39, %v2291_v37  ;;  %v2342_v49 = vrot.slane %v4216_v24, %v4536_v8  ;;  %v2346_v50 = vmul.f32 %v4213_v35, %v2334_v41  ;;  %v4252_v28 = vld [vmem:[%s5464_s1 + $0x4] ss:$8 sm:$0x7]  ;;  %v4259_v34 = vld [vmem:[%s5464_s1 + $0x5] ss:$8 sm:$0x7] }
  0xb0   : > { %v2369_v52 = vrot.slane %v2364_v36, %v4532_v6  ;;  %v2321_v54 = vadd.f32 %v2318_v43, %v2292_v38  ;;  %v2347_v56 = vmul.f32 %v4214_v40, %v2338_v46  ;;  %v2373_v58 = vrot.slane %v2364_v36, %v4534_v7  ;;  %v4249_v39 = vld [vmem:[%s4520_s14 + $0x7b0] sm:$0x7f]  ;;  %v4250_v40 = vld [vmem:[%s4520_s14 + $0x7b8] sm:$0x7f]  ;;  %v4251_v43 = vld [vmem:[%s4520_s14 + $0x7c0] sm:$0x7f] }
  0xb1   : > { %v2322_v55 = vadd.f32 %v2319_v44, %v2293_v42  ;;  %v2348_v60 = vmul.f32 %v4215_v45, %v2342_v49  ;;  %v2349_v61 = vadd.f32 %v2346_v50, %v2320_v48  ;;  %v2377_v62 = vrot.slane %v2364_v36, %v4536_v8  ;;  %v4256_v49 = vld [vmem:[%s4520_s14 + $0xa8] sm:$0x7f] }
  0xb2   : > { %v2381_v63 = vmul.f32 %v4222_v47, %v2369_v52  ;;  %v2350_v3 = vadd.f32 %v2347_v56, %v2321_v54  ;;  %v2382_v4 = vmul.f32 %v4223_v51, %v2373_v58  ;;  %v2398_v5 = vrot.slane %v4231_v53, %v4532_v6  ;;  %v4267_v51 = vld [vmem:[%s5464_s1 + $0x6] ss:$8 sm:$0x7] }
  0xb3   : > { %v2402_v9 = vrot.slane %v4231_v53, %v4534_v7  ;;  %v2351_v12 = vadd.f32 %v2348_v60, %v2322_v55  ;;  %4217 = vst [vmem:[%s4776_s22 + $0x30] sm:$0x7f] %v2349_v61  ;;  %v2383_v13 = vmul.f32 %v4224_v57, %v2377_v62  ;;  %v2406_v14 = vrot.slane %v4231_v53, %v4536_v8  ;;  %v4257_v56 = vld [vmem:[%s4520_s14 + $0xb0] sm:$0x7f]  ;;  %v4258_v57 = vld [vmem:[%s4520_s14 + $0xb8] sm:$0x7f] }
  0xb4   : > { %v2427_v17 = vrot.slane %v4238_v59, %v4532_v6  ;;  %4218 = vst [vmem:[%s4776_s22 + $0x38] sm:$0x7f] %v2350_v3  ;;  %v2410_v18 = vmul.f32 %v4228_v0, %v2398_v5  ;;  %v2431_v20 = vrot.slane %v4238_v59, %v4534_v7  ;;  %v2435_v21 = vrot.slane %v4238_v59, %v4536_v8  ;;  %v4264_v62 = vld [vmem:[%s4520_s14 + $0x270] sm:$0x7f]  ;;  %v4265_v3 = vld [vmem:[%s4520_s14 + $0x278] sm:$0x7f] }
  0xb5   : > { %v2411_v19 = vmul.f32 %v4229_v1, %v2402_v9  ;;  %4219 = vst.msk [vmem:[%s4776_s22 + $0x40] sm:$0x7f] %vm883_vm0, %v2351_v12  ;;  %v2412_v24 = vmul.f32 %v4230_v2, %v2406_v14  ;;  %v2456_v26 = vrot.slane %v4245_v11, %v4532_v6  ;;  %v2460_v27 = vrot.slane %v4245_v11, %v4534_v7 }
  0xb6   : > { %v2439_v25 = vmul.f32 %v4235_v10, %v2427_v17  ;;  %v2413_v29 = vadd.f32 %v2410_v18, %v2381_v63  ;;  %v2440_v31 = vmul.f32 %v4236_v15, %v2431_v20  ;;  %v2441_v32 = vmul.f32 %v4237_v16, %v2435_v21  ;;  %v4275_v63 = vld [vmem:[%s5464_s1 + $0x7] ss:$8 sm:$0x7]  ;;  %v4273_v17 = vld [vmem:[%s4520_s14 + $0x440] sm:$0x7f] }
  0xb7   : > { %v2414_v30 = vadd.f32 %v2411_v19, %v2382_v4  ;;  %v2415_v35 = vadd.f32 %v2412_v24, %v2383_v13  ;;  %v2464_v36 = vrot.slane %v4245_v11, %v4536_v8  ;;  %v2468_v37 = vmul.f32 %v4242_v22, %v2456_v26  ;;  %v4266_v11 = vld [vmem:[%s4520_s14 + $0x280] sm:$0x7f]  ;;  %v4272_v13 = vld [vmem:[%s4520_s14 + $0x438] sm:$0x7f] }
  0xb8   : > { %v2469_v38 = vmul.f32 %v4243_v23, %v2460_v27  ;;  %v2442_v41 = vadd.f32 %v2439_v25, %v2413_v29  ;;  %v2485_v44 = vrot.slane %v4252_v28, %v4532_v6  ;;  %v2489_v45 = vrot.slane %v4252_v28, %v4534_v7  ;;  %v4283_v19 = vld [vmem:[%s5464_s1 + $0x18] ss:$8 sm:$0x7] }
  0xb9   : > { %v2443_v42 = vadd.f32 %v2440_v31, %v2414_v30  ;;  %v2444_v46 = vadd.f32 %v2441_v32, %v2415_v35  ;;  %v2470_v47 = vmul.f32 %v4244_v33, %v2464_v36  ;;  %v2493_v48 = vrot.slane %v4252_v28, %v4536_v8  ;;  %v4274_v23 = vld [vmem:[%s4520_s14 + $0x448] sm:$0x7f]  ;;  %v4280_v25 = vld [vmem:[%s4520_s14 + $0x600] sm:$0x7f] }
  0xba   : > { %v2515_v50 = vrot.slane %v4259_v34, %v4532_v6  ;;  %v2471_v52 = vadd.f32 %v2468_v37, %v2442_v41  ;;  %v2497_v54 = vmul.f32 %v4249_v39, %v2485_v44  ;;  %v2498_v55 = vmul.f32 %v4250_v40, %v2489_v45  ;;  %v4281_v30 = vld [vmem:[%s4520_s14 + $0x608] sm:$0x7f] }
  0xbb   : > { %v2472_v53 = vadd.f32 %v2469_v38, %v2443_v42  ;;  %v2473_v58 = vadd.f32 %v2470_v47, %v2444_v46  ;;  %v2499_v59 = vmul.f32 %v4251_v43, %v2493_v48  ;;  %v2519_v60 = vrot.slane %v4259_v34, %v4534_v7  ;;  %v4291_v31 = vld [vmem:[%s5464_s1 + $0x19] ss:$8 sm:$0x7]  ;;  %v4298_v42 = vld [vmem:[%s5464_s1 + $0x1a] ss:$8 sm:$0x7] }
  0xbc   : > { %v2523_v61 = vrot.slane %v4259_v34, %v4536_v8  ;;  %v2500_v0 = vadd.f32 %v2497_v54, %v2471_v52  ;;  %v2527_v2 = vmul.f32 %v4256_v49, %v2515_v50  ;;  %v2544_v4 = vrot.slane %v4267_v51, %v4532_v6  ;;  %v4282_v34 = vld [vmem:[%s4520_s14 + $0x610] sm:$0x7f]  ;;  %v4288_v41 = vld [vmem:[%s4520_s14 + $0x7c8] sm:$0x7f]  ;;  %v4290_v47 = vld [vmem:[%s4520_s14 + $0x7d8] sm:$0x7f] }
  0xbd   : > { %v2501_v1 = vadd.f32 %v2498_v55, %v2472_v53  ;;  %v2502_v5 = vadd.f32 %v2499_v59, %v2473_v58  ;;  %v2528_v9 = vmul.f32 %v4257_v56, %v2519_v60  ;;  %v2548_v12 = vrot.slane %v4267_v51, %v4534_v7  ;;  %v4289_v46 = vld [vmem:[%s4520_s14 + $0x7d0] sm:$0x7f]  ;;  %v4295_v53 = vld [vmem:[%s4520_s14 + $0xc0] sm:$0x7f]  ;;  %v4296_v58 = vld [vmem:[%s4520_s14 + $0xc8] sm:$0x7f] }
  0xbe   : > { %v2529_v10 = vmul.f32 %v4258_v57, %v2523_v61  ;;  %v2530_v14 = vadd.f32 %v2527_v2, %v2500_v0  ;;  %v2552_v15 = vrot.slane %v4267_v51, %v4536_v8  ;;  %v2556_v16 = vmul.f32 %v4264_v62, %v2544_v4  ;;  %v4306_v54 = vld [vmem:[%s5464_s1 + $0x1b] ss:$8 sm:$0x7] }
  0xbf   : > { %v2573_v18 = vrot.slane %v4275_v63, %v4532_v6  ;;  %v2531_v20 = vadd.f32 %v2528_v9, %v2501_v1  ;;  %v2557_v22 = vmul.f32 %v4265_v3, %v2548_v12  ;;  %v2577_v24 = vrot.slane %v4275_v63, %v4534_v7  ;;  %v4303_v1 = vld [vmem:[%s4520_s14 + $0x288] sm:$0x7f] }
  0xc0   : > { %v2532_v21 = vadd.f32 %v2529_v10, %v2502_v5  ;;  %v2558_v26 = vmul.f32 %v4266_v11, %v2552_v15  ;;  %v2559_v27 = vadd.f32 %v2556_v16, %v2530_v14  ;;  %v2581_v28 = vrot.slane %v4275_v63, %v4536_v8  ;;  %v4297_v63 = vld [vmem:[%s4520_s14 + $0xd0] sm:$0x7f]  ;;  %v4314_v10 = vld [vmem:[%s5464_s1 + $0x1c] ss:$8 sm:$0x7] }
  0xc1   : > { %v2585_v29 = vmul.f32 %v4272_v13, %v2573_v18  ;;  %v2560_v32 = vadd.f32 %v2557_v22, %v2531_v20  ;;  %v2586_v33 = vmul.f32 %v4273_v17, %v2577_v24  ;;  %v2602_v35 = vrot.slane %v4283_v19, %v4532_v6  ;;  %v4304_v5 = vld [vmem:[%s4520_s14 + $0x290] sm:$0x7f]  ;;  %v4305_v14 = vld [vmem:[%s4520_s14 + $0x298] sm:$0x7f] }
  0xc2   : > { %v2606_v36 = vrot.slane %v4283_v19, %v4534_v7  ;;  %v2561_v37 = vadd.f32 %v2558_v26, %v2532_v21  ;;  %v2587_v38 = vmul.f32 %v4274_v23, %v2581_v28  ;;  %v2610_v40 = vrot.slane %v4283_v19, %v4536_v8  ;;  %v4311_v16 = vld [vmem:[%s4520_s14 + $0x450] sm:$0x7f]  ;;  %v4312_v21 = vld [vmem:[%s4520_s14 + $0x458] sm:$0x7f] }
  0xc3   : > { %v2588_v39 = vadd.f32 %v2585_v29, %v2559_v27  ;;  %v2589_v43 = vadd.f32 %v2586_v33, %v2560_v32  ;;  %v2614_v44 = vmul.f32 %v4280_v25, %v2602_v35  ;;  %v2631_v48 = vrot.slane %v4291_v31, %v4532_v6  ;;  %v4322_v22 = vld [vmem:[%s5464_s1 + $0x1d] ss:$8 sm:$0x7]  ;;  %v4330_v33 = vld [vmem:[%s5464_s1 + $0x1e] ss:$8 sm:$0x7] }
  0xc4   : > { %v2615_v45 = vmul.f32 %v4281_v30, %v2606_v36  ;;  %v2590_v49 = vadd.f32 %v2587_v38, %v2561_v37  ;;  %v2616_v50 = vmul.f32 %v4282_v34, %v2610_v40  ;;  %v2635_v51 = vrot.slane %v4291_v31, %v4534_v7  ;;  %v4313_v25 = vld [vmem:[%s4520_s14 + $0x460] sm:$0x7f]  ;;  %v4319_v32 = vld [vmem:[%s4520_s14 + $0x618] sm:$0x7f]  ;;  %v4321_v38 = vld [vmem:[%s4520_s14 + $0x628] sm:$0x7f] }
  0xc5   : > { %v2639_v52 = vrot.slane %v4291_v31, %v4536_v8  ;;  %v2617_v55 = vadd.f32 %v2614_v44, %v2588_v39  ;;  %v2643_v57 = vmul.f32 %v4288_v41, %v2631_v48  ;;  %v2661_v59 = vrot.slane %v4298_v42, %v4532_v6  ;;  %v4320_v37 = vld [vmem:[%s4520_s14 + $0x620] sm:$0x7f] }
  0xc6   : > { %v2618_v56 = vadd.f32 %v2615_v45, %v2589_v43  ;;  %v2619_v60 = vadd.f32 %v2616_v50, %v2590_v49  ;;  %v2644_v61 = vmul.f32 %v4289_v46, %v2635_v51  ;;  %v2665_v0 = vrot.slane %v4298_v42, %v4534_v7  ;;  %v4327_v44 = vld [vmem:[%s4520_s14 + $0x7e0] sm:$0x7f]  ;;  %v4337_v45 = vld [vmem:[%s5464_s1 + $0x1f] ss:$8 sm:$0x7] }
  0xc7   : > { %v2645_v62 = vmul.f32 %v4290_v47, %v2639_v52  ;;  %v2646_v2 = vadd.f32 %v2643_v57, %v2617_v55  ;;  %v2669_v3 = vrot.slane %v4298_v42, %v4536_v8  ;;  %v2673_v4 = vmul.f32 %v4295_v53, %v2661_v59  ;;  %v4328_v49 = vld [vmem:[%s4520_s14 + $0x7e8] sm:$0x7f] }
  0xc8   : > { %v2690_v9 = vrot.slane %v4306_v54, %v4532_v6  ;;  %v2647_v11 = vadd.f32 %v2644_v61, %v2618_v56  ;;  %v2674_v13 = vmul.f32 %v4296_v58, %v2665_v0  ;;  %v2694_v15 = vrot.slane %v4306_v54, %v4534_v7  ;;  %v4334_v56 = vld [vmem:[%s4520_s14 + $0xd8] sm:$0x7f] }
  0xc9   : > { %v2648_v12 = vadd.f32 %v2645_v62, %v2619_v60  ;;  %v2675_v17 = vmul.f32 %v4297_v63, %v2669_v3  ;;  %v2676_v18 = vadd.f32 %v2673_v4, %v2646_v2  ;;  %v2698_v19 = vrot.slane %v4306_v54, %v4536_v8  ;;  %v4329_v54 = vld [vmem:[%s4520_s14 + $0x7f0] sm:$0x7f]  ;;  %v4335_v60 = vld [vmem:[%s4520_s14 + $0xe0] sm:$0x7f]  ;;  %v4336_v2 = vld [vmem:[%s4520_s14 + $0xe8] sm:$0x7f] }
  0xca   : > { %v2702_v20 = vmul.f32 %v4303_v1, %v2690_v9  ;;  %v2677_v23 = vadd.f32 %v2674_v13, %v2647_v11  ;;  %v2703_v24 = vmul.f32 %v4304_v5, %v2694_v15  ;;  %v2719_v26 = vrot.slane %v4314_v10, %v4532_v6  ;;  %v4345_v62 = vld [vmem:[%s5464_s1 + $0x30] ss:$8 sm:$0x7]  ;;  %v4353_v13 = vld [vmem:[%s5464_s1 + $0x31] ss:$8 sm:$0x7] }
  0xcb   : > { %v2723_v27 = vrot.slane %v4314_v10, %v4534_v7  ;;  %v2678_v28 = vadd.f32 %v2675_v17, %v2648_v12  ;;  %v2704_v29 = vmul.f32 %v4305_v14, %v2698_v19  ;;  %v2727_v31 = vrot.slane %v4314_v10, %v4536_v8  ;;  %v4342_v4 = vld [vmem:[%s4520_s14 + $0x2a0] sm:$0x7f]  ;;  %v4343_v12 = vld [vmem:[%s4520_s14 + $0x2a8] sm:$0x7f] }
  0xcc   : > { %v2705_v30 = vadd.f32 %v2702_v20, %v2676_v18  ;;  %v2706_v34 = vadd.f32 %v2703_v24, %v2677_v23  ;;  %v2731_v35 = vmul.f32 %v4311_v16, %v2719_v26  ;;  %v2748_v39 = vrot.slane %v4322_v22, %v4532_v6  ;;  %v4344_v16 = vld [vmem:[%s4520_s14 + $0x2b0] sm:$0x7f]  ;;  %v4350_v23 = vld [vmem:[%s4520_s14 + $0x468] sm:$0x7f] }
  0xcd   : > { %v2732_v36 = vmul.f32 %v4312_v21, %v2723_v27  ;;  %v2707_v40 = vadd.f32 %v2704_v29, %v2678_v28  ;;  %v2733_v41 = vmul.f32 %v4313_v25, %v2727_v31  ;;  %v2752_v42 = vrot.slane %v4322_v22, %v4534_v7  ;;  %v4361_v24 = vld [vmem:[%s5464_s1 + $0x32] ss:$8 sm:$0x7] }
  0xce   : > { %v2756_v43 = vrot.slane %v4322_v22, %v4536_v8  ;;  %v2734_v46 = vadd.f32 %v2731_v35, %v2705_v30  ;;  %v2760_v48 = vmul.f32 %v4319_v32, %v2748_v39  ;;  %v2777_v50 = vrot.slane %v4330_v33, %v4532_v6  ;;  %v4351_v28 = vld [vmem:[%s4520_s14 + $0x470] sm:$0x7f]  ;;  %v4352_v29 = vld [vmem:[%s4520_s14 + $0x478] sm:$0x7f] }
  0xcf   : > { %v2735_v47 = vadd.f32 %v2732_v36, %v2706_v34  ;;  %v2736_v51 = vadd.f32 %v2733_v41, %v2707_v40  ;;  %v2761_v52 = vmul.f32 %v4320_v37, %v2752_v42  ;;  %v2781_v55 = vrot.slane %v4330_v33, %v4534_v7  ;;  %v4358_v35 = vld [vmem:[%s4520_s14 + $0x630] sm:$0x7f]  ;;  %v4359_v40 = vld [vmem:[%s4520_s14 + $0x638] sm:$0x7f] }
  0xd0   : > { %v2762_v53 = vmul.f32 %v4321_v38, %v2756_v43  ;;  %v2763_v57 = vadd.f32 %v2760_v48, %v2734_v46  ;;  %v2785_v58 = vrot.slane %v4330_v33, %v4536_v8  ;;  %v2789_v59 = vmul.f32 %v4327_v44, %v2777_v50  ;;  %v4369_v36 = vld [vmem:[%s5464_s1 + $0x33] ss:$8 sm:$0x7] }
  0xd1   : > { %v2807_v61 = vrot.slane %v4337_v45, %v4532_v6  ;;  %v2764_v63 = vadd.f32 %v2761_v52, %v2735_v47  ;;  %v2790_v1 = vmul.f32 %v4328_v49, %v2781_v55  ;;  %v2811_v3 = vrot.slane %v4337_v45, %v4534_v7  ;;  %v4366_v47 = vld [vmem:[%s4520_s14 + $0x7f8] sm:$0x7f] }
  0xd2   : > { %v2765_v0 = vadd.f32 %v2762_v53, %v2736_v51  ;;  %v2791_v5 = vmul.f32 %v4329_v54, %v2785_v58  ;;  %v2792_v9 = vadd.f32 %v2789_v59, %v2763_v57  ;;  %v2815_v10 = vrot.slane %v4337_v45, %v4536_v8  ;;  %v4360_v45 = vld [vmem:[%s4520_s14 + $0x640] sm:$0x7f]  ;;  %v4368_v57 = vld [vmem:[%s4520_s14 + $0x808] sm:$0x7f]  ;;  %v4373_v59 = vld [vmem:[%s4520_s14 + $0xf0] sm:$0x7f] }
  0xd3   : > { %v2819_v11 = vmul.f32 %v4334_v56, %v2807_v61  ;;  %v2793_v14 = vadd.f32 %v2790_v1, %v2764_v63  ;;  %v2820_v15 = vmul.f32 %v4335_v60, %v2811_v3  ;;  %v2836_v17 = vrot.slane %v4345_v62, %v4532_v6  ;;  %v4367_v51 = vld [vmem:[%s4520_s14 + $0x800] sm:$0x7f] }
  0xd4   : > { %v2840_v18 = vrot.slane %v4345_v62, %v4534_v7  ;;  %v2794_v19 = vadd.f32 %v2791_v5, %v2765_v0  ;;  %v2821_v20 = vmul.f32 %v4336_v2, %v2815_v10  ;;  %v2844_v22 = vrot.slane %v4345_v62, %v4536_v8  ;;  %v4376_v53 = vld [vmem:[%s5464_s1 + $0x34] ss:$8 sm:$0x7]  ;;  %v4384_v1 = vld [vmem:[%s5464_s1 + $0x35] ss:$8 sm:$0x7] }
  0xd5   : > { %v2822_v21 = vadd.f32 %v2819_v11, %v2792_v9  ;;  %v2823_v25 = vadd.f32 %v2820_v15, %v2793_v14  ;;  %v2848_v26 = vmul.f32 %v4342_v4, %v2836_v17  ;;  %v2865_v30 = vrot.slane %v4353_v13, %v4532_v6  ;;  %v4374_v0 = vld [vmem:[%s4520_s14 + $0xf8] sm:$0x7f]  ;;  %v4375_v4 = vld [vmem:[%s4520_s14 + $0x100] sm:$0x7f] }
  0xd6   : > { %v2849_v27 = vmul.f32 %v4343_v12, %v2840_v18  ;;  %v2824_v31 = vadd.f32 %v2821_v20, %v2794_v19  ;;  %v2850_v32 = vmul.f32 %v4344_v16, %v2844_v22  ;;  %v2869_v33 = vrot.slane %v4353_v13, %v4534_v7  ;;  %v4381_v14 = vld [vmem:[%s4520_s14 + $0x2b8] sm:$0x7f]  ;;  %v4382_v19 = vld [vmem:[%s4520_s14 + $0x2c0] sm:$0x7f]  ;;  %v4383_v20 = vld [vmem:[%s4520_s14 + $0x2c8] sm:$0x7f] }
  0xd7   : > { %v2873_v34 = vrot.slane %v4353_v13, %v4536_v8  ;;  %v2851_v37 = vadd.f32 %v2848_v26, %v2822_v21  ;;  %v2877_v39 = vmul.f32 %v4350_v23, %v2865_v30  ;;  %v2894_v41 = vrot.slane %v4361_v24, %v4532_v6  ;;  %v4392_v15 = vld [vmem:[%s5464_s1 + $0x36] ss:$8 sm:$0x7] }
  0xd8   : > { %v2852_v38 = vadd.f32 %v2849_v27, %v2823_v25  ;;  %v2853_v42 = vadd.f32 %v2850_v32, %v2824_v31  ;;  %v2878_v43 = vmul.f32 %v4351_v28, %v2869_v33  ;;  %v2898_v46 = vrot.slane %v4361_v24, %v4534_v7  ;;  %v4389_v26 = vld [vmem:[%s4520_s14 + $0x480] sm:$0x7f]  ;;  %v4400_v27 = vld [vmem:[%s5464_s1 + $0x37] ss:$8 sm:$0x7] }
  0xd9   : > { %v2879_v44 = vmul.f32 %v4352_v29, %v2873_v34  ;;  %v2880_v48 = vadd.f32 %v2877_v39, %v2851_v37  ;;  %v2902_v49 = vrot.slane %v4361_v24, %v4536_v8  ;;  %v2906_v50 = vmul.f32 %v4358_v35, %v2894_v41  ;;  %v4390_v31 = vld [vmem:[%s4520_s14 + $0x488] sm:$0x7f] }
  0xda   : > { %v2923_v52 = vrot.slane %v4369_v36, %v4532_v6  ;;  %v2881_v54 = vadd.f32 %v2878_v43, %v2852_v38  ;;  %v2907_v56 = vmul.f32 %v4359_v40, %v2898_v46  ;;  %v2927_v58 = vrot.slane %v4369_v36, %v4534_v7  ;;  %v4397_v38 = vld [vmem:[%s4520_s14 + $0x648] sm:$0x7f] }
  0xdb   : > { %v2882_v55 = vadd.f32 %v2879_v44, %v2853_v42  ;;  %v2908_v60 = vmul.f32 %v4360_v45, %v2902_v49  ;;  %v2909_v61 = vadd.f32 %v2906_v50, %v2880_v48  ;;  %v2931_v62 = vrot.slane %v4369_v36, %v4536_v8  ;;  %v4391_v36 = vld [vmem:[%s4520_s14 + $0x490] sm:$0x7f]  ;;  %v4399_v48 = vld [vmem:[%s4520_s14 + $0x658] sm:$0x7f] }
  0xdc   : > { %v2935_v63 = vmul.f32 %v4366_v47, %v2923_v52  ;;  %v2910_v2 = vadd.f32 %v2907_v56, %v2881_v54  ;;  %v2936_v3 = vmul.f32 %v4367_v51, %v2927_v58  ;;  %v2953_v5 = vrot.slane %v4376_v53, %v4532_v6  ;;  %v4398_v42 = vld [vmem:[%s4520_s14 + $0x650] sm:$0x7f]  ;;  %v4407_v58 = vld [vmem:[%s4520_s14 + $0x820] sm:$0x7f] }
  0xdd   : > { %v2957_v9 = vrot.slane %v4376_v53, %v4534_v7  ;;  %v2911_v10 = vadd.f32 %v2908_v60, %v2882_v55  ;;  %v2937_v11 = vmul.f32 %v4368_v57, %v2931_v62  ;;  %v2961_v13 = vrot.slane %v4376_v53, %v4536_v8  ;;  %v4408_v44 = vld [vmem:[%s5464_s1 + $0x48] ss:$8 sm:$0x7] }
  0xde   : > { %v2938_v12 = vadd.f32 %v2935_v63, %v2909_v61  ;;  %v2939_v16 = vadd.f32 %v2936_v3, %v2910_v2  ;;  %v2965_v17 = vmul.f32 %v4373_v59, %v2953_v5  ;;  %v2982_v21 = vrot.slane %v4384_v1, %v4532_v6  ;;  %v4405_v54 = vld [vmem:[%s4520_s14 + $0x810] sm:$0x7f]  ;;  %v4406_v55 = vld [vmem:[%s4520_s14 + $0x818] sm:$0x7f] }
  0xdf   : > { %v2966_v18 = vmul.f32 %v4374_v0, %v2957_v9  ;;  %v2940_v22 = vadd.f32 %v2937_v11, %v2911_v10  ;;  %v2967_v23 = vmul.f32 %v4375_v4, %v2961_v13  ;;  %v2986_v24 = vrot.slane %v4384_v1, %v4534_v7 }
  0xe0   : > { %v2990_v25 = vrot.slane %v4384_v1, %v4536_v8  ;;  %v2968_v28 = vadd.f32 %v2965_v17, %v2938_v12  ;;  %v2994_v30 = vmul.f32 %v4381_v14, %v2982_v21  ;;  %v3011_v32 = vrot.slane %v4392_v15, %v4532_v6 }
  0xe1   : > { %v2969_v29 = vadd.f32 %v2966_v18, %v2939_v16  ;;  %v2970_v33 = vadd.f32 %v2967_v23, %v2940_v22  ;;  %v2995_v34 = vmul.f32 %v4382_v19, %v2986_v24  ;;  %v3015_v37 = vrot.slane %v4392_v15, %v4534_v7 }
  0xe2   : > { %v2996_v35 = vmul.f32 %v4383_v20, %v2990_v25  ;;  %v2997_v39 = vadd.f32 %v2994_v30, %v2968_v28  ;;  %v3019_v40 = vrot.slane %v4392_v15, %v4536_v8  ;;  %v3023_v41 = vmul.f32 %v4389_v26, %v3011_v32 }
  0xe3   : > { %v3040_v43 = vrot.slane %v4400_v27, %v4532_v6  ;;  %v2998_v45 = vadd.f32 %v2995_v34, %v2969_v29  ;;  %v3024_v47 = vmul.f32 %v4390_v31, %v3015_v37  ;;  %v3044_v49 = vrot.slane %v4400_v27, %v4534_v7 }
  0xe4   : > { %v2999_v46 = vadd.f32 %v2996_v35, %v2970_v33  ;;  %v3025_v50 = vmul.f32 %v4391_v36, %v3019_v40  ;;  %v3026_v51 = vadd.f32 %v3023_v41, %v2997_v39  ;;  %v3048_v52 = vrot.slane %v4400_v27, %v4536_v8 }
  0xe5   : > { %v3052_v53 = vmul.f32 %v4397_v38, %v3040_v43  ;;  %v3027_v56 = vadd.f32 %v3024_v47, %v2998_v45  ;;  %v3053_v57 = vmul.f32 %v4398_v42, %v3044_v49  ;;  %v3069_v59 = vrot.slane %v4408_v44, %v4532_v6 }
  0xe6   : > { %v3073_v60 = vrot.slane %v4408_v44, %v4534_v7  ;;  %v3028_v61 = vadd.f32 %v3025_v50, %v2999_v46  ;;  %v3054_v62 = vmul.f32 %v4399_v48, %v3048_v52  ;;  %v3077_v0 = vrot.slane %v4408_v44, %v4536_v8 }
  0xe7   : > { %v3055_v63 = vadd.f32 %v3052_v53, %v3026_v51  ;;  %v3056_v1 = vadd.f32 %v3053_v57, %v3027_v56  ;;  %v3081_v2 = vmul.f32 %v4405_v54, %v3069_v59 }
  0xe8   : > { %v3082_v3 = vmul.f32 %v4406_v55, %v3073_v60  ;;  %v3057_v4 = vadd.f32 %v3054_v62, %v3028_v61  ;;  %v3083_v5 = vmul.f32 %v4407_v58, %v3077_v0 }
  0xe9   : > { %v3084_v9 = vadd.f32 %v3081_v2, %v3055_v63 }
  0xea   : > { %v3085_v10 = vadd.f32 %v3082_v3, %v3056_v1  ;;  %v3086_v11 = vadd.f32 %v3083_v5, %v3057_v4 }
  0xeb   : > { %4409 = vst [vmem:[%s4776_s22 + $0x48] sm:$0x7f] %v3084_v9 }
  0xec   : > { %4410 = vst [vmem:[%s4776_s22 + $0x50] sm:$0x7f] %v3085_v10  ;;  %4411 = vst.msk [vmem:[%s4776_s22 + $0x58] sm:$0x7f] %vm883_vm0, %v3086_v11 }
  0xed PF: > { %s12_s9 = sadd.s32 1, %s4490_s9  }
  0xee   : > { %p9_p4 = scmp.ge.s32.totalorder %s12_s9, 4  }
  0xf0   :  { %11 = sbr.rel (!%p9_p4) target bundleno = 1 (0x1), region = 182 }

</bundles_post_ra>
